<compile_context>
chip_gen: v7x
topology: tpu7x:2x2x1
jax: 0.10.0
libtpu: 0.0.40
codegen_flags: <defaults>
</compile_context>

<pallas_src>
import functools

import jax
import jax.numpy as jnp
from jax.experimental import pallas as pl
from jax.experimental.pallas import tpu as pltpu

LANE = 128          # channel block width (lane axis)
TILE_H_MAX = 8      # output rows per grid step


# ----------------------------- helpers (glue) ------------------------------ #

def get_same_padding(kernel_size: int) -> int:
    return kernel_size // 2


def sub_filter_start_end(kernel_size: int, sub_kernel_size: int):
    center = kernel_size // 2
    dev = sub_kernel_size // 2
    start, end = center - dev, center + dev + 1
    return start, end


def get_active_filter(weight, scale_matrices, kernel_size_list, in_channel,
                      kernel_size, weight_sharing_mode):
    """Mirror of DynamicSeparableConv2d.get_active_filter (modes 0 and 1).

    weight: (C_max, 1, K_max, K_max) depthwise weight tensor.
    Returns filters of shape (in_channel, 1, kernel_size, kernel_size).
    """
    out_channel = in_channel
    max_kernel_size = max(kernel_size_list)
    start, end = sub_filter_start_end(max_kernel_size, kernel_size)
    filters = weight[:out_channel, :in_channel, start:end, start:end]
    if weight_sharing_mode == 1 and kernel_size < max_kernel_size:
        start_filter = weight[:out_channel, :in_channel, :, :]
        for i in range(len(kernel_size_list) - 1, 0, -1):
            src_ks = kernel_size_list[i]
            if src_ks <= kernel_size:
                break
            target_ks = kernel_size_list[i - 1]
            s, e = sub_filter_start_end(src_ks, target_ks)
            _f = start_filter[:, :, s:e, s:e]
            oc, ic = _f.shape[0], _f.shape[1]
            _f = _f.reshape(oc * ic, target_ks ** 2)
            # F.linear(x, M) == x @ M.T
            mat = scale_matrices['%dto%d_matrix' % (src_ks, target_ks)]
            _f = _f @ mat.T
            _f = _f.reshape(oc, ic, target_ks, target_ks)
            start_filter = _f
        filters = start_filter
    return filters


# ----------------------------- Pallas kernel ------------------------------- #

def _dw_conv_kernel(x_ref, w_ref, o_ref, *, K, stride, dilation, TILE_H, Wo, Wp):
    # x_ref: (1, Hp, Wp, CB)  zero-padded input, resident across the h grid axis
    # w_ref: (K2p, CB)        flattened depthwise taps, channels on the lane axis
    # o_ref: (1, TILE_H, Wo, CB)
    CB = o_ref.shape[-1]
    ht = pl.program_id(2)
    row0 = pl.multiple_of(ht * (TILE_H * stride), TILE_H * stride)

    # Hoist weight load / cast / per-tap slicing out of the tap loops.
    w = w_ref[...].astype(jnp.float32)                  # (K2p, CB), cast once
    w_taps = [w[t:t + 1, :] for t in range(K * K)]      # each (1, CB)

    for r in range(TILE_H):                             # one output row per step
        acc = None
        for kh in range(K):
            in_row = row0 + r * stride + kh * dilation
            row = x_ref[0, in_row, :, :].astype(jnp.float32)          # (Wp, CB)
            for kw in range(K):
                wt = w_taps[kh * K + kw]
                if stride == 1:
                    sh = (kw * dilation) % Wp
                    # roll left by kw*dilation; wrapped garbage lands in
                    # columns >= Wo and is discarded below.
                    shifted = row if sh == 0 else pltpu.roll(row, Wp - sh, 0)
                    term = shifted * wt                               # (Wp, CB)
                else:
                    # TODO(synk): stride>1 even/odd W-phase decomposition; this
                    # strided sublane slice fallback is correct but not optimal.
                    patch = jax.lax.slice(
                        row, (kw * dilation, 0),
                        (kw * dilation + (Wo - 1) * stride + 1, CB),
                        (stride, 1))
                    term = patch * wt                                 # (Wo, CB)
                acc = term if acc is None else acc + term
        out_row = acc[:Wo, :] if stride == 1 else acc
        o_ref[0, r, :, :] = out_row.astype(o_ref.dtype)


def depthwise_conv2d_pallas(x_nchw, filters, stride=1, padding=0, dilation=1):
    """Depthwise conv2d (groups = C) matching F.conv2d(x, filters, None, stride,
    padding, dilation, groups=C).  x_nchw: (N,C,H,W); filters: (C,1,K,K)."""
    N, C, H, W = x_nchw.shape
    K = filters.shape[-1]
    p = padding

    Ho = (H + 2 * p - dilation * (K - 1) - 1) // stride + 1
    Wo = (W + 2 * p - dilation * (K - 1) - 1) // stride + 1
    assert Ho >= 1 and Wo >= 1

    CB = LANE
    Cpad = ((C + CB - 1) // CB) * CB
    n_ct = Cpad // CB
    TILE_H = min(TILE_H_MAX, Ho)
    n_ht = (Ho + TILE_H - 1) // TILE_H

    # Padded input extents: sublane-align W, and make H deep enough that the
    # last (possibly ragged) H tile never reads out of bounds.
    Wp = ((W + 2 * p + 7) // 8) * 8
    Hp_need = (n_ht * TILE_H - 1) * stride + dilation * (K - 1) + 1
    Hp = max(H + 2 * p, Hp_need)

    # Single layout-change pass: NCHW -> NHWC with spatial + channel zero
    # padding fused into the same pad (no separate padding HBM pass).
    x_nhwc = jnp.transpose(x_nchw, (0, 2, 3, 1))
    x_p = jnp.pad(x_nhwc, ((0, 0),
                           (p, Hp - H - p),
                           (p, Wp - W - p),
                           (0, Cpad - C)))

    # Weight: (C,1,K,K) -> flattened taps (K2p, Cpad), channel on lanes.
    K2 = K * K
    K2p = ((K2 + 7) // 8) * 8
    w_kkc = jnp.transpose(filters[:, 0, :, :], (1, 2, 0)).reshape(K2, C)
    w_flat = jnp.pad(w_kkc, ((0, K2p - K2), (0, Cpad - C)))

    kernel = functools.partial(_dw_conv_kernel, K=K, stride=stride,
                               dilation=dilation, TILE_H=TILE_H, Wo=Wo, Wp=Wp)

    # VMEM budget: double-buffered blocks + slack; keep >= 32 MiB (raises v5e's
    # 16 MiB default) and <= 48 MiB (headroom on v7x's 64 MiB physical VMEM).
    itemsize = jnp.dtype(x_nchw.dtype).itemsize
    x_blk = Hp * Wp * CB * itemsize
    o_blk = TILE_H * Wo * CB * itemsize
    w_blk = K2p * CB * itemsize
    need = 2 * (x_blk + o_blk + w_blk) + (4 << 20)
    vmem_limit = int(min(max(need, 32 << 20), 48 << 20))

    out_nhwc = pl.pallas_call(
        kernel,
        out_shape=jax.ShapeDtypeStruct((N, n_ht * TILE_H, Wo, Cpad), x_nchw.dtype),
        grid_spec=pltpu.PrefetchScalarGridSpec(
            num_scalar_prefetch=0,
            grid=(N, n_ct, n_ht),
            in_specs=[
                # Input block is resident across the h axis (index_map ignores h).
                pl.BlockSpec((1, Hp, Wp, CB), lambda n, c, h: (n, 0, 0, c)),
                pl.BlockSpec((K2p, CB), lambda n, c, h: (0, c)),
            ],
            out_specs=pl.BlockSpec((1, TILE_H, Wo, CB), lambda n, c, h: (n, h, 0, c)),
        ),
        compiler_params=pltpu.CompilerParams(
            dimension_semantics=("parallel", "parallel", "parallel"),
            vmem_limit_bytes=vmem_limit,
        ),
    )(x_p, w_flat)

    # Crop padding and return to NCHW (crop fuses into this layout pass).
    return jnp.transpose(out_nhwc[:, :Ho, :, :C], (0, 3, 1, 2))


# -------------------------- module-level wrapper --------------------------- #

class DynamicSeparableConv2dPallas:
    """JAX/Pallas port of DynamicSeparableConv2d (weight_sharing_mode 0/1)."""

    def __init__(self, in_channel_list, kernel_size_list, weight_sharing_mode=1,
                 stride=1, dilation=1, key=None):
        self.in_channel_list = sorted(in_channel_list)
        self.kernel_size_list = sorted(kernel_size_list)
        self.max_in_channels = max(self.in_channel_list)
        self.max_kernel_size = max(self.kernel_size_list)
        self.stride = stride
        self.dilation = dilation
        self.weight_sharing_mode = weight_sharing_mode
        self.active_kernel = self.max_kernel_size

        key = jax.random.PRNGKey(0) if key is None else key
        # nn.Conv2d(groups=C) weight shape: (C, 1, Kmax, Kmax)
        self.weight = jax.random.normal(
            key, (self.max_in_channels, 1, self.max_kernel_size, self.max_kernel_size),
            dtype=jnp.float32) * 0.1

        self.scale_matrices = {}
        if self.weight_sharing_mode == 1:
            for i in range(len(self.kernel_size_list) - 1):
                ks_small = self.kernel_size_list[i]
                ks_larger = self.kernel_size_list[i + 1]
                name = '%dto%d_matrix' % (ks_larger, ks_small)
                self.scale_matrices[name] = jnp.eye(ks_small ** 2, dtype=jnp.float32)
        # TODO(synk): weight_sharing_mode 2/3 (per-kernel / per-channel weight dicts)
        # use the same depthwise Pallas kernel, only parameter bookkeeping differs.

    def __call__(self, x, kernel=None):
        _kernel = self.active_kernel if kernel is None else kernel
        _in_channel = x.shape[1]
        filters = get_active_filter(self.weight, self.scale_matrices,
                                    self.kernel_size_list, _in_channel, _kernel,
                                    self.weight_sharing_mode)
        padding = get_same_padding(_kernel)
        return depthwise_conv2d_pallas(x, filters, self.stride, padding, self.dilation)


# --------------------------------- main ------------------------------------ #

if __name__ == "__main__":
    key = jax.random.PRNGKey(0)
    k_x, k_w = jax.random.split(key)

    N, C, H, W = 2, 4, 16, 16
    module = DynamicSeparableConv2dPallas(
        in_channel_list=[4, 8], kernel_size_list=[3, 5, 7],
        weight_sharing_mode=1, stride=1, dilation=1, key=k_w)
    module.active_kernel = 5  # exercise the 7->5 kernel transform path

    x = jax.random.normal(k_x, (N, C, H, W), dtype=jnp.float32)

    y = module(x)
    y = jax.block_until_ready(y)

    # Reference check against XLA's grouped conv (same semantics as F.conv2d).
    filters = get_active_filter(module.weight, module.scale_matrices,
                                module.kernel_size_list, C, module.active_kernel, 1)
    p = get_same_padding(module.active_kernel)
    y_ref = jax.lax.conv_general_dilated(
        x, filters, window_strides=(1, 1), padding=[(p, p), (p, p)],
        rhs_dilation=(1, 1), feature_group_count=C,
        dimension_numbers=('NCHW', 'OIHW', 'NCHW'))
    assert y.shape == (N, C, H, W)
    assert jnp.allclose(y, y_ref, rtol=1e-5, atol=1e-5)

    print("KERNEL_OK")
</pallas_src>

<mosaic_0001>
module attributes {stable_mosaic.version = 11 : i64} {
  func.func @_dw_conv_kernel(%arg0: i32, %arg1: i32, %arg2: i32, %arg3: memref<1x20x24x128xf32, #tpu.memory_space<vmem>>, %arg4: memref<32x128xf32, #tpu.memory_space<vmem>>, %arg5: memref<1x8x16x128xf32, #tpu.memory_space<vmem>>) attributes {dimension_semantics = [#tpu.dimension_semantics<parallel>, #tpu.dimension_semantics<parallel>, #tpu.dimension_semantics<parallel>], iteration_bounds = array<i64: 2, 1, 2>, scalar_prefetch = 0 : i64, scratch_operands = 0 : i64, tpu.core_type = #tpu.core_type<tc>, window_params = [{transform_indices = @transform_0, window_bounds = array<i64: 1, 20, 24, 128>}, {transform_indices = @transform_1, window_bounds = array<i64: 32, 128>}, {transform_indices = @transform_2, window_bounds = array<i64: 1, 8, 16, 128>}]} {
    %c8_i32 = arith.constant 8 : i32
    %0 = arith.muli %arg2, %c8_i32 : i32
    %1 = tpu.assume_multiple %0, 8 : i32
    %c0 = arith.constant 0 : index
    %c0_0 = arith.constant 0 : index
    %2 = vector.load %arg4[%c0, %c0_0] : memref<32x128xf32, #tpu.memory_space<vmem>>, vector<32x128xf32>
    %3 = vector.extract_strided_slice %2 {offsets = [0, 0], sizes = [1, 128], strides = [1, 1]} : vector<32x128xf32> to vector<1x128xf32>
    %4 = vector.extract_strided_slice %2 {offsets = [1, 0], sizes = [1, 128], strides = [1, 1]} : vector<32x128xf32> to vector<1x128xf32>
    %5 = vector.extract_strided_slice %2 {offsets = [2, 0], sizes = [1, 128], strides = [1, 1]} : vector<32x128xf32> to vector<1x128xf32>
    %6 = vector.extract_strided_slice %2 {offsets = [3, 0], sizes = [1, 128], strides = [1, 1]} : vector<32x128xf32> to vector<1x128xf32>
    %7 = vector.extract_strided_slice %2 {offsets = [4, 0], sizes = [1, 128], strides = [1, 1]} : vector<32x128xf32> to vector<1x128xf32>
    %8 = vector.extract_strided_slice %2 {offsets = [5, 0], sizes = [1, 128], strides = [1, 1]} : vector<32x128xf32> to vector<1x128xf32>
    %9 = vector.extract_strided_slice %2 {offsets = [6, 0], sizes = [1, 128], strides = [1, 1]} : vector<32x128xf32> to vector<1x128xf32>
    %10 = vector.extract_strided_slice %2 {offsets = [7, 0], sizes = [1, 128], strides = [1, 1]} : vector<32x128xf32> to vector<1x128xf32>
    %11 = vector.extract_strided_slice %2 {offsets = [8, 0], sizes = [1, 128], strides = [1, 1]} : vector<32x128xf32> to vector<1x128xf32>
    %12 = vector.extract_strided_slice %2 {offsets = [9, 0], sizes = [1, 128], strides = [1, 1]} : vector<32x128xf32> to vector<1x128xf32>
    %13 = vector.extract_strided_slice %2 {offsets = [10, 0], sizes = [1, 128], strides = [1, 1]} : vector<32x128xf32> to vector<1x128xf32>
    %14 = vector.extract_strided_slice %2 {offsets = [11, 0], sizes = [1, 128], strides = [1, 1]} : vector<32x128xf32> to vector<1x128xf32>
    %15 = vector.extract_strided_slice %2 {offsets = [12, 0], sizes = [1, 128], strides = [1, 1]} : vector<32x128xf32> to vector<1x128xf32>
    %16 = vector.extract_strided_slice %2 {offsets = [13, 0], sizes = [1, 128], strides = [1, 1]} : vector<32x128xf32> to vector<1x128xf32>
    %17 = vector.extract_strided_slice %2 {offsets = [14, 0], sizes = [1, 128], strides = [1, 1]} : vector<32x128xf32> to vector<1x128xf32>
    %18 = vector.extract_strided_slice %2 {offsets = [15, 0], sizes = [1, 128], strides = [1, 1]} : vector<32x128xf32> to vector<1x128xf32>
    %19 = vector.extract_strided_slice %2 {offsets = [16, 0], sizes = [1, 128], strides = [1, 1]} : vector<32x128xf32> to vector<1x128xf32>
    %20 = vector.extract_strided_slice %2 {offsets = [17, 0], sizes = [1, 128], strides = [1, 1]} : vector<32x128xf32> to vector<1x128xf32>
    %21 = vector.extract_strided_slice %2 {offsets = [18, 0], sizes = [1, 128], strides = [1, 1]} : vector<32x128xf32> to vector<1x128xf32>
    %22 = vector.extract_strided_slice %2 {offsets = [19, 0], sizes = [1, 128], strides = [1, 1]} : vector<32x128xf32> to vector<1x128xf32>
    %23 = vector.extract_strided_slice %2 {offsets = [20, 0], sizes = [1, 128], strides = [1, 1]} : vector<32x128xf32> to vector<1x128xf32>
    %24 = vector.extract_strided_slice %2 {offsets = [21, 0], sizes = [1, 128], strides = [1, 1]} : vector<32x128xf32> to vector<1x128xf32>
    %25 = vector.extract_strided_slice %2 {offsets = [22, 0], sizes = [1, 128], strides = [1, 1]} : vector<32x128xf32> to vector<1x128xf32>
    %26 = vector.extract_strided_slice %2 {offsets = [23, 0], sizes = [1, 128], strides = [1, 1]} : vector<32x128xf32> to vector<1x128xf32>
    %27 = vector.extract_strided_slice %2 {offsets = [24, 0], sizes = [1, 128], strides = [1, 1]} : vector<32x128xf32> to vector<1x128xf32>
    %c0_i32 = arith.constant 0 : i32
    %28 = arith.addi %1, %c0_i32 : i32
    %c0_i32_1 = arith.constant 0 : i32
    %29 = arith.addi %28, %c0_i32_1 : i32
    %c0_2 = arith.constant 0 : index
    %30 = arith.index_cast %29 : i32 to index
    %c0_3 = arith.constant 0 : index
    %c0_4 = arith.constant 0 : index
    %31 = vector.load %arg3[%c0_2, %30, %c0_3, %c0_4] : memref<1x20x24x128xf32, #tpu.memory_space<vmem>>, vector<1x1x24x128xf32>
    %32 = vector.shape_cast %31 : vector<1x1x24x128xf32> to vector<24x128xf32>
    %33 = vector.broadcast %3 : vector<1x128xf32> to vector<24x128xf32>
    %34 = arith.mulf %32, %33 : vector<24x128xf32>
    %c23_i32 = arith.constant 23 : i32
    %35 = tpu.dynamic_rotate %32 by %c23_i32 dim 0 : vector<24x128xf32>, i32 -> vector<24x128xf32>
    %36 = vector.broadcast %4 : vector<1x128xf32> to vector<24x128xf32>
    %37 = arith.mulf %35, %36 : vector<24x128xf32>
    %38 = arith.addf %34, %37 : vector<24x128xf32>
    %c22_i32 = arith.constant 22 : i32
    %39 = tpu.dynamic_rotate %32 by %c22_i32 dim 0 : vector<24x128xf32>, i32 -> vector<24x128xf32>
    %40 = vector.broadcast %5 : vector<1x128xf32> to vector<24x128xf32>
    %41 = arith.mulf %39, %40 : vector<24x128xf32>
    %42 = arith.addf %38, %41 : vector<24x128xf32>
    %c21_i32 = arith.constant 21 : i32
    %43 = tpu.dynamic_rotate %32 by %c21_i32 dim 0 : vector<24x128xf32>, i32 -> vector<24x128xf32>
    %44 = vector.broadcast %6 : vector<1x128xf32> to vector<24x128xf32>
    %45 = arith.mulf %43, %44 : vector<24x128xf32>
    %46 = arith.addf %42, %45 : vector<24x128xf32>
    %c20_i32 = arith.constant 20 : i32
    %47 = tpu.dynamic_rotate %32 by %c20_i32 dim 0 : vector<24x128xf32>, i32 -> vector<24x128xf32>
    %48 = vector.broadcast %7 : vector<1x128xf32> to vector<24x128xf32>
    %49 = arith.mulf %47, %48 : vector<24x128xf32>
    %50 = arith.addf %46, %49 : vector<24x128xf32>
    %c0_i32_5 = arith.constant 0 : i32
    %51 = arith.addi %1, %c0_i32_5 : i32
    %c1_i32 = arith.constant 1 : i32
    %52 = arith.addi %51, %c1_i32 : i32
    %c0_6 = arith.constant 0 : index
    %53 = arith.index_cast %52 : i32 to index
    %c0_7 = arith.constant 0 : index
    %c0_8 = arith.constant 0 : index
    %54 = vector.load %arg3[%c0_6, %53, %c0_7, %c0_8] : memref<1x20x24x128xf32, #tpu.memory_space<vmem>>, vector<1x1x24x128xf32>
    %55 = vector.shape_cast %54 : vector<1x1x24x128xf32> to vector<24x128xf32>
    %56 = vector.broadcast %8 : vector<1x128xf32> to vector<24x128xf32>
    %57 = arith.mulf %55, %56 : vector<24x128xf32>
    %58 = arith.addf %50, %57 : vector<24x128xf32>
    %c23_i32_9 = arith.constant 23 : i32
    %59 = tpu.dynamic_rotate %55 by %c23_i32_9 dim 0 : vector<24x128xf32>, i32 -> vector<24x128xf32>
    %60 = vector.broadcast %9 : vector<1x128xf32> to vector<24x128xf32>
    %61 = arith.mulf %59, %60 : vector<24x128xf32>
    %62 = arith.addf %58, %61 : vector<24x128xf32>
    %c22_i32_10 = arith.constant 22 : i32
    %63 = tpu.dynamic_rotate %55 by %c22_i32_10 dim 0 : vector<24x128xf32>, i32 -> vector<24x128xf32>
    %64 = vector.broadcast %10 : vector<1x128xf32> to vector<24x128xf32>
    %65 = arith.mulf %63, %64 : vector<24x128xf32>
    %66 = arith.addf %62, %65 : vector<24x128xf32>
    %c21_i32_11 = arith.constant 21 : i32
    %67 = tpu.dynamic_rotate %55 by %c21_i32_11 dim 0 : vector<24x128xf32>, i32 -> vector<24x128xf32>
    %68 = vector.broadcast %11 : vector<1x128xf32> to vector<24x128xf32>
    %69 = arith.mulf %67, %68 : vector<24x128xf32>
    %70 = arith.addf %66, %69 : vector<24x128xf32>
    %c20_i32_12 = arith.constant 20 : i32
    %71 = tpu.dynamic_rotate %55 by %c20_i32_12 dim 0 : vector<24x128xf32>, i32 -> vector<24x128xf32>
    %72 = vector.broadcast %12 : vector<1x128xf32> to vector<24x128xf32>
    %73 = arith.mulf %71, %72 : vector<24x128xf32>
    %74 = arith.addf %70, %73 : vector<24x128xf32>
    %c0_i32_13 = arith.constant 0 : i32
    %75 = arith.addi %1, %c0_i32_13 : i32
    %c2_i32 = arith.constant 2 : i32
    %76 = arith.addi %75, %c2_i32 : i32
    %c0_14 = arith.constant 0 : index
    %77 = arith.index_cast %76 : i32 to index
    %c0_15 = arith.constant 0 : index
    %c0_16 = arith.constant 0 : index
    %78 = vector.load %arg3[%c0_14, %77, %c0_15, %c0_16] : memref<1x20x24x128xf32, #tpu.memory_space<vmem>>, vector<1x1x24x128xf32>
    %79 = vector.shape_cast %78 : vector<1x1x24x128xf32> to vector<24x128xf32>
    %80 = vector.broadcast %13 : vector<1x128xf32> to vector<24x128xf32>
    %81 = arith.mulf %79, %80 : vector<24x128xf32>
    %82 = arith.addf %74, %81 : vector<24x128xf32>
    %c23_i32_17 = arith.constant 23 : i32
    %83 = tpu.dynamic_rotate %79 by %c23_i32_17 dim 0 : vector<24x128xf32>, i32 -> vector<24x128xf32>
    %84 = vector.broadcast %14 : vector<1x128xf32> to vector<24x128xf32>
    %85 = arith.mulf %83, %84 : vector<24x128xf32>
    %86 = arith.addf %82, %85 : vector<24x128xf32>
    %c22_i32_18 = arith.constant 22 : i32
    %87 = tpu.dynamic_rotate %79 by %c22_i32_18 dim 0 : vector<24x128xf32>, i32 -> vector<24x128xf32>
    %88 = vector.broadcast %15 : vector<1x128xf32> to vector<24x128xf32>
    %89 = arith.mulf %87, %88 : vector<24x128xf32>
    %90 = arith.addf %86, %89 : vector<24x128xf32>
    %c21_i32_19 = arith.constant 21 : i32
    %91 = tpu.dynamic_rotate %79 by %c21_i32_19 dim 0 : vector<24x128xf32>, i32 -> vector<24x128xf32>
    %92 = vector.broadcast %16 : vector<1x128xf32> to vector<24x128xf32>
    %93 = arith.mulf %91, %92 : vector<24x128xf32>
    %94 = arith.addf %90, %93 : vector<24x128xf32>
    %c20_i32_20 = arith.constant 20 : i32
    %95 = tpu.dynamic_rotate %79 by %c20_i32_20 dim 0 : vector<24x128xf32>, i32 -> vector<24x128xf32>
    %96 = vector.broadcast %17 : vector<1x128xf32> to vector<24x128xf32>
    %97 = arith.mulf %95, %96 : vector<24x128xf32>
    %98 = arith.addf %94, %97 : vector<24x128xf32>
    %c0_i32_21 = arith.constant 0 : i32
    %99 = arith.addi %1, %c0_i32_21 : i32
    %c3_i32 = arith.constant 3 : i32
    %100 = arith.addi %99, %c3_i32 : i32
    %c0_22 = arith.constant 0 : index
    %101 = arith.index_cast %100 : i32 to index
    %c0_23 = arith.constant 0 : index
    %c0_24 = arith.constant 0 : index
    %102 = vector.load %arg3[%c0_22, %101, %c0_23, %c0_24] : memref<1x20x24x128xf32, #tpu.memory_space<vmem>>, vector<1x1x24x128xf32>
    %103 = vector.shape_cast %102 : vector<1x1x24x128xf32> to vector<24x128xf32>
    %104 = vector.broadcast %18 : vector<1x128xf32> to vector<24x128xf32>
    %105 = arith.mulf %103, %104 : vector<24x128xf32>
    %106 = arith.addf %98, %105 : vector<24x128xf32>
    %c23_i32_25 = arith.constant 23 : i32
    %107 = tpu.dynamic_rotate %103 by %c23_i32_25 dim 0 : vector<24x128xf32>, i32 -> vector<24x128xf32>
    %108 = vector.broadcast %19 : vector<1x128xf32> to vector<24x128xf32>
    %109 = arith.mulf %107, %108 : vector<24x128xf32>
    %110 = arith.addf %106, %109 : vector<24x128xf32>
    %c22_i32_26 = arith.constant 22 : i32
    %111 = tpu.dynamic_rotate %103 by %c22_i32_26 dim 0 : vector<24x128xf32>, i32 -> vector<24x128xf32>
    %112 = vector.broadcast %20 : vector<1x128xf32> to vector<24x128xf32>
    %113 = arith.mulf %111, %112 : vector<24x128xf32>
    %114 = arith.addf %110, %113 : vector<24x128xf32>
    %c21_i32_27 = arith.constant 21 : i32
    %115 = tpu.dynamic_rotate %103 by %c21_i32_27 dim 0 : vector<24x128xf32>, i32 -> vector<24x128xf32>
    %116 = vector.broadcast %21 : vector<1x128xf32> to vector<24x128xf32>
    %117 = arith.mulf %115, %116 : vector<24x128xf32>
    %118 = arith.addf %114, %117 : vector<24x128xf32>
    %c20_i32_28 = arith.constant 20 : i32
    %119 = tpu.dynamic_rotate %103 by %c20_i32_28 dim 0 : vector<24x128xf32>, i32 -> vector<24x128xf32>
    %120 = vector.broadcast %22 : vector<1x128xf32> to vector<24x128xf32>
    %121 = arith.mulf %119, %120 : vector<24x128xf32>
    %122 = arith.addf %118, %121 : vector<24x128xf32>
    %c0_i32_29 = arith.constant 0 : i32
    %123 = arith.addi %1, %c0_i32_29 : i32
    %c4_i32 = arith.constant 4 : i32
    %124 = arith.addi %123, %c4_i32 : i32
    %c0_30 = arith.constant 0 : index
    %125 = arith.index_cast %124 : i32 to index
    %c0_31 = arith.constant 0 : index
    %c0_32 = arith.constant 0 : index
    %126 = vector.load %arg3[%c0_30, %125, %c0_31, %c0_32] : memref<1x20x24x128xf32, #tpu.memory_space<vmem>>, vector<1x1x24x128xf32>
    %127 = vector.shape_cast %126 : vector<1x1x24x128xf32> to vector<24x128xf32>
    %128 = vector.broadcast %23 : vector<1x128xf32> to vector<24x128xf32>
    %129 = arith.mulf %127, %128 : vector<24x128xf32>
    %130 = arith.addf %122, %129 : vector<24x128xf32>
    %c23_i32_33 = arith.constant 23 : i32
    %131 = tpu.dynamic_rotate %127 by %c23_i32_33 dim 0 : vector<24x128xf32>, i32 -> vector<24x128xf32>
    %132 = vector.broadcast %24 : vector<1x128xf32> to vector<24x128xf32>
    %133 = arith.mulf %131, %132 : vector<24x128xf32>
    %134 = arith.addf %130, %133 : vector<24x128xf32>
    %c22_i32_34 = arith.constant 22 : i32
    %135 = tpu.dynamic_rotate %127 by %c22_i32_34 dim 0 : vector<24x128xf32>, i32 -> vector<24x128xf32>
    %136 = vector.broadcast %25 : vector<1x128xf32> to vector<24x128xf32>
    %137 = arith.mulf %135, %136 : vector<24x128xf32>
    %138 = arith.addf %134, %137 : vector<24x128xf32>
    %c21_i32_35 = arith.constant 21 : i32
    %139 = tpu.dynamic_rotate %127 by %c21_i32_35 dim 0 : vector<24x128xf32>, i32 -> vector<24x128xf32>
    %140 = vector.broadcast %26 : vector<1x128xf32> to vector<24x128xf32>
    %141 = arith.mulf %139, %140 : vector<24x128xf32>
    %142 = arith.addf %138, %141 : vector<24x128xf32>
    %c20_i32_36 = arith.constant 20 : i32
    %143 = tpu.dynamic_rotate %127 by %c20_i32_36 dim 0 : vector<24x128xf32>, i32 -> vector<24x128xf32>
    %144 = vector.broadcast %27 : vector<1x128xf32> to vector<24x128xf32>
    %145 = arith.mulf %143, %144 : vector<24x128xf32>
    %146 = arith.addf %142, %145 : vector<24x128xf32>
    %147 = vector.extract_strided_slice %146 {offsets = [0, 0], sizes = [16, 128], strides = [1, 1]} : vector<24x128xf32> to vector<16x128xf32>
    %c0_37 = arith.constant 0 : index
    %c0_38 = arith.constant 0 : index
    %c0_39 = arith.constant 0 : index
    %c0_40 = arith.constant 0 : index
    %148 = vector.load %arg5[%c0_37, %c0_38, %c0_39, %c0_40] : memref<1x8x16x128xf32, #tpu.memory_space<vmem>>, vector<1x1x16x128xf32>
    %149 = vector.shape_cast %148 : vector<1x1x16x128xf32> to vector<16x128xf32>
    %150 = vector.shape_cast %147 : vector<16x128xf32> to vector<1x1x16x128xf32>
    tpu.vector_store %arg5[%c0_37, %c0_38, %c0_39, %c0_40], %150 {strides = array<i32>} : memref<1x8x16x128xf32, #tpu.memory_space<vmem>>, vector<1x1x16x128xf32>,
    %c1_i32_41 = arith.constant 1 : i32
    %151 = arith.addi %1, %c1_i32_41 : i32
    %c0_i32_42 = arith.constant 0 : i32
    %152 = arith.addi %151, %c0_i32_42 : i32
    %c0_43 = arith.constant 0 : index
    %153 = arith.index_cast %152 : i32 to index
    %c0_44 = arith.constant 0 : index
    %c0_45 = arith.constant 0 : index
    %154 = vector.load %arg3[%c0_43, %153, %c0_44, %c0_45] : memref<1x20x24x128xf32, #tpu.memory_space<vmem>>, vector<1x1x24x128xf32>
    %155 = vector.shape_cast %154 : vector<1x1x24x128xf32> to vector<24x128xf32>
    %156 = vector.broadcast %3 : vector<1x128xf32> to vector<24x128xf32>
    %157 = arith.mulf %155, %156 : vector<24x128xf32>
    %c23_i32_46 = arith.constant 23 : i32
    %158 = tpu.dynamic_rotate %155 by %c23_i32_46 dim 0 : vector<24x128xf32>, i32 -> vector<24x128xf32>
    %159 = vector.broadcast %4 : vector<1x128xf32> to vector<24x128xf32>
    %160 = arith.mulf %158, %159 : vector<24x128xf32>
    %161 = arith.addf %157, %160 : vector<24x128xf32>
    %c22_i32_47 = arith.constant 22 : i32
    %162 = tpu.dynamic_rotate %155 by %c22_i32_47 dim 0 : vector<24x128xf32>, i32 -> vector<24x128xf32>
    %163 = vector.broadcast %5 : vector<1x128xf32> to vector<24x128xf32>
    %164 = arith.mulf %162, %163 : vector<24x128xf32>
    %165 = arith.addf %161, %164 : vector<24x128xf32>
    %c21_i32_48 = arith.constant 21 : i32
    %166 = tpu.dynamic_rotate %155 by %c21_i32_48 dim 0 : vector<24x128xf32>, i32 -> vector<24x128xf32>
    %167 = vector.broadcast %6 : vector<1x128xf32> to vector<24x128xf32>
    %168 = arith.mulf %166, %167 : vector<24x128xf32>
    %169 = arith.addf %165, %168 : vector<24x128xf32>
    %c20_i32_49 = arith.constant 20 : i32
    %170 = tpu.dynamic_rotate %155 by %c20_i32_49 dim 0 : vector<24x128xf32>, i32 -> vector<24x128xf32>
    %171 = vector.broadcast %7 : vector<1x128xf32> to vector<24x128xf32>
    %172 = arith.mulf %170, %171 : vector<24x128xf32>
    %173 = arith.addf %169, %172 : vector<24x128xf32>
    %c1_i32_50 = arith.constant 1 : i32
    %174 = arith.addi %1, %c1_i32_50 : i32
    %c1_i32_51 = arith.constant 1 : i32
    %175 = arith.addi %174, %c1_i32_51 : i32
    %c0_52 = arith.constant 0 : index
    %176 = arith.index_cast %175 : i32 to index
    %c0_53 = arith.constant 0 : index
    %c0_54 = arith.constant 0 : index
    %177 = vector.load %arg3[%c0_52, %176, %c0_53, %c0_54] : memref<1x20x24x128xf32, #tpu.memory_space<vmem>>, vector<1x1x24x128xf32>
    %178 = vector.shape_cast %177 : vector<1x1x24x128xf32> to vector<24x128xf32>
    %179 = vector.broadcast %8 : vector<1x128xf32> to vector<24x128xf32>
    %180 = arith.mulf %178, %179 : vector<24x128xf32>
    %181 = arith.addf %173, %180 : vector<24x128xf32>
    %c23_i32_55 = arith.constant 23 : i32
    %182 = tpu.dynamic_rotate %178 by %c23_i32_55 dim 0 : vector<24x128xf32>, i32 -> vector<24x128xf32>
    %183 = vector.broadcast %9 : vector<1x128xf32> to vector<24x128xf32>
    %184 = arith.mulf %182, %183 : vector<24x128xf32>
    %185 = arith.addf %181, %184 : vector<24x128xf32>
    %c22_i32_56 = arith.constant 22 : i32
    %186 = tpu.dynamic_rotate %178 by %c22_i32_56 dim 0 : vector<24x128xf32>, i32 -> vector<24x128xf32>
    %187 = vector.broadcast %10 : vector<1x128xf32> to vector<24x128xf32>
    %188 = arith.mulf %186, %187 : vector<24x128xf32>
    %189 = arith.addf %185, %188 : vector<24x128xf32>
    %c21_i32_57 = arith.constant 21 : i32
    %190 = tpu.dynamic_rotate %178 by %c21_i32_57 dim 0 : vector<24x128xf32>, i32 -> vector<24x128xf32>
    %191 = vector.broadcast %11 : vector<1x128xf32> to vector<24x128xf32>
    %192 = arith.mulf %190, %191 : vector<24x128xf32>
    %193 = arith.addf %189, %192 : vector<24x128xf32>
    %c20_i32_58 = arith.constant 20 : i32
    %194 = tpu.dynamic_rotate %178 by %c20_i32_58 dim 0 : vector<24x128xf32>, i32 -> vector<24x128xf32>
    %195 = vector.broadcast %12 : vector<1x128xf32> to vector<24x128xf32>
    %196 = arith.mulf %194, %195 : vector<24x128xf32>
    %197 = arith.addf %193, %196 : vector<24x128xf32>
    %c1_i32_59 = arith.constant 1 : i32
    %198 = arith.addi %1, %c1_i32_59 : i32
    %c2_i32_60 = arith.constant 2 : i32
    %199 = arith.addi %198, %c2_i32_60 : i32
    %c0_61 = arith.constant 0 : index
    %200 = arith.index_cast %199 : i32 to index
    %c0_62 = arith.constant 0 : index
    %c0_63 = arith.constant 0 : index
    %201 = vector.load %arg3[%c0_61, %200, %c0_62, %c0_63] : memref<1x20x24x128xf32, #tpu.memory_space<vmem>>, vector<1x1x24x128xf32>
    %202 = vector.shape_cast %201 : vector<1x1x24x128xf32> to vector<24x128xf32>
    %203 = vector.broadcast %13 : vector<1x128xf32> to vector<24x128xf32>
    %204 = arith.mulf %202, %203 : vector<24x128xf32>
    %205 = arith.addf %197, %204 : vector<24x128xf32>
    %c23_i32_64 = arith.constant 23 : i32
    %206 = tpu.dynamic_rotate %202 by %c23_i32_64 dim 0 : vector<24x128xf32>, i32 -> vector<24x128xf32>
    %207 = vector.broadcast %14 : vector<1x128xf32> to vector<24x128xf32>
    %208 = arith.mulf %206, %207 : vector<24x128xf32>
    %209 = arith.addf %205, %208 : vector<24x128xf32>
    %c22_i32_65 = arith.constant 22 : i32
    %210 = tpu.dynamic_rotate %202 by %c22_i32_65 dim 0 : vector<24x128xf32>, i32 -> vector<24x128xf32>
    %211 = vector.broadcast %15 : vector<1x128xf32> to vector<24x128xf32>
    %212 = arith.mulf %210, %211 : vector<24x128xf32>
    %213 = arith.addf %209, %212 : vector<24x128xf32>
    %c21_i32_66 = arith.constant 21 : i32
    %214 = tpu.dynamic_rotate %202 by %c21_i32_66 dim 0 : vector<24x128xf32>, i32 -> vector<24x128xf32>
    %215 = vector.broadcast %16 : vector<1x128xf32> to vector<24x128xf32>
    %216 = arith.mulf %214, %215 : vector<24x128xf32>
    %217 = arith.addf %213, %216 : vector<24x128xf32>
    %c20_i32_67 = arith.constant 20 : i32
    %218 = tpu.dynamic_rotate %202 by %c20_i32_67 dim 0 : vector<24x128xf32>, i32 -> vector<24x128xf32>
    %219 = vector.broadcast %17 : vector<1x128xf32> to vector<24x128xf32>
    %220 = arith.mulf %218, %219 : vector<24x128xf32>
    %221 = arith.addf %217, %220 : vector<24x128xf32>
    %c1_i32_68 = arith.constant 1 : i32
    %222 = arith.addi %1, %c1_i32_68 : i32
    %c3_i32_69 = arith.constant 3 : i32
    %223 = arith.addi %222, %c3_i32_69 : i32
    %c0_70 = arith.constant 0 : index
    %224 = arith.index_cast %223 : i32 to index
    %c0_71 = arith.constant 0 : index
    %c0_72 = arith.constant 0 : index
    %225 = vector.load %arg3[%c0_70, %224, %c0_71, %c0_72] : memref<1x20x24x128xf32, #tpu.memory_space<vmem>>, vector<1x1x24x128xf32>
    %226 = vector.shape_cast %225 : vector<1x1x24x128xf32> to vector<24x128xf32>
    %227 = vector.broadcast %18 : vector<1x128xf32> to vector<24x128xf32>
    %228 = arith.mulf %226, %227 : vector<24x128xf32>
    %229 = arith.addf %221, %228 : vector<24x128xf32>
    %c23_i32_73 = arith.constant 23 : i32
    %230 = tpu.dynamic_rotate %226 by %c23_i32_73 dim 0 : vector<24x128xf32>, i32 -> vector<24x128xf32>
    %231 = vector.broadcast %19 : vector<1x128xf32> to vector<24x128xf32>
    %232 = arith.mulf %230, %231 : vector<24x128xf32>
    %233 = arith.addf %229, %232 : vector<24x128xf32>
    %c22_i32_74 = arith.constant 22 : i32
    %234 = tpu.dynamic_rotate %226 by %c22_i32_74 dim 0 : vector<24x128xf32>, i32 -> vector<24x128xf32>
    %235 = vector.broadcast %20 : vector<1x128xf32> to vector<24x128xf32>
    %236 = arith.mulf %234, %235 : vector<24x128xf32>
    %237 = arith.addf %233, %236 : vector<24x128xf32>
    %c21_i32_75 = arith.constant 21 : i32
    %238 = tpu.dynamic_rotate %226 by %c21_i32_75 dim 0 : vector<24x128xf32>, i32 -> vector<24x128xf32>
    %239 = vector.broadcast %21 : vector<1x128xf32> to vector<24x128xf32>
    %240 = arith.mulf %238, %239 : vector<24x128xf32>
    %241 = arith.addf %237, %240 : vector<24x128xf32>
    %c20_i32_76 = arith.constant 20 : i32
    %242 = tpu.dynamic_rotate %226 by %c20_i32_76 dim 0 : vector<24x128xf32>, i32 -> vector<24x128xf32>
    %243 = vector.broadcast %22 : vector<1x128xf32> to vector<24x128xf32>
    %244 = arith.mulf %242, %243 : vector<24x128xf32>
    %245 = arith.addf %241, %244 : vector<24x128xf32>
    %c1_i32_77 = arith.constant 1 : i32
    %246 = arith.addi %1, %c1_i32_77 : i32
    %c4_i32_78 = arith.constant 4 : i32
    %247 = arith.addi %246, %c4_i32_78 : i32
    %c0_79 = arith.constant 0 : index
    %248 = arith.index_cast %247 : i32 to index
    %c0_80 = arith.constant 0 : index
    %c0_81 = arith.constant 0 : index
    %249 = vector.load %arg3[%c0_79, %248, %c0_80, %c0_81] : memref<1x20x24x128xf32, #tpu.memory_space<vmem>>, vector<1x1x24x128xf32>
    %250 = vector.shape_cast %249 : vector<1x1x24x128xf32> to vector<24x128xf32>
    %251 = vector.broadcast %23 : vector<1x128xf32> to vector<24x128xf32>
    %252 = arith.mulf %250, %251 : vector<24x128xf32>
    %253 = arith.addf %245, %252 : vector<24x128xf32>
    %c23_i32_82 = arith.constant 23 : i32
    %254 = tpu.dynamic_rotate %250 by %c23_i32_82 dim 0 : vector<24x128xf32>, i32 -> vector<24x128xf32>
    %255 = vector.broadcast %24 : vector<1x128xf32> to vector<24x128xf32>
    %256 = arith.mulf %254, %255 : vector<24x128xf32>
    %257 = arith.addf %253, %256 : vector<24x128xf32>
    %c22_i32_83 = arith.constant 22 : i32
    %258 = tpu.dynamic_rotate %250 by %c22_i32_83 dim 0 : vector<24x128xf32>, i32 -> vector<24x128xf32>
    %259 = vector.broadcast %25 : vector<1x128xf32> to vector<24x128xf32>
    %260 = arith.mulf %258, %259 : vector<24x128xf32>
    %261 = arith.addf %257, %260 : vector<24x128xf32>
    %c21_i32_84 = arith.constant 21 : i32
    %262 = tpu.dynamic_rotate %250 by %c21_i32_84 dim 0 : vector<24x128xf32>, i32 -> vector<24x128xf32>
    %263 = vector.broadcast %26 : vector<1x128xf32> to vector<24x128xf32>
    %264 = arith.mulf %262, %263 : vector<24x128xf32>
    %265 = arith.addf %261, %264 : vector<24x128xf32>
    %c20_i32_85 = arith.constant 20 : i32
    %266 = tpu.dynamic_rotate %250 by %c20_i32_85 dim 0 : vector<24x128xf32>, i32 -> vector<24x128xf32>
    %267 = vector.broadcast %27 : vector<1x128xf32> to vector<24x128xf32>
    %268 = arith.mulf %266, %267 : vector<24x128xf32>
    %269 = arith.addf %265, %268 : vector<24x128xf32>
    %270 = vector.extract_strided_slice %269 {offsets = [0, 0], sizes = [16, 128], strides = [1, 1]} : vector<24x128xf32> to vector<16x128xf32>
    %c0_86 = arith.constant 0 : index
    %c1 = arith.constant 1 : index
    %c0_87 = arith.constant 0 : index
    %c0_88 = arith.constant 0 : index
    %271 = vector.load %arg5[%c0_86, %c1, %c0_87, %c0_88] : memref<1x8x16x128xf32, #tpu.memory_space<vmem>>, vector<1x1x16x128xf32>
    %272 = vector.shape_cast %271 : vector<1x1x16x128xf32> to vector<16x128xf32>
    %273 = vector.shape_cast %270 : vector<16x128xf32> to vector<1x1x16x128xf32>
    tpu.vector_store %arg5[%c0_86, %c1, %c0_87, %c0_88], %273 {strides = array<i32>} : memref<1x8x16x128xf32, #tpu.memory_space<vmem>>, vector<1x1x16x128xf32>,
    %c2_i32_89 = arith.constant 2 : i32
    %274 = arith.addi %1, %c2_i32_89 : i32
    %c0_i32_90 = arith.constant 0 : i32
    %275 = arith.addi %274, %c0_i32_90 : i32
    %c0_91 = arith.constant 0 : index
    %276 = arith.index_cast %275 : i32 to index
    %c0_92 = arith.constant 0 : index
    %c0_93 = arith.constant 0 : index
    %277 = vector.load %arg3[%c0_91, %276, %c0_92, %c0_93] : memref<1x20x24x128xf32, #tpu.memory_space<vmem>>, vector<1x1x24x128xf32>
    %278 = vector.shape_cast %277 : vector<1x1x24x128xf32> to vector<24x128xf32>
    %279 = vector.broadcast %3 : vector<1x128xf32> to vector<24x128xf32>
    %280 = arith.mulf %278, %279 : vector<24x128xf32>
    %c23_i32_94 = arith.constant 23 : i32
    %281 = tpu.dynamic_rotate %278 by %c23_i32_94 dim 0 : vector<24x128xf32>, i32 -> vector<24x128xf32>
    %282 = vector.broadcast %4 : vector<1x128xf32> to vector<24x128xf32>
    %283 = arith.mulf %281, %282 : vector<24x128xf32>
    %284 = arith.addf %280, %283 : vector<24x128xf32>
    %c22_i32_95 = arith.constant 22 : i32
    %285 = tpu.dynamic_rotate %278 by %c22_i32_95 dim 0 : vector<24x128xf32>, i32 -> vector<24x128xf32>
    %286 = vector.broadcast %5 : vector<1x128xf32> to vector<24x128xf32>
    %287 = arith.mulf %285, %286 : vector<24x128xf32>
    %288 = arith.addf %284, %287 : vector<24x128xf32>
    %c21_i32_96 = arith.constant 21 : i32
    %289 = tpu.dynamic_rotate %278 by %c21_i32_96 dim 0 : vector<24x128xf32>, i32 -> vector<24x128xf32>
    %290 = vector.broadcast %6 : vector<1x128xf32> to vector<24x128xf32>
    %291 = arith.mulf %289, %290 : vector<24x128xf32>
    %292 = arith.addf %288, %291 : vector<24x128xf32>
    %c20_i32_97 = arith.constant 20 : i32
    %293 = tpu.dynamic_rotate %278 by %c20_i32_97 dim 0 : vector<24x128xf32>, i32 -> vector<24x128xf32>
    %294 = vector.broadcast %7 : vector<1x128xf32> to vector<24x128xf32>
    %295 = arith.mulf %293, %294 : vector<24x128xf32>
    %296 = arith.addf %292, %295 : vector<24x128xf32>
    %c2_i32_98 = arith.constant 2 : i32
    %297 = arith.addi %1, %c2_i32_98 : i32
    %c1_i32_99 = arith.constant 1 : i32
    %298 = arith.addi %297, %c1_i32_99 : i32
    %c0_100 = arith.constant 0 : index
    %299 = arith.index_cast %298 : i32 to index
    %c0_101 = arith.constant 0 : index
    %c0_102 = arith.constant 0 : index
    %300 = vector.load %arg3[%c0_100, %299, %c0_101, %c0_102] : memref<1x20x24x128xf32, #tpu.memory_space<vmem>>, vector<1x1x24x128xf32>
    %301 = vector.shape_cast %300 : vector<1x1x24x128xf32> to vector<24x128xf32>
    %302 = vector.broadcast %8 : vector<1x128xf32> to vector<24x128xf32>
    %303 = arith.mulf %301, %302 : vector<24x128xf32>
    %304 = arith.addf %296, %303 : vector<24x128xf32>
    %c23_i32_103 = arith.constant 23 : i32
    %305 = tpu.dynamic_rotate %301 by %c23_i32_103 dim 0 : vector<24x128xf32>, i32 -> vector<24x128xf32>
    %306 = vector.broadcast %9 : vector<1x128xf32> to vector<24x128xf32>
    %307 = arith.mulf %305, %306 : vector<24x128xf32>
    %308 = arith.addf %304, %307 : vector<24x128xf32>
    %c22_i32_104 = arith.constant 22 : i32
    %309 = tpu.dynamic_rotate %301 by %c22_i32_104 dim 0 : vector<24x128xf32>, i32 -> vector<24x128xf32>
    %310 = vector.broadcast %10 : vector<1x128xf32> to vector<24x128xf32>
    %311 = arith.mulf %309, %310 : vector<24x128xf32>
    %312 = arith.addf %308, %311 : vector<24x128xf32>
    %c21_i32_105 = arith.constant 21 : i32
    %313 = tpu.dynamic_rotate %301 by %c21_i32_105 dim 0 : vector<24x128xf32>, i32 -> vector<24x128xf32>
    %314 = vector.broadcast %11 : vector<1x128xf32> to vector<24x128xf32>
    %315 = arith.mulf %313, %314 : vector<24x128xf32>
    %316 = arith.addf %312, %315 : vector<24x128xf32>
    %c20_i32_106 = arith.constant 20 : i32
    %317 = tpu.dynamic_rotate %301 by %c20_i32_106 dim 0 : vector<24x128xf32>, i32 -> vector<24x128xf32>
    %318 = vector.broadcast %12 : vector<1x128xf32> to vector<24x128xf32>
    %319 = arith.mulf %317, %318 : vector<24x128xf32>
    %320 = arith.addf %316, %319 : vector<24x128xf32>
    %c2_i32_107 = arith.constant 2 : i32
    %321 = arith.addi %1, %c2_i32_107 : i32
    %c2_i32_108 = arith.constant 2 : i32
    %322 = arith.addi %321, %c2_i32_108 : i32
    %c0_109 = arith.constant 0 : index
    %323 = arith.index_cast %322 : i32 to index
    %c0_110 = arith.constant 0 : index
    %c0_111 = arith.constant 0 : index
    %324 = vector.load %arg3[%c0_109, %323, %c0_110, %c0_111] : memref<1x20x24x128xf32, #tpu.memory_space<vmem>>, vector<1x1x24x128xf32>
    %325 = vector.shape_cast %324 : vector<1x1x24x128xf32> to vector<24x128xf32>
    %326 = vector.broadcast %13 : vector<1x128xf32> to vector<24x128xf32>
    %327 = arith.mulf %325, %326 : vector<24x128xf32>
    %328 = arith.addf %320, %327 : vector<24x128xf32>
    %c23_i32_112 = arith.constant 23 : i32
    %329 = tpu.dynamic_rotate %325 by %c23_i32_112 dim 0 : vector<24x128xf32>, i32 -> vector<24x128xf32>
    %330 = vector.broadcast %14 : vector<1x128xf32> to vector<24x128xf32>
    %331 = arith.mulf %329, %330 : vector<24x128xf32>
    %332 = arith.addf %328, %331 : vector<24x128xf32>
    %c22_i32_113 = arith.constant 22 : i32
    %333 = tpu.dynamic_rotate %325 by %c22_i32_113 dim 0 : vector<24x128xf32>, i32 -> vector<24x128xf32>
    %334 = vector.broadcast %15 : vector<1x128xf32> to vector<24x128xf32>
    %335 = arith.mulf %333, %334 : vector<24x128xf32>
    %336 = arith.addf %332, %335 : vector<24x128xf32>
    %c21_i32_114 = arith.constant 21 : i32
    %337 = tpu.dynamic_rotate %325 by %c21_i32_114 dim 0 : vector<24x128xf32>, i32 -> vector<24x128xf32>
    %338 = vector.broadcast %16 : vector<1x128xf32> to vector<24x128xf32>
    %339 = arith.mulf %337, %338 : vector<24x128xf32>
    %340 = arith.addf %336, %339 : vector<24x128xf32>
    %c20_i32_115 = arith.constant 20 : i32
    %341 = tpu.dynamic_rotate %325 by %c20_i32_115 dim 0 : vector<24x128xf32>, i32 -> vector<24x128xf32>
    %342 = vector.broadcast %17 : vector<1x128xf32> to vector<24x128xf32>
    %343 = arith.mulf %341, %342 : vector<24x128xf32>
    %344 = arith.addf %340, %343 : vector<24x128xf32>
    %c2_i32_116 = arith.constant 2 : i32
    %345 = arith.addi %1, %c2_i32_116 : i32
    %c3_i32_117 = arith.constant 3 : i32
    %346 = arith.addi %345, %c3_i32_117 : i32
    %c0_118 = arith.constant 0 : index
    %347 = arith.index_cast %346 : i32 to index
    %c0_119 = arith.constant 0 : index
    %c0_120 = arith.constant 0 : index
    %348 = vector.load %arg3[%c0_118, %347, %c0_119, %c0_120] : memref<1x20x24x128xf32, #tpu.memory_space<vmem>>, vector<1x1x24x128xf32>
    %349 = vector.shape_cast %348 : vector<1x1x24x128xf32> to vector<24x128xf32>
    %350 = vector.broadcast %18 : vector<1x128xf32> to vector<24x128xf32>
    %351 = arith.mulf %349, %350 : vector<24x128xf32>
    %352 = arith.addf %344, %351 : vector<24x128xf32>
    %c23_i32_121 = arith.constant 23 : i32
    %353 = tpu.dynamic_rotate %349 by %c23_i32_121 dim 0 : vector<24x128xf32>, i32 -> vector<24x128xf32>
    %354 = vector.broadcast %19 : vector<1x128xf32> to vector<24x128xf32>
    %355 = arith.mulf %353, %354 : vector<24x128xf32>
    %356 = arith.addf %352, %355 : vector<24x128xf32>
    %c22_i32_122 = arith.constant 22 : i32
    %357 = tpu.dynamic_rotate %349 by %c22_i32_122 dim 0 : vector<24x128xf32>, i32 -> vector<24x128xf32>
    %358 = vector.broadcast %20 : vector<1x128xf32> to vector<24x128xf32>
    %359 = arith.mulf %357, %358 : vector<24x128xf32>
    %360 = arith.addf %356, %359 : vector<24x128xf32>
    %c21_i32_123 = arith.constant 21 : i32
    %361 = tpu.dynamic_rotate %349 by %c21_i32_123 dim 0 : vector<24x128xf32>, i32 -> vector<24x128xf32>
    %362 = vector.broadcast %21 : vector<1x128xf32> to vector<24x128xf32>
    %363 = arith.mulf %361, %362 : vector<24x128xf32>
    %364 = arith.addf %360, %363 : vector<24x128xf32>
    %c20_i32_124 = arith.constant 20 : i32
    %365 = tpu.dynamic_rotate %349 by %c20_i32_124 dim 0 : vector<24x128xf32>, i32 -> vector<24x128xf32>
    %366 = vector.broadcast %22 : vector<1x128xf32> to vector<24x128xf32>
    %367 = arith.mulf %365, %366 : vector<24x128xf32>
    %368 = arith.addf %364, %367 : vector<24x128xf32>
    %c2_i32_125 = arith.constant 2 : i32
    %369 = arith.addi %1, %c2_i32_125 : i32
    %c4_i32_126 = arith.constant 4 : i32
    %370 = arith.addi %369, %c4_i32_126 : i32
    %c0_127 = arith.constant 0 : index
    %371 = arith.index_cast %370 : i32 to index
    %c0_128 = arith.constant 0 : index
    %c0_129 = arith.constant 0 : index
    %372 = vector.load %arg3[%c0_127, %371, %c0_128, %c0_129] : memref<1x20x24x128xf32, #tpu.memory_space<vmem>>, vector<1x1x24x128xf32>
    %373 = vector.shape_cast %372 : vector<1x1x24x128xf32> to vector<24x128xf32>
    %374 = vector.broadcast %23 : vector<1x128xf32> to vector<24x128xf32>
    %375 = arith.mulf %373, %374 : vector<24x128xf32>
    %376 = arith.addf %368, %375 : vector<24x128xf32>
    %c23_i32_130 = arith.constant 23 : i32
    %377 = tpu.dynamic_rotate %373 by %c23_i32_130 dim 0 : vector<24x128xf32>, i32 -> vector<24x128xf32>
    %378 = vector.broadcast %24 : vector<1x128xf32> to vector<24x128xf32>
    %379 = arith.mulf %377, %378 : vector<24x128xf32>
    %380 = arith.addf %376, %379 : vector<24x128xf32>
    %c22_i32_131 = arith.constant 22 : i32
    %381 = tpu.dynamic_rotate %373 by %c22_i32_131 dim 0 : vector<24x128xf32>, i32 -> vector<24x128xf32>
    %382 = vector.broadcast %25 : vector<1x128xf32> to vector<24x128xf32>
    %383 = arith.mulf %381, %382 : vector<24x128xf32>
    %384 = arith.addf %380, %383 : vector<24x128xf32>
    %c21_i32_132 = arith.constant 21 : i32
    %385 = tpu.dynamic_rotate %373 by %c21_i32_132 dim 0 : vector<24x128xf32>, i32 -> vector<24x128xf32>
    %386 = vector.broadcast %26 : vector<1x128xf32> to vector<24x128xf32>
    %387 = arith.mulf %385, %386 : vector<24x128xf32>
    %388 = arith.addf %384, %387 : vector<24x128xf32>
    %c20_i32_133 = arith.constant 20 : i32
    %389 = tpu.dynamic_rotate %373 by %c20_i32_133 dim 0 : vector<24x128xf32>, i32 -> vector<24x128xf32>
    %390 = vector.broadcast %27 : vector<1x128xf32> to vector<24x128xf32>
    %391 = arith.mulf %389, %390 : vector<24x128xf32>
    %392 = arith.addf %388, %391 : vector<24x128xf32>
    %393 = vector.extract_strided_slice %392 {offsets = [0, 0], sizes = [16, 128], strides = [1, 1]} : vector<24x128xf32> to vector<16x128xf32>
    %c0_134 = arith.constant 0 : index
    %c2 = arith.constant 2 : index
    %c0_135 = arith.constant 0 : index
    %c0_136 = arith.constant 0 : index
    %394 = vector.load %arg5[%c0_134, %c2, %c0_135, %c0_136] : memref<1x8x16x128xf32, #tpu.memory_space<vmem>>, vector<1x1x16x128xf32>
    %395 = vector.shape_cast %394 : vector<1x1x16x128xf32> to vector<16x128xf32>
    %396 = vector.shape_cast %393 : vector<16x128xf32> to vector<1x1x16x128xf32>
    tpu.vector_store %arg5[%c0_134, %c2, %c0_135, %c0_136], %396 {strides = array<i32>} : memref<1x8x16x128xf32, #tpu.memory_space<vmem>>, vector<1x1x16x128xf32>,
    %c3_i32_137 = arith.constant 3 : i32
    %397 = arith.addi %1, %c3_i32_137 : i32
    %c0_i32_138 = arith.constant 0 : i32
    %398 = arith.addi %397, %c0_i32_138 : i32
    %c0_139 = arith.constant 0 : index
    %399 = arith.index_cast %398 : i32 to index
    %c0_140 = arith.constant 0 : index
    %c0_141 = arith.constant 0 : index
    %400 = vector.load %arg3[%c0_139, %399, %c0_140, %c0_141] : memref<1x20x24x128xf32, #tpu.memory_space<vmem>>, vector<1x1x24x128xf32>
    %401 = vector.shape_cast %400 : vector<1x1x24x128xf32> to vector<24x128xf32>
    %402 = vector.broadcast %3 : vector<1x128xf32> to vector<24x128xf32>
    %403 = arith.mulf %401, %402 : vector<24x128xf32>
    %c23_i32_142 = arith.constant 23 : i32
    %404 = tpu.dynamic_rotate %401 by %c23_i32_142 dim 0 : vector<24x128xf32>, i32 -> vector<24x128xf32>
    %405 = vector.broadcast %4 : vector<1x128xf32> to vector<24x128xf32>
    %406 = arith.mulf %404, %405 : vector<24x128xf32>
    %407 = arith.addf %403, %406 : vector<24x128xf32>
    %c22_i32_143 = arith.constant 22 : i32
    %408 = tpu.dynamic_rotate %401 by %c22_i32_143 dim 0 : vector<24x128xf32>, i32 -> vector<24x128xf32>
    %409 = vector.broadcast %5 : vector<1x128xf32> to vector<24x128xf32>
    %410 = arith.mulf %408, %409 : vector<24x128xf32>
    %411 = arith.addf %407, %410 : vector<24x128xf32>
    %c21_i32_144 = arith.constant 21 : i32
    %412 = tpu.dynamic_rotate %401 by %c21_i32_144 dim 0 : vector<24x128xf32>, i32 -> vector<24x128xf32>
    %413 = vector.broadcast %6 : vector<1x128xf32> to vector<24x128xf32>
    %414 = arith.mulf %412, %413 : vector<24x128xf32>
    %415 = arith.addf %411, %414 : vector<24x128xf32>
    %c20_i32_145 = arith.constant 20 : i32
    %416 = tpu.dynamic_rotate %401 by %c20_i32_145 dim 0 : vector<24x128xf32>, i32 -> vector<24x128xf32>
    %417 = vector.broadcast %7 : vector<1x128xf32> to vector<24x128xf32>
    %418 = arith.mulf %416, %417 : vector<24x128xf32>
    %419 = arith.addf %415, %418 : vector<24x128xf32>
    %c3_i32_146 = arith.constant 3 : i32
    %420 = arith.addi %1, %c3_i32_146 : i32
    %c1_i32_147 = arith.constant 1 : i32
    %421 = arith.addi %420, %c1_i32_147 : i32
    %c0_148 = arith.constant 0 : index
    %422 = arith.index_cast %421 : i32 to index
    %c0_149 = arith.constant 0 : index
    %c0_150 = arith.constant 0 : index
    %423 = vector.load %arg3[%c0_148, %422, %c0_149, %c0_150] : memref<1x20x24x128xf32, #tpu.memory_space<vmem>>, vector<1x1x24x128xf32>
    %424 = vector.shape_cast %423 : vector<1x1x24x128xf32> to vector<24x128xf32>
    %425 = vector.broadcast %8 : vector<1x128xf32> to vector<24x128xf32>
    %426 = arith.mulf %424, %425 : vector<24x128xf32>
    %427 = arith.addf %419, %426 : vector<24x128xf32>
    %c23_i32_151 = arith.constant 23 : i32
    %428 = tpu.dynamic_rotate %424 by %c23_i32_151 dim 0 : vector<24x128xf32>, i32 -> vector<24x128xf32>
    %429 = vector.broadcast %9 : vector<1x128xf32> to vector<24x128xf32>
    %430 = arith.mulf %428, %429 : vector<24x128xf32>
    %431 = arith.addf %427, %430 : vector<24x128xf32>
    %c22_i32_152 = arith.constant 22 : i32
    %432 = tpu.dynamic_rotate %424 by %c22_i32_152 dim 0 : vector<24x128xf32>, i32 -> vector<24x128xf32>
    %433 = vector.broadcast %10 : vector<1x128xf32> to vector<24x128xf32>
    %434 = arith.mulf %432, %433 : vector<24x128xf32>
    %435 = arith.addf %431, %434 : vector<24x128xf32>
    %c21_i32_153 = arith.constant 21 : i32
    %436 = tpu.dynamic_rotate %424 by %c21_i32_153 dim 0 : vector<24x128xf32>, i32 -> vector<24x128xf32>
    %437 = vector.broadcast %11 : vector<1x128xf32> to vector<24x128xf32>
    %438 = arith.mulf %436, %437 : vector<24x128xf32>
    %439 = arith.addf %435, %438 : vector<24x128xf32>
    %c20_i32_154 = arith.constant 20 : i32
    %440 = tpu.dynamic_rotate %424 by %c20_i32_154 dim 0 : vector<24x128xf32>, i32 -> vector<24x128xf32>
    %441 = vector.broadcast %12 : vector<1x128xf32> to vector<24x128xf32>
    %442 = arith.mulf %440, %441 : vector<24x128xf32>
    %443 = arith.addf %439, %442 : vector<24x128xf32>
    %c3_i32_155 = arith.constant 3 : i32
    %444 = arith.addi %1, %c3_i32_155 : i32
    %c2_i32_156 = arith.constant 2 : i32
    %445 = arith.addi %444, %c2_i32_156 : i32
    %c0_157 = arith.constant 0 : index
    %446 = arith.index_cast %445 : i32 to index
    %c0_158 = arith.constant 0 : index
    %c0_159 = arith.constant 0 : index
    %447 = vector.load %arg3[%c0_157, %446, %c0_158, %c0_159] : memref<1x20x24x128xf32, #tpu.memory_space<vmem>>, vector<1x1x24x128xf32>
    %448 = vector.shape_cast %447 : vector<1x1x24x128xf32> to vector<24x128xf32>
    %449 = vector.broadcast %13 : vector<1x128xf32> to vector<24x128xf32>
    %450 = arith.mulf %448, %449 : vector<24x128xf32>
    %451 = arith.addf %443, %450 : vector<24x128xf32>
    %c23_i32_160 = arith.constant 23 : i32
    %452 = tpu.dynamic_rotate %448 by %c23_i32_160 dim 0 : vector<24x128xf32>, i32 -> vector<24x128xf32>
    %453 = vector.broadcast %14 : vector<1x128xf32> to vector<24x128xf32>
    %454 = arith.mulf %452, %453 : vector<24x128xf32>
    %455 = arith.addf %451, %454 : vector<24x128xf32>
    %c22_i32_161 = arith.constant 22 : i32
    %456 = tpu.dynamic_rotate %448 by %c22_i32_161 dim 0 : vector<24x128xf32>, i32 -> vector<24x128xf32>
    %457 = vector.broadcast %15 : vector<1x128xf32> to vector<24x128xf32>
    %458 = arith.mulf %456, %457 : vector<24x128xf32>
    %459 = arith.addf %455, %458 : vector<24x128xf32>
    %c21_i32_162 = arith.constant 21 : i32
    %460 = tpu.dynamic_rotate %448 by %c21_i32_162 dim 0 : vector<24x128xf32>, i32 -> vector<24x128xf32>
    %461 = vector.broadcast %16 : vector<1x128xf32> to vector<24x128xf32>
    %462 = arith.mulf %460, %461 : vector<24x128xf32>
    %463 = arith.addf %459, %462 : vector<24x128xf32>
    %c20_i32_163 = arith.constant 20 : i32
    %464 = tpu.dynamic_rotate %448 by %c20_i32_163 dim 0 : vector<24x128xf32>, i32 -> vector<24x128xf32>
    %465 = vector.broadcast %17 : vector<1x128xf32> to vector<24x128xf32>
    %466 = arith.mulf %464, %465 : vector<24x128xf32>
    %467 = arith.addf %463, %466 : vector<24x128xf32>
    %c3_i32_164 = arith.constant 3 : i32
    %468 = arith.addi %1, %c3_i32_164 : i32
    %c3_i32_165 = arith.constant 3 : i32
    %469 = arith.addi %468, %c3_i32_165 : i32
    %c0_166 = arith.constant 0 : index
    %470 = arith.index_cast %469 : i32 to index
    %c0_167 = arith.constant 0 : index
    %c0_168 = arith.constant 0 : index
    %471 = vector.load %arg3[%c0_166, %470, %c0_167, %c0_168] : memref<1x20x24x128xf32, #tpu.memory_space<vmem>>, vector<1x1x24x128xf32>
    %472 = vector.shape_cast %471 : vector<1x1x24x128xf32> to vector<24x128xf32>
    %473 = vector.broadcast %18 : vector<1x128xf32> to vector<24x128xf32>
    %474 = arith.mulf %472, %473 : vector<24x128xf32>
    %475 = arith.addf %467, %474 : vector<24x128xf32>
    %c23_i32_169 = arith.constant 23 : i32
    %476 = tpu.dynamic_rotate %472 by %c23_i32_169 dim 0 : vector<24x128xf32>, i32 -> vector<24x128xf32>
    %477 = vector.broadcast %19 : vector<1x128xf32> to vector<24x128xf32>
    %478 = arith.mulf %476, %477 : vector<24x128xf32>
    %479 = arith.addf %475, %478 : vector<24x128xf32>
    %c22_i32_170 = arith.constant 22 : i32
    %480 = tpu.dynamic_rotate %472 by %c22_i32_170 dim 0 : vector<24x128xf32>, i32 -> vector<24x128xf32>
    %481 = vector.broadcast %20 : vector<1x128xf32> to vector<24x128xf32>
    %482 = arith.mulf %480, %481 : vector<24x128xf32>
    %483 = arith.addf %479, %482 : vector<24x128xf32>
    %c21_i32_171 = arith.constant 21 : i32
    %484 = tpu.dynamic_rotate %472 by %c21_i32_171 dim 0 : vector<24x128xf32>, i32 -> vector<24x128xf32>
    %485 = vector.broadcast %21 : vector<1x128xf32> to vector<24x128xf32>
    %486 = arith.mulf %484, %485 : vector<24x128xf32>
    %487 = arith.addf %483, %486 : vector<24x128xf32>
    %c20_i32_172 = arith.constant 20 : i32
    %488 = tpu.dynamic_rotate %472 by %c20_i32_172 dim 0 : vector<24x128xf32>, i32 -> vector<24x128xf32>
    %489 = vector.broadcast %22 : vector<1x128xf32> to vector<24x128xf32>
    %490 = arith.mulf %488, %489 : vector<24x128xf32>
    %491 = arith.addf %487, %490 : vector<24x128xf32>
    %c3_i32_173 = arith.constant 3 : i32
    %492 = arith.addi %1, %c3_i32_173 : i32
    %c4_i32_174 = arith.constant 4 : i32
    %493 = arith.addi %492, %c4_i32_174 : i32
    %c0_175 = arith.constant 0 : index
    %494 = arith.index_cast %493 : i32 to index
    %c0_176 = arith.constant 0 : index
    %c0_177 = arith.constant 0 : index
    %495 = vector.load %arg3[%c0_175, %494, %c0_176, %c0_177] : memref<1x20x24x128xf32, #tpu.memory_space<vmem>>, vector<1x1x24x128xf32>
    %496 = vector.shape_cast %495 : vector<1x1x24x128xf32> to vector<24x128xf32>
    %497 = vector.broadcast %23 : vector<1x128xf32> to vector<24x128xf32>
    %498 = arith.mulf %496, %497 : vector<24x128xf32>
    %499 = arith.addf %491, %498 : vector<24x128xf32>
    %c23_i32_178 = arith.constant 23 : i32
    %500 = tpu.dynamic_rotate %496 by %c23_i32_178 dim 0 : vector<24x128xf32>, i32 -> vector<24x128xf32>
    %501 = vector.broadcast %24 : vector<1x128xf32> to vector<24x128xf32>
    %502 = arith.mulf %500, %501 : vector<24x128xf32>
    %503 = arith.addf %499, %502 : vector<24x128xf32>
    %c22_i32_179 = arith.constant 22 : i32
    %504 = tpu.dynamic_rotate %496 by %c22_i32_179 dim 0 : vector<24x128xf32>, i32 -> vector<24x128xf32>
    %505 = vector.broadcast %25 : vector<1x128xf32> to vector<24x128xf32>
    %506 = arith.mulf %504, %505 : vector<24x128xf32>
    %507 = arith.addf %503, %506 : vector<24x128xf32>
    %c21_i32_180 = arith.constant 21 : i32
    %508 = tpu.dynamic_rotate %496 by %c21_i32_180 dim 0 : vector<24x128xf32>, i32 -> vector<24x128xf32>
    %509 = vector.broadcast %26 : vector<1x128xf32> to vector<24x128xf32>
    %510 = arith.mulf %508, %509 : vector<24x128xf32>
    %511 = arith.addf %507, %510 : vector<24x128xf32>
    %c20_i32_181 = arith.constant 20 : i32
    %512 = tpu.dynamic_rotate %496 by %c20_i32_181 dim 0 : vector<24x128xf32>, i32 -> vector<24x128xf32>
    %513 = vector.broadcast %27 : vector<1x128xf32> to vector<24x128xf32>
    %514 = arith.mulf %512, %513 : vector<24x128xf32>
    %515 = arith.addf %511, %514 : vector<24x128xf32>
    %516 = vector.extract_strided_slice %515 {offsets = [0, 0], sizes = [16, 128], strides = [1, 1]} : vector<24x128xf32> to vector<16x128xf32>
    %c0_182 = arith.constant 0 : index
    %c3 = arith.constant 3 : index
    %c0_183 = arith.constant 0 : index
    %c0_184 = arith.constant 0 : index
    %517 = vector.load %arg5[%c0_182, %c3, %c0_183, %c0_184] : memref<1x8x16x128xf32, #tpu.memory_space<vmem>>, vector<1x1x16x128xf32>
    %518 = vector.shape_cast %517 : vector<1x1x16x128xf32> to vector<16x128xf32>
    %519 = vector.shape_cast %516 : vector<16x128xf32> to vector<1x1x16x128xf32>
    tpu.vector_store %arg5[%c0_182, %c3, %c0_183, %c0_184], %519 {strides = array<i32>} : memref<1x8x16x128xf32, #tpu.memory_space<vmem>>, vector<1x1x16x128xf32>,
    %c4_i32_185 = arith.constant 4 : i32
    %520 = arith.addi %1, %c4_i32_185 : i32
    %c0_i32_186 = arith.constant 0 : i32
    %521 = arith.addi %520, %c0_i32_186 : i32
    %c0_187 = arith.constant 0 : index
    %522 = arith.index_cast %521 : i32 to index
    %c0_188 = arith.constant 0 : index
    %c0_189 = arith.constant 0 : index
    %523 = vector.load %arg3[%c0_187, %522, %c0_188, %c0_189] : memref<1x20x24x128xf32, #tpu.memory_space<vmem>>, vector<1x1x24x128xf32>
    %524 = vector.shape_cast %523 : vector<1x1x24x128xf32> to vector<24x128xf32>
    %525 = vector.broadcast %3 : vector<1x128xf32> to vector<24x128xf32>
    %526 = arith.mulf %524, %525 : vector<24x128xf32>
    %c23_i32_190 = arith.constant 23 : i32
    %527 = tpu.dynamic_rotate %524 by %c23_i32_190 dim 0 : vector<24x128xf32>, i32 -> vector<24x128xf32>
    %528 = vector.broadcast %4 : vector<1x128xf32> to vector<24x128xf32>
    %529 = arith.mulf %527, %528 : vector<24x128xf32>
    %530 = arith.addf %526, %529 : vector<24x128xf32>
    %c22_i32_191 = arith.constant 22 : i32
    %531 = tpu.dynamic_rotate %524 by %c22_i32_191 dim 0 : vector<24x128xf32>, i32 -> vector<24x128xf32>
    %532 = vector.broadcast %5 : vector<1x128xf32> to vector<24x128xf32>
    %533 = arith.mulf %531, %532 : vector<24x128xf32>
    %534 = arith.addf %530, %533 : vector<24x128xf32>
    %c21_i32_192 = arith.constant 21 : i32
    %535 = tpu.dynamic_rotate %524 by %c21_i32_192 dim 0 : vector<24x128xf32>, i32 -> vector<24x128xf32>
    %536 = vector.broadcast %6 : vector<1x128xf32> to vector<24x128xf32>
    %537 = arith.mulf %535, %536 : vector<24x128xf32>
    %538 = arith.addf %534, %537 : vector<24x128xf32>
    %c20_i32_193 = arith.constant 20 : i32
    %539 = tpu.dynamic_rotate %524 by %c20_i32_193 dim 0 : vector<24x128xf32>, i32 -> vector<24x128xf32>
    %540 = vector.broadcast %7 : vector<1x128xf32> to vector<24x128xf32>
    %541 = arith.mulf %539, %540 : vector<24x128xf32>
    %542 = arith.addf %538, %541 : vector<24x128xf32>
    %c4_i32_194 = arith.constant 4 : i32
    %543 = arith.addi %1, %c4_i32_194 : i32
    %c1_i32_195 = arith.constant 1 : i32
    %544 = arith.addi %543, %c1_i32_195 : i32
    %c0_196 = arith.constant 0 : index
    %545 = arith.index_cast %544 : i32 to index
    %c0_197 = arith.constant 0 : index
    %c0_198 = arith.constant 0 : index
    %546 = vector.load %arg3[%c0_196, %545, %c0_197, %c0_198] : memref<1x20x24x128xf32, #tpu.memory_space<vmem>>, vector<1x1x24x128xf32>
    %547 = vector.shape_cast %546 : vector<1x1x24x128xf32> to vector<24x128xf32>
    %548 = vector.broadcast %8 : vector<1x128xf32> to vector<24x128xf32>
    %549 = arith.mulf %547, %548 : vector<24x128xf32>
    %550 = arith.addf %542, %549 : vector<24x128xf32>
    %c23_i32_199 = arith.constant 23 : i32
    %551 = tpu.dynamic_rotate %547 by %c23_i32_199 dim 0 : vector<24x128xf32>, i32 -> vector<24x128xf32>
    %552 = vector.broadcast %9 : vector<1x128xf32> to vector<24x128xf32>
    %553 = arith.mulf %551, %552 : vector<24x128xf32>
    %554 = arith.addf %550, %553 : vector<24x128xf32>
    %c22_i32_200 = arith.constant 22 : i32
    %555 = tpu.dynamic_rotate %547 by %c22_i32_200 dim 0 : vector<24x128xf32>, i32 -> vector<24x128xf32>
    %556 = vector.broadcast %10 : vector<1x128xf32> to vector<24x128xf32>
    %557 = arith.mulf %555, %556 : vector<24x128xf32>
    %558 = arith.addf %554, %557 : vector<24x128xf32>
    %c21_i32_201 = arith.constant 21 : i32
    %559 = tpu.dynamic_rotate %547 by %c21_i32_201 dim 0 : vector<24x128xf32>, i32 -> vector<24x128xf32>
    %560 = vector.broadcast %11 : vector<1x128xf32> to vector<24x128xf32>
    %561 = arith.mulf %559, %560 : vector<24x128xf32>
    %562 = arith.addf %558, %561 : vector<24x128xf32>
    %c20_i32_202 = arith.constant 20 : i32
    %563 = tpu.dynamic_rotate %547 by %c20_i32_202 dim 0 : vector<24x128xf32>, i32 -> vector<24x128xf32>
    %564 = vector.broadcast %12 : vector<1x128xf32> to vector<24x128xf32>
    %565 = arith.mulf %563, %564 : vector<24x128xf32>
    %566 = arith.addf %562, %565 : vector<24x128xf32>
    %c4_i32_203 = arith.constant 4 : i32
    %567 = arith.addi %1, %c4_i32_203 : i32
    %c2_i32_204 = arith.constant 2 : i32
    %568 = arith.addi %567, %c2_i32_204 : i32
    %c0_205 = arith.constant 0 : index
    %569 = arith.index_cast %568 : i32 to index
    %c0_206 = arith.constant 0 : index
    %c0_207 = arith.constant 0 : index
    %570 = vector.load %arg3[%c0_205, %569, %c0_206, %c0_207] : memref<1x20x24x128xf32, #tpu.memory_space<vmem>>, vector<1x1x24x128xf32>
    %571 = vector.shape_cast %570 : vector<1x1x24x128xf32> to vector<24x128xf32>
    %572 = vector.broadcast %13 : vector<1x128xf32> to vector<24x128xf32>
    %573 = arith.mulf %571, %572 : vector<24x128xf32>
    %574 = arith.addf %566, %573 : vector<24x128xf32>
    %c23_i32_208 = arith.constant 23 : i32
    %575 = tpu.dynamic_rotate %571 by %c23_i32_208 dim 0 : vector<24x128xf32>, i32 -> vector<24x128xf32>
    %576 = vector.broadcast %14 : vector<1x128xf32> to vector<24x128xf32>
    %577 = arith.mulf %575, %576 : vector<24x128xf32>
    %578 = arith.addf %574, %577 : vector<24x128xf32>
    %c22_i32_209 = arith.constant 22 : i32
    %579 = tpu.dynamic_rotate %571 by %c22_i32_209 dim 0 : vector<24x128xf32>, i32 -> vector<24x128xf32>
    %580 = vector.broadcast %15 : vector<1x128xf32> to vector<24x128xf32>
    %581 = arith.mulf %579, %580 : vector<24x128xf32>
    %582 = arith.addf %578, %581 : vector<24x128xf32>
    %c21_i32_210 = arith.constant 21 : i32
    %583 = tpu.dynamic_rotate %571 by %c21_i32_210 dim 0 : vector<24x128xf32>, i32 -> vector<24x128xf32>
    %584 = vector.broadcast %16 : vector<1x128xf32> to vector<24x128xf32>
    %585 = arith.mulf %583, %584 : vector<24x128xf32>
    %586 = arith.addf %582, %585 : vector<24x128xf32>
    %c20_i32_211 = arith.constant 20 : i32
    %587 = tpu.dynamic_rotate %571 by %c20_i32_211 dim 0 : vector<24x128xf32>, i32 -> vector<24x128xf32>
    %588 = vector.broadcast %17 : vector<1x128xf32> to vector<24x128xf32>
    %589 = arith.mulf %587, %588 : vector<24x128xf32>
    %590 = arith.addf %586, %589 : vector<24x128xf32>
    %c4_i32_212 = arith.constant 4 : i32
    %591 = arith.addi %1, %c4_i32_212 : i32
    %c3_i32_213 = arith.constant 3 : i32
    %592 = arith.addi %591, %c3_i32_213 : i32
    %c0_214 = arith.constant 0 : index
    %593 = arith.index_cast %592 : i32 to index
    %c0_215 = arith.constant 0 : index
    %c0_216 = arith.constant 0 : index
    %594 = vector.load %arg3[%c0_214, %593, %c0_215, %c0_216] : memref<1x20x24x128xf32, #tpu.memory_space<vmem>>, vector<1x1x24x128xf32>
    %595 = vector.shape_cast %594 : vector<1x1x24x128xf32> to vector<24x128xf32>
    %596 = vector.broadcast %18 : vector<1x128xf32> to vector<24x128xf32>
    %597 = arith.mulf %595, %596 : vector<24x128xf32>
    %598 = arith.addf %590, %597 : vector<24x128xf32>
    %c23_i32_217 = arith.constant 23 : i32
    %599 = tpu.dynamic_rotate %595 by %c23_i32_217 dim 0 : vector<24x128xf32>, i32 -> vector<24x128xf32>
    %600 = vector.broadcast %19 : vector<1x128xf32> to vector<24x128xf32>
    %601 = arith.mulf %599, %600 : vector<24x128xf32>
    %602 = arith.addf %598, %601 : vector<24x128xf32>
    %c22_i32_218 = arith.constant 22 : i32
    %603 = tpu.dynamic_rotate %595 by %c22_i32_218 dim 0 : vector<24x128xf32>, i32 -> vector<24x128xf32>
    %604 = vector.broadcast %20 : vector<1x128xf32> to vector<24x128xf32>
    %605 = arith.mulf %603, %604 : vector<24x128xf32>
    %606 = arith.addf %602, %605 : vector<24x128xf32>
    %c21_i32_219 = arith.constant 21 : i32
    %607 = tpu.dynamic_rotate %595 by %c21_i32_219 dim 0 : vector<24x128xf32>, i32 -> vector<24x128xf32>
    %608 = vector.broadcast %21 : vector<1x128xf32> to vector<24x128xf32>
    %609 = arith.mulf %607, %608 : vector<24x128xf32>
    %610 = arith.addf %606, %609 : vector<24x128xf32>
    %c20_i32_220 = arith.constant 20 : i32
    %611 = tpu.dynamic_rotate %595 by %c20_i32_220 dim 0 : vector<24x128xf32>, i32 -> vector<24x128xf32>
    %612 = vector.broadcast %22 : vector<1x128xf32> to vector<24x128xf32>
    %613 = arith.mulf %611, %612 : vector<24x128xf32>
    %614 = arith.addf %610, %613 : vector<24x128xf32>
    %c4_i32_221 = arith.constant 4 : i32
    %615 = arith.addi %1, %c4_i32_221 : i32
    %c4_i32_222 = arith.constant 4 : i32
    %616 = arith.addi %615, %c4_i32_222 : i32
    %c0_223 = arith.constant 0 : index
    %617 = arith.index_cast %616 : i32 to index
    %c0_224 = arith.constant 0 : index
    %c0_225 = arith.constant 0 : index
    %618 = vector.load %arg3[%c0_223, %617, %c0_224, %c0_225] : memref<1x20x24x128xf32, #tpu.memory_space<vmem>>, vector<1x1x24x128xf32>
    %619 = vector.shape_cast %618 : vector<1x1x24x128xf32> to vector<24x128xf32>
    %620 = vector.broadcast %23 : vector<1x128xf32> to vector<24x128xf32>
    %621 = arith.mulf %619, %620 : vector<24x128xf32>
    %622 = arith.addf %614, %621 : vector<24x128xf32>
    %c23_i32_226 = arith.constant 23 : i32
    %623 = tpu.dynamic_rotate %619 by %c23_i32_226 dim 0 : vector<24x128xf32>, i32 -> vector<24x128xf32>
    %624 = vector.broadcast %24 : vector<1x128xf32> to vector<24x128xf32>
    %625 = arith.mulf %623, %624 : vector<24x128xf32>
    %626 = arith.addf %622, %625 : vector<24x128xf32>
    %c22_i32_227 = arith.constant 22 : i32
    %627 = tpu.dynamic_rotate %619 by %c22_i32_227 dim 0 : vector<24x128xf32>, i32 -> vector<24x128xf32>
    %628 = vector.broadcast %25 : vector<1x128xf32> to vector<24x128xf32>
    %629 = arith.mulf %627, %628 : vector<24x128xf32>
    %630 = arith.addf %626, %629 : vector<24x128xf32>
    %c21_i32_228 = arith.constant 21 : i32
    %631 = tpu.dynamic_rotate %619 by %c21_i32_228 dim 0 : vector<24x128xf32>, i32 -> vector<24x128xf32>
    %632 = vector.broadcast %26 : vector<1x128xf32> to vector<24x128xf32>
    %633 = arith.mulf %631, %632 : vector<24x128xf32>
    %634 = arith.addf %630, %633 : vector<24x128xf32>
    %c20_i32_229 = arith.constant 20 : i32
    %635 = tpu.dynamic_rotate %619 by %c20_i32_229 dim 0 : vector<24x128xf32>, i32 -> vector<24x128xf32>
    %636 = vector.broadcast %27 : vector<1x128xf32> to vector<24x128xf32>
    %637 = arith.mulf %635, %636 : vector<24x128xf32>
    %638 = arith.addf %634, %637 : vector<24x128xf32>
    %639 = vector.extract_strided_slice %638 {offsets = [0, 0], sizes = [16, 128], strides = [1, 1]} : vector<24x128xf32> to vector<16x128xf32>
    %c0_230 = arith.constant 0 : index
    %c4 = arith.constant 4 : index
    %c0_231 = arith.constant 0 : index
    %c0_232 = arith.constant 0 : index
    %640 = vector.load %arg5[%c0_230, %c4, %c0_231, %c0_232] : memref<1x8x16x128xf32, #tpu.memory_space<vmem>>, vector<1x1x16x128xf32>
    %641 = vector.shape_cast %640 : vector<1x1x16x128xf32> to vector<16x128xf32>
    %642 = vector.shape_cast %639 : vector<16x128xf32> to vector<1x1x16x128xf32>
    tpu.vector_store %arg5[%c0_230, %c4, %c0_231, %c0_232], %642 {strides = array<i32>} : memref<1x8x16x128xf32, #tpu.memory_space<vmem>>, vector<1x1x16x128xf32>,
    %c5_i32 = arith.constant 5 : i32
    %643 = arith.addi %1, %c5_i32 : i32
    %c0_i32_233 = arith.constant 0 : i32
    %644 = arith.addi %643, %c0_i32_233 : i32
    %c0_234 = arith.constant 0 : index
    %645 = arith.index_cast %644 : i32 to index
    %c0_235 = arith.constant 0 : index
    %c0_236 = arith.constant 0 : index
    %646 = vector.load %arg3[%c0_234, %645, %c0_235, %c0_236] : memref<1x20x24x128xf32, #tpu.memory_space<vmem>>, vector<1x1x24x128xf32>
    %647 = vector.shape_cast %646 : vector<1x1x24x128xf32> to vector<24x128xf32>
    %648 = vector.broadcast %3 : vector<1x128xf32> to vector<24x128xf32>
    %649 = arith.mulf %647, %648 : vector<24x128xf32>
    %c23_i32_237 = arith.constant 23 : i32
    %650 = tpu.dynamic_rotate %647 by %c23_i32_237 dim 0 : vector<24x128xf32>, i32 -> vector<24x128xf32>
    %651 = vector.broadcast %4 : vector<1x128xf32> to vector<24x128xf32>
    %652 = arith.mulf %650, %651 : vector<24x128xf32>
    %653 = arith.addf %649, %652 : vector<24x128xf32>
    %c22_i32_238 = arith.constant 22 : i32
    %654 = tpu.dynamic_rotate %647 by %c22_i32_238 dim 0 : vector<24x128xf32>, i32 -> vector<24x128xf32>
    %655 = vector.broadcast %5 : vector<1x128xf32> to vector<24x128xf32>
    %656 = arith.mulf %654, %655 : vector<24x128xf32>
    %657 = arith.addf %653, %656 : vector<24x128xf32>
    %c21_i32_239 = arith.constant 21 : i32
    %658 = tpu.dynamic_rotate %647 by %c21_i32_239 dim 0 : vector<24x128xf32>, i32 -> vector<24x128xf32>
    %659 = vector.broadcast %6 : vector<1x128xf32> to vector<24x128xf32>
    %660 = arith.mulf %658, %659 : vector<24x128xf32>
    %661 = arith.addf %657, %660 : vector<24x128xf32>
    %c20_i32_240 = arith.constant 20 : i32
    %662 = tpu.dynamic_rotate %647 by %c20_i32_240 dim 0 : vector<24x128xf32>, i32 -> vector<24x128xf32>
    %663 = vector.broadcast %7 : vector<1x128xf32> to vector<24x128xf32>
    %664 = arith.mulf %662, %663 : vector<24x128xf32>
    %665 = arith.addf %661, %664 : vector<24x128xf32>
    %c5_i32_241 = arith.constant 5 : i32
    %666 = arith.addi %1, %c5_i32_241 : i32
    %c1_i32_242 = arith.constant 1 : i32
    %667 = arith.addi %666, %c1_i32_242 : i32
    %c0_243 = arith.constant 0 : index
    %668 = arith.index_cast %667 : i32 to index
    %c0_244 = arith.constant 0 : index
    %c0_245 = arith.constant 0 : index
    %669 = vector.load %arg3[%c0_243, %668, %c0_244, %c0_245] : memref<1x20x24x128xf32, #tpu.memory_space<vmem>>, vector<1x1x24x128xf32>
    %670 = vector.shape_cast %669 : vector<1x1x24x128xf32> to vector<24x128xf32>
    %671 = vector.broadcast %8 : vector<1x128xf32> to vector<24x128xf32>
    %672 = arith.mulf %670, %671 : vector<24x128xf32>
    %673 = arith.addf %665, %672 : vector<24x128xf32>
    %c23_i32_246 = arith.constant 23 : i32
    %674 = tpu.dynamic_rotate %670 by %c23_i32_246 dim 0 : vector<24x128xf32>, i32 -> vector<24x128xf32>
    %675 = vector.broadcast %9 : vector<1x128xf32> to vector<24x128xf32>
    %676 = arith.mulf %674, %675 : vector<24x128xf32>
    %677 = arith.addf %673, %676 : vector<24x128xf32>
    %c22_i32_247 = arith.constant 22 : i32
    %678 = tpu.dynamic_rotate %670 by %c22_i32_247 dim 0 : vector<24x128xf32>, i32 -> vector<24x128xf32>
    %679 = vector.broadcast %10 : vector<1x128xf32> to vector<24x128xf32>
    %680 = arith.mulf %678, %679 : vector<24x128xf32>
    %681 = arith.addf %677, %680 : vector<24x128xf32>
    %c21_i32_248 = arith.constant 21 : i32
    %682 = tpu.dynamic_rotate %670 by %c21_i32_248 dim 0 : vector<24x128xf32>, i32 -> vector<24x128xf32>
    %683 = vector.broadcast %11 : vector<1x128xf32> to vector<24x128xf32>
    %684 = arith.mulf %682, %683 : vector<24x128xf32>
    %685 = arith.addf %681, %684 : vector<24x128xf32>
    %c20_i32_249 = arith.constant 20 : i32
    %686 = tpu.dynamic_rotate %670 by %c20_i32_249 dim 0 : vector<24x128xf32>, i32 -> vector<24x128xf32>
    %687 = vector.broadcast %12 : vector<1x128xf32> to vector<24x128xf32>
    %688 = arith.mulf %686, %687 : vector<24x128xf32>
    %689 = arith.addf %685, %688 : vector<24x128xf32>
    %c5_i32_250 = arith.constant 5 : i32
    %690 = arith.addi %1, %c5_i32_250 : i32
    %c2_i32_251 = arith.constant 2 : i32
    %691 = arith.addi %690, %c2_i32_251 : i32
    %c0_252 = arith.constant 0 : index
    %692 = arith.index_cast %691 : i32 to index
    %c0_253 = arith.constant 0 : index
    %c0_254 = arith.constant 0 : index
    %693 = vector.load %arg3[%c0_252, %692, %c0_253, %c0_254] : memref<1x20x24x128xf32, #tpu.memory_space<vmem>>, vector<1x1x24x128xf32>
    %694 = vector.shape_cast %693 : vector<1x1x24x128xf32> to vector<24x128xf32>
    %695 = vector.broadcast %13 : vector<1x128xf32> to vector<24x128xf32>
    %696 = arith.mulf %694, %695 : vector<24x128xf32>
    %697 = arith.addf %689, %696 : vector<24x128xf32>
    %c23_i32_255 = arith.constant 23 : i32
    %698 = tpu.dynamic_rotate %694 by %c23_i32_255 dim 0 : vector<24x128xf32>, i32 -> vector<24x128xf32>
    %699 = vector.broadcast %14 : vector<1x128xf32> to vector<24x128xf32>
    %700 = arith.mulf %698, %699 : vector<24x128xf32>
    %701 = arith.addf %697, %700 : vector<24x128xf32>
    %c22_i32_256 = arith.constant 22 : i32
    %702 = tpu.dynamic_rotate %694 by %c22_i32_256 dim 0 : vector<24x128xf32>, i32 -> vector<24x128xf32>
    %703 = vector.broadcast %15 : vector<1x128xf32> to vector<24x128xf32>
    %704 = arith.mulf %702, %703 : vector<24x128xf32>
    %705 = arith.addf %701, %704 : vector<24x128xf32>
    %c21_i32_257 = arith.constant 21 : i32
    %706 = tpu.dynamic_rotate %694 by %c21_i32_257 dim 0 : vector<24x128xf32>, i32 -> vector<24x128xf32>
    %707 = vector.broadcast %16 : vector<1x128xf32> to vector<24x128xf32>
    %708 = arith.mulf %706, %707 : vector<24x128xf32>
    %709 = arith.addf %705, %708 : vector<24x128xf32>
    %c20_i32_258 = arith.constant 20 : i32
    %710 = tpu.dynamic_rotate %694 by %c20_i32_258 dim 0 : vector<24x128xf32>, i32 -> vector<24x128xf32>
    %711 = vector.broadcast %17 : vector<1x128xf32> to vector<24x128xf32>
    %712 = arith.mulf %710, %711 : vector<24x128xf32>
    %713 = arith.addf %709, %712 : vector<24x128xf32>
    %c5_i32_259 = arith.constant 5 : i32
    %714 = arith.addi %1, %c5_i32_259 : i32
    %c3_i32_260 = arith.constant 3 : i32
    %715 = arith.addi %714, %c3_i32_260 : i32
    %c0_261 = arith.constant 0 : index
    %716 = arith.index_cast %715 : i32 to index
    %c0_262 = arith.constant 0 : index
    %c0_263 = arith.constant 0 : index
    %717 = vector.load %arg3[%c0_261, %716, %c0_262, %c0_263] : memref<1x20x24x128xf32, #tpu.memory_space<vmem>>, vector<1x1x24x128xf32>
    %718 = vector.shape_cast %717 : vector<1x1x24x128xf32> to vector<24x128xf32>
    %719 = vector.broadcast %18 : vector<1x128xf32> to vector<24x128xf32>
    %720 = arith.mulf %718, %719 : vector<24x128xf32>
    %721 = arith.addf %713, %720 : vector<24x128xf32>
    %c23_i32_264 = arith.constant 23 : i32
    %722 = tpu.dynamic_rotate %718 by %c23_i32_264 dim 0 : vector<24x128xf32>, i32 -> vector<24x128xf32>
    %723 = vector.broadcast %19 : vector<1x128xf32> to vector<24x128xf32>
    %724 = arith.mulf %722, %723 : vector<24x128xf32>
    %725 = arith.addf %721, %724 : vector<24x128xf32>
    %c22_i32_265 = arith.constant 22 : i32
    %726 = tpu.dynamic_rotate %718 by %c22_i32_265 dim 0 : vector<24x128xf32>, i32 -> vector<24x128xf32>
    %727 = vector.broadcast %20 : vector<1x128xf32> to vector<24x128xf32>
    %728 = arith.mulf %726, %727 : vector<24x128xf32>
    %729 = arith.addf %725, %728 : vector<24x128xf32>
    %c21_i32_266 = arith.constant 21 : i32
    %730 = tpu.dynamic_rotate %718 by %c21_i32_266 dim 0 : vector<24x128xf32>, i32 -> vector<24x128xf32>
    %731 = vector.broadcast %21 : vector<1x128xf32> to vector<24x128xf32>
    %732 = arith.mulf %730, %731 : vector<24x128xf32>
    %733 = arith.addf %729, %732 : vector<24x128xf32>
    %c20_i32_267 = arith.constant 20 : i32
    %734 = tpu.dynamic_rotate %718 by %c20_i32_267 dim 0 : vector<24x128xf32>, i32 -> vector<24x128xf32>
    %735 = vector.broadcast %22 : vector<1x128xf32> to vector<24x128xf32>
    %736 = arith.mulf %734, %735 : vector<24x128xf32>
    %737 = arith.addf %733, %736 : vector<24x128xf32>
    %c5_i32_268 = arith.constant 5 : i32
    %738 = arith.addi %1, %c5_i32_268 : i32
    %c4_i32_269 = arith.constant 4 : i32
    %739 = arith.addi %738, %c4_i32_269 : i32
    %c0_270 = arith.constant 0 : index
    %740 = arith.index_cast %739 : i32 to index
    %c0_271 = arith.constant 0 : index
    %c0_272 = arith.constant 0 : index
    %741 = vector.load %arg3[%c0_270, %740, %c0_271, %c0_272] : memref<1x20x24x128xf32, #tpu.memory_space<vmem>>, vector<1x1x24x128xf32>
    %742 = vector.shape_cast %741 : vector<1x1x24x128xf32> to vector<24x128xf32>
    %743 = vector.broadcast %23 : vector<1x128xf32> to vector<24x128xf32>
    %744 = arith.mulf %742, %743 : vector<24x128xf32>
    %745 = arith.addf %737, %744 : vector<24x128xf32>
    %c23_i32_273 = arith.constant 23 : i32
    %746 = tpu.dynamic_rotate %742 by %c23_i32_273 dim 0 : vector<24x128xf32>, i32 -> vector<24x128xf32>
    %747 = vector.broadcast %24 : vector<1x128xf32> to vector<24x128xf32>
    %748 = arith.mulf %746, %747 : vector<24x128xf32>
    %749 = arith.addf %745, %748 : vector<24x128xf32>
    %c22_i32_274 = arith.constant 22 : i32
    %750 = tpu.dynamic_rotate %742 by %c22_i32_274 dim 0 : vector<24x128xf32>, i32 -> vector<24x128xf32>
    %751 = vector.broadcast %25 : vector<1x128xf32> to vector<24x128xf32>
    %752 = arith.mulf %750, %751 : vector<24x128xf32>
    %753 = arith.addf %749, %752 : vector<24x128xf32>
    %c21_i32_275 = arith.constant 21 : i32
    %754 = tpu.dynamic_rotate %742 by %c21_i32_275 dim 0 : vector<24x128xf32>, i32 -> vector<24x128xf32>
    %755 = vector.broadcast %26 : vector<1x128xf32> to vector<24x128xf32>
    %756 = arith.mulf %754, %755 : vector<24x128xf32>
    %757 = arith.addf %753, %756 : vector<24x128xf32>
    %c20_i32_276 = arith.constant 20 : i32
    %758 = tpu.dynamic_rotate %742 by %c20_i32_276 dim 0 : vector<24x128xf32>, i32 -> vector<24x128xf32>
    %759 = vector.broadcast %27 : vector<1x128xf32> to vector<24x128xf32>
    %760 = arith.mulf %758, %759 : vector<24x128xf32>
    %761 = arith.addf %757, %760 : vector<24x128xf32>
    %762 = vector.extract_strided_slice %761 {offsets = [0, 0], sizes = [16, 128], strides = [1, 1]} : vector<24x128xf32> to vector<16x128xf32>
    %c0_277 = arith.constant 0 : index
    %c5 = arith.constant 5 : index
    %c0_278 = arith.constant 0 : index
    %c0_279 = arith.constant 0 : index
    %763 = vector.load %arg5[%c0_277, %c5, %c0_278, %c0_279] : memref<1x8x16x128xf32, #tpu.memory_space<vmem>>, vector<1x1x16x128xf32>
    %764 = vector.shape_cast %763 : vector<1x1x16x128xf32> to vector<16x128xf32>
    %765 = vector.shape_cast %762 : vector<16x128xf32> to vector<1x1x16x128xf32>
    tpu.vector_store %arg5[%c0_277, %c5, %c0_278, %c0_279], %765 {strides = array<i32>} : memref<1x8x16x128xf32, #tpu.memory_space<vmem>>, vector<1x1x16x128xf32>,
    %c6_i32 = arith.constant 6 : i32
    %766 = arith.addi %1, %c6_i32 : i32
    %c0_i32_280 = arith.constant 0 : i32
    %767 = arith.addi %766, %c0_i32_280 : i32
    %c0_281 = arith.constant 0 : index
    %768 = arith.index_cast %767 : i32 to index
    %c0_282 = arith.constant 0 : index
    %c0_283 = arith.constant 0 : index
    %769 = vector.load %arg3[%c0_281, %768, %c0_282, %c0_283] : memref<1x20x24x128xf32, #tpu.memory_space<vmem>>, vector<1x1x24x128xf32>
    %770 = vector.shape_cast %769 : vector<1x1x24x128xf32> to vector<24x128xf32>
    %771 = vector.broadcast %3 : vector<1x128xf32> to vector<24x128xf32>
    %772 = arith.mulf %770, %771 : vector<24x128xf32>
    %c23_i32_284 = arith.constant 23 : i32
    %773 = tpu.dynamic_rotate %770 by %c23_i32_284 dim 0 : vector<24x128xf32>, i32 -> vector<24x128xf32>
    %774 = vector.broadcast %4 : vector<1x128xf32> to vector<24x128xf32>
    %775 = arith.mulf %773, %774 : vector<24x128xf32>
    %776 = arith.addf %772, %775 : vector<24x128xf32>
    %c22_i32_285 = arith.constant 22 : i32
    %777 = tpu.dynamic_rotate %770 by %c22_i32_285 dim 0 : vector<24x128xf32>, i32 -> vector<24x128xf32>
    %778 = vector.broadcast %5 : vector<1x128xf32> to vector<24x128xf32>
    %779 = arith.mulf %777, %778 : vector<24x128xf32>
    %780 = arith.addf %776, %779 : vector<24x128xf32>
    %c21_i32_286 = arith.constant 21 : i32
    %781 = tpu.dynamic_rotate %770 by %c21_i32_286 dim 0 : vector<24x128xf32>, i32 -> vector<24x128xf32>
    %782 = vector.broadcast %6 : vector<1x128xf32> to vector<24x128xf32>
    %783 = arith.mulf %781, %782 : vector<24x128xf32>
    %784 = arith.addf %780, %783 : vector<24x128xf32>
    %c20_i32_287 = arith.constant 20 : i32
    %785 = tpu.dynamic_rotate %770 by %c20_i32_287 dim 0 : vector<24x128xf32>, i32 -> vector<24x128xf32>
    %786 = vector.broadcast %7 : vector<1x128xf32> to vector<24x128xf32>
    %787 = arith.mulf %785, %786 : vector<24x128xf32>
    %788 = arith.addf %784, %787 : vector<24x128xf32>
    %c6_i32_288 = arith.constant 6 : i32
    %789 = arith.addi %1, %c6_i32_288 : i32
    %c1_i32_289 = arith.constant 1 : i32
    %790 = arith.addi %789, %c1_i32_289 : i32
    %c0_290 = arith.constant 0 : index
    %791 = arith.index_cast %790 : i32 to index
    %c0_291 = arith.constant 0 : index
    %c0_292 = arith.constant 0 : index
    %792 = vector.load %arg3[%c0_290, %791, %c0_291, %c0_292] : memref<1x20x24x128xf32, #tpu.memory_space<vmem>>, vector<1x1x24x128xf32>
    %793 = vector.shape_cast %792 : vector<1x1x24x128xf32> to vector<24x128xf32>
    %794 = vector.broadcast %8 : vector<1x128xf32> to vector<24x128xf32>
    %795 = arith.mulf %793, %794 : vector<24x128xf32>
    %796 = arith.addf %788, %795 : vector<24x128xf32>
    %c23_i32_293 = arith.constant 23 : i32
    %797 = tpu.dynamic_rotate %793 by %c23_i32_293 dim 0 : vector<24x128xf32>, i32 -> vector<24x128xf32>
    %798 = vector.broadcast %9 : vector<1x128xf32> to vector<24x128xf32>
    %799 = arith.mulf %797, %798 : vector<24x128xf32>
    %800 = arith.addf %796, %799 : vector<24x128xf32>
    %c22_i32_294 = arith.constant 22 : i32
    %801 = tpu.dynamic_rotate %793 by %c22_i32_294 dim 0 : vector<24x128xf32>, i32 -> vector<24x128xf32>
    %802 = vector.broadcast %10 : vector<1x128xf32> to vector<24x128xf32>
    %803 = arith.mulf %801, %802 : vector<24x128xf32>
    %804 = arith.addf %800, %803 : vector<24x128xf32>
    %c21_i32_295 = arith.constant 21 : i32
    %805 = tpu.dynamic_rotate %793 by %c21_i32_295 dim 0 : vector<24x128xf32>, i32 -> vector<24x128xf32>
    %806 = vector.broadcast %11 : vector<1x128xf32> to vector<24x128xf32>
    %807 = arith.mulf %805, %806 : vector<24x128xf32>
    %808 = arith.addf %804, %807 : vector<24x128xf32>
    %c20_i32_296 = arith.constant 20 : i32
    %809 = tpu.dynamic_rotate %793 by %c20_i32_296 dim 0 : vector<24x128xf32>, i32 -> vector<24x128xf32>
    %810 = vector.broadcast %12 : vector<1x128xf32> to vector<24x128xf32>
    %811 = arith.mulf %809, %810 : vector<24x128xf32>
    %812 = arith.addf %808, %811 : vector<24x128xf32>
    %c6_i32_297 = arith.constant 6 : i32
    %813 = arith.addi %1, %c6_i32_297 : i32
    %c2_i32_298 = arith.constant 2 : i32
    %814 = arith.addi %813, %c2_i32_298 : i32
    %c0_299 = arith.constant 0 : index
    %815 = arith.index_cast %814 : i32 to index
    %c0_300 = arith.constant 0 : index
    %c0_301 = arith.constant 0 : index
    %816 = vector.load %arg3[%c0_299, %815, %c0_300, %c0_301] : memref<1x20x24x128xf32, #tpu.memory_space<vmem>>, vector<1x1x24x128xf32>
    %817 = vector.shape_cast %816 : vector<1x1x24x128xf32> to vector<24x128xf32>
    %818 = vector.broadcast %13 : vector<1x128xf32> to vector<24x128xf32>
    %819 = arith.mulf %817, %818 : vector<24x128xf32>
    %820 = arith.addf %812, %819 : vector<24x128xf32>
    %c23_i32_302 = arith.constant 23 : i32
    %821 = tpu.dynamic_rotate %817 by %c23_i32_302 dim 0 : vector<24x128xf32>, i32 -> vector<24x128xf32>
    %822 = vector.broadcast %14 : vector<1x128xf32> to vector<24x128xf32>
    %823 = arith.mulf %821, %822 : vector<24x128xf32>
    %824 = arith.addf %820, %823 : vector<24x128xf32>
    %c22_i32_303 = arith.constant 22 : i32
    %825 = tpu.dynamic_rotate %817 by %c22_i32_303 dim 0 : vector<24x128xf32>, i32 -> vector<24x128xf32>
    %826 = vector.broadcast %15 : vector<1x128xf32> to vector<24x128xf32>
    %827 = arith.mulf %825, %826 : vector<24x128xf32>
    %828 = arith.addf %824, %827 : vector<24x128xf32>
    %c21_i32_304 = arith.constant 21 : i32
    %829 = tpu.dynamic_rotate %817 by %c21_i32_304 dim 0 : vector<24x128xf32>, i32 -> vector<24x128xf32>
    %830 = vector.broadcast %16 : vector<1x128xf32> to vector<24x128xf32>
    %831 = arith.mulf %829, %830 : vector<24x128xf32>
    %832 = arith.addf %828, %831 : vector<24x128xf32>
    %c20_i32_305 = arith.constant 20 : i32
    %833 = tpu.dynamic_rotate %817 by %c20_i32_305 dim 0 : vector<24x128xf32>, i32 -> vector<24x128xf32>
    %834 = vector.broadcast %17 : vector<1x128xf32> to vector<24x128xf32>
    %835 = arith.mulf %833, %834 : vector<24x128xf32>
    %836 = arith.addf %832, %835 : vector<24x128xf32>
    %c6_i32_306 = arith.constant 6 : i32
    %837 = arith.addi %1, %c6_i32_306 : i32
    %c3_i32_307 = arith.constant 3 : i32
    %838 = arith.addi %837, %c3_i32_307 : i32
    %c0_308 = arith.constant 0 : index
    %839 = arith.index_cast %838 : i32 to index
    %c0_309 = arith.constant 0 : index
    %c0_310 = arith.constant 0 : index
    %840 = vector.load %arg3[%c0_308, %839, %c0_309, %c0_310] : memref<1x20x24x128xf32, #tpu.memory_space<vmem>>, vector<1x1x24x128xf32>
    %841 = vector.shape_cast %840 : vector<1x1x24x128xf32> to vector<24x128xf32>
    %842 = vector.broadcast %18 : vector<1x128xf32> to vector<24x128xf32>
    %843 = arith.mulf %841, %842 : vector<24x128xf32>
    %844 = arith.addf %836, %843 : vector<24x128xf32>
    %c23_i32_311 = arith.constant 23 : i32
    %845 = tpu.dynamic_rotate %841 by %c23_i32_311 dim 0 : vector<24x128xf32>, i32 -> vector<24x128xf32>
    %846 = vector.broadcast %19 : vector<1x128xf32> to vector<24x128xf32>
    %847 = arith.mulf %845, %846 : vector<24x128xf32>
    %848 = arith.addf %844, %847 : vector<24x128xf32>
    %c22_i32_312 = arith.constant 22 : i32
    %849 = tpu.dynamic_rotate %841 by %c22_i32_312 dim 0 : vector<24x128xf32>, i32 -> vector<24x128xf32>
    %850 = vector.broadcast %20 : vector<1x128xf32> to vector<24x128xf32>
    %851 = arith.mulf %849, %850 : vector<24x128xf32>
    %852 = arith.addf %848, %851 : vector<24x128xf32>
    %c21_i32_313 = arith.constant 21 : i32
    %853 = tpu.dynamic_rotate %841 by %c21_i32_313 dim 0 : vector<24x128xf32>, i32 -> vector<24x128xf32>
    %854 = vector.broadcast %21 : vector<1x128xf32> to vector<24x128xf32>
    %855 = arith.mulf %853, %854 : vector<24x128xf32>
    %856 = arith.addf %852, %855 : vector<24x128xf32>
    %c20_i32_314 = arith.constant 20 : i32
    %857 = tpu.dynamic_rotate %841 by %c20_i32_314 dim 0 : vector<24x128xf32>, i32 -> vector<24x128xf32>
    %858 = vector.broadcast %22 : vector<1x128xf32> to vector<24x128xf32>
    %859 = arith.mulf %857, %858 : vector<24x128xf32>
    %860 = arith.addf %856, %859 : vector<24x128xf32>
    %c6_i32_315 = arith.constant 6 : i32
    %861 = arith.addi %1, %c6_i32_315 : i32
    %c4_i32_316 = arith.constant 4 : i32
    %862 = arith.addi %861, %c4_i32_316 : i32
    %c0_317 = arith.constant 0 : index
    %863 = arith.index_cast %862 : i32 to index
    %c0_318 = arith.constant 0 : index
    %c0_319 = arith.constant 0 : index
    %864 = vector.load %arg3[%c0_317, %863, %c0_318, %c0_319] : memref<1x20x24x128xf32, #tpu.memory_space<vmem>>, vector<1x1x24x128xf32>
    %865 = vector.shape_cast %864 : vector<1x1x24x128xf32> to vector<24x128xf32>
    %866 = vector.broadcast %23 : vector<1x128xf32> to vector<24x128xf32>
    %867 = arith.mulf %865, %866 : vector<24x128xf32>
    %868 = arith.addf %860, %867 : vector<24x128xf32>
    %c23_i32_320 = arith.constant 23 : i32
    %869 = tpu.dynamic_rotate %865 by %c23_i32_320 dim 0 : vector<24x128xf32>, i32 -> vector<24x128xf32>
    %870 = vector.broadcast %24 : vector<1x128xf32> to vector<24x128xf32>
    %871 = arith.mulf %869, %870 : vector<24x128xf32>
    %872 = arith.addf %868, %871 : vector<24x128xf32>
    %c22_i32_321 = arith.constant 22 : i32
    %873 = tpu.dynamic_rotate %865 by %c22_i32_321 dim 0 : vector<24x128xf32>, i32 -> vector<24x128xf32>
    %874 = vector.broadcast %25 : vector<1x128xf32> to vector<24x128xf32>
    %875 = arith.mulf %873, %874 : vector<24x128xf32>
    %876 = arith.addf %872, %875 : vector<24x128xf32>
    %c21_i32_322 = arith.constant 21 : i32
    %877 = tpu.dynamic_rotate %865 by %c21_i32_322 dim 0 : vector<24x128xf32>, i32 -> vector<24x128xf32>
    %878 = vector.broadcast %26 : vector<1x128xf32> to vector<24x128xf32>
    %879 = arith.mulf %877, %878 : vector<24x128xf32>
    %880 = arith.addf %876, %879 : vector<24x128xf32>
    %c20_i32_323 = arith.constant 20 : i32
    %881 = tpu.dynamic_rotate %865 by %c20_i32_323 dim 0 : vector<24x128xf32>, i32 -> vector<24x128xf32>
    %882 = vector.broadcast %27 : vector<1x128xf32> to vector<24x128xf32>
    %883 = arith.mulf %881, %882 : vector<24x128xf32>
    %884 = arith.addf %880, %883 : vector<24x128xf32>
    %885 = vector.extract_strided_slice %884 {offsets = [0, 0], sizes = [16, 128], strides = [1, 1]} : vector<24x128xf32> to vector<16x128xf32>
    %c0_324 = arith.constant 0 : index
    %c6 = arith.constant 6 : index
    %c0_325 = arith.constant 0 : index
    %c0_326 = arith.constant 0 : index
    %886 = vector.load %arg5[%c0_324, %c6, %c0_325, %c0_326] : memref<1x8x16x128xf32, #tpu.memory_space<vmem>>, vector<1x1x16x128xf32>
    %887 = vector.shape_cast %886 : vector<1x1x16x128xf32> to vector<16x128xf32>
    %888 = vector.shape_cast %885 : vector<16x128xf32> to vector<1x1x16x128xf32>
    tpu.vector_store %arg5[%c0_324, %c6, %c0_325, %c0_326], %888 {strides = array<i32>} : memref<1x8x16x128xf32, #tpu.memory_space<vmem>>, vector<1x1x16x128xf32>,
    %c7_i32 = arith.constant 7 : i32
    %889 = arith.addi %1, %c7_i32 : i32
    %c0_i32_327 = arith.constant 0 : i32
    %890 = arith.addi %889, %c0_i32_327 : i32
    %c0_328 = arith.constant 0 : index
    %891 = arith.index_cast %890 : i32 to index
    %c0_329 = arith.constant 0 : index
    %c0_330 = arith.constant 0 : index
    %892 = vector.load %arg3[%c0_328, %891, %c0_329, %c0_330] : memref<1x20x24x128xf32, #tpu.memory_space<vmem>>, vector<1x1x24x128xf32>
    %893 = vector.shape_cast %892 : vector<1x1x24x128xf32> to vector<24x128xf32>
    %894 = vector.broadcast %3 : vector<1x128xf32> to vector<24x128xf32>
    %895 = arith.mulf %893, %894 : vector<24x128xf32>
    %c23_i32_331 = arith.constant 23 : i32
    %896 = tpu.dynamic_rotate %893 by %c23_i32_331 dim 0 : vector<24x128xf32>, i32 -> vector<24x128xf32>
    %897 = vector.broadcast %4 : vector<1x128xf32> to vector<24x128xf32>
    %898 = arith.mulf %896, %897 : vector<24x128xf32>
    %899 = arith.addf %895, %898 : vector<24x128xf32>
    %c22_i32_332 = arith.constant 22 : i32
    %900 = tpu.dynamic_rotate %893 by %c22_i32_332 dim 0 : vector<24x128xf32>, i32 -> vector<24x128xf32>
    %901 = vector.broadcast %5 : vector<1x128xf32> to vector<24x128xf32>
    %902 = arith.mulf %900, %901 : vector<24x128xf32>
    %903 = arith.addf %899, %902 : vector<24x128xf32>
    %c21_i32_333 = arith.constant 21 : i32
    %904 = tpu.dynamic_rotate %893 by %c21_i32_333 dim 0 : vector<24x128xf32>, i32 -> vector<24x128xf32>
    %905 = vector.broadcast %6 : vector<1x128xf32> to vector<24x128xf32>
    %906 = arith.mulf %904, %905 : vector<24x128xf32>
    %907 = arith.addf %903, %906 : vector<24x128xf32>
    %c20_i32_334 = arith.constant 20 : i32
    %908 = tpu.dynamic_rotate %893 by %c20_i32_334 dim 0 : vector<24x128xf32>, i32 -> vector<24x128xf32>
    %909 = vector.broadcast %7 : vector<1x128xf32> to vector<24x128xf32>
    %910 = arith.mulf %908, %909 : vector<24x128xf32>
    %911 = arith.addf %907, %910 : vector<24x128xf32>
    %c7_i32_335 = arith.constant 7 : i32
    %912 = arith.addi %1, %c7_i32_335 : i32
    %c1_i32_336 = arith.constant 1 : i32
    %913 = arith.addi %912, %c1_i32_336 : i32
    %c0_337 = arith.constant 0 : index
    %914 = arith.index_cast %913 : i32 to index
    %c0_338 = arith.constant 0 : index
    %c0_339 = arith.constant 0 : index
    %915 = vector.load %arg3[%c0_337, %914, %c0_338, %c0_339] : memref<1x20x24x128xf32, #tpu.memory_space<vmem>>, vector<1x1x24x128xf32>
    %916 = vector.shape_cast %915 : vector<1x1x24x128xf32> to vector<24x128xf32>
    %917 = vector.broadcast %8 : vector<1x128xf32> to vector<24x128xf32>
    %918 = arith.mulf %916, %917 : vector<24x128xf32>
    %919 = arith.addf %911, %918 : vector<24x128xf32>
    %c23_i32_340 = arith.constant 23 : i32
    %920 = tpu.dynamic_rotate %916 by %c23_i32_340 dim 0 : vector<24x128xf32>, i32 -> vector<24x128xf32>
    %921 = vector.broadcast %9 : vector<1x128xf32> to vector<24x128xf32>
    %922 = arith.mulf %920, %921 : vector<24x128xf32>
    %923 = arith.addf %919, %922 : vector<24x128xf32>
    %c22_i32_341 = arith.constant 22 : i32
    %924 = tpu.dynamic_rotate %916 by %c22_i32_341 dim 0 : vector<24x128xf32>, i32 -> vector<24x128xf32>
    %925 = vector.broadcast %10 : vector<1x128xf32> to vector<24x128xf32>
    %926 = arith.mulf %924, %925 : vector<24x128xf32>
    %927 = arith.addf %923, %926 : vector<24x128xf32>
    %c21_i32_342 = arith.constant 21 : i32
    %928 = tpu.dynamic_rotate %916 by %c21_i32_342 dim 0 : vector<24x128xf32>, i32 -> vector<24x128xf32>
    %929 = vector.broadcast %11 : vector<1x128xf32> to vector<24x128xf32>
    %930 = arith.mulf %928, %929 : vector<24x128xf32>
    %931 = arith.addf %927, %930 : vector<24x128xf32>
    %c20_i32_343 = arith.constant 20 : i32
    %932 = tpu.dynamic_rotate %916 by %c20_i32_343 dim 0 : vector<24x128xf32>, i32 -> vector<24x128xf32>
    %933 = vector.broadcast %12 : vector<1x128xf32> to vector<24x128xf32>
    %934 = arith.mulf %932, %933 : vector<24x128xf32>
    %935 = arith.addf %931, %934 : vector<24x128xf32>
    %c7_i32_344 = arith.constant 7 : i32
    %936 = arith.addi %1, %c7_i32_344 : i32
    %c2_i32_345 = arith.constant 2 : i32
    %937 = arith.addi %936, %c2_i32_345 : i32
    %c0_346 = arith.constant 0 : index
    %938 = arith.index_cast %937 : i32 to index
    %c0_347 = arith.constant 0 : index
    %c0_348 = arith.constant 0 : index
    %939 = vector.load %arg3[%c0_346, %938, %c0_347, %c0_348] : memref<1x20x24x128xf32, #tpu.memory_space<vmem>>, vector<1x1x24x128xf32>
    %940 = vector.shape_cast %939 : vector<1x1x24x128xf32> to vector<24x128xf32>
    %941 = vector.broadcast %13 : vector<1x128xf32> to vector<24x128xf32>
    %942 = arith.mulf %940, %941 : vector<24x128xf32>
    %943 = arith.addf %935, %942 : vector<24x128xf32>
    %c23_i32_349 = arith.constant 23 : i32
    %944 = tpu.dynamic_rotate %940 by %c23_i32_349 dim 0 : vector<24x128xf32>, i32 -> vector<24x128xf32>
    %945 = vector.broadcast %14 : vector<1x128xf32> to vector<24x128xf32>
    %946 = arith.mulf %944, %945 : vector<24x128xf32>
    %947 = arith.addf %943, %946 : vector<24x128xf32>
    %c22_i32_350 = arith.constant 22 : i32
    %948 = tpu.dynamic_rotate %940 by %c22_i32_350 dim 0 : vector<24x128xf32>, i32 -> vector<24x128xf32>
    %949 = vector.broadcast %15 : vector<1x128xf32> to vector<24x128xf32>
    %950 = arith.mulf %948, %949 : vector<24x128xf32>
    %951 = arith.addf %947, %950 : vector<24x128xf32>
    %c21_i32_351 = arith.constant 21 : i32
    %952 = tpu.dynamic_rotate %940 by %c21_i32_351 dim 0 : vector<24x128xf32>, i32 -> vector<24x128xf32>
    %953 = vector.broadcast %16 : vector<1x128xf32> to vector<24x128xf32>
    %954 = arith.mulf %952, %953 : vector<24x128xf32>
    %955 = arith.addf %951, %954 : vector<24x128xf32>
    %c20_i32_352 = arith.constant 20 : i32
    %956 = tpu.dynamic_rotate %940 by %c20_i32_352 dim 0 : vector<24x128xf32>, i32 -> vector<24x128xf32>
    %957 = vector.broadcast %17 : vector<1x128xf32> to vector<24x128xf32>
    %958 = arith.mulf %956, %957 : vector<24x128xf32>
    %959 = arith.addf %955, %958 : vector<24x128xf32>
    %c7_i32_353 = arith.constant 7 : i32
    %960 = arith.addi %1, %c7_i32_353 : i32
    %c3_i32_354 = arith.constant 3 : i32
    %961 = arith.addi %960, %c3_i32_354 : i32
    %c0_355 = arith.constant 0 : index
    %962 = arith.index_cast %961 : i32 to index
    %c0_356 = arith.constant 0 : index
    %c0_357 = arith.constant 0 : index
    %963 = vector.load %arg3[%c0_355, %962, %c0_356, %c0_357] : memref<1x20x24x128xf32, #tpu.memory_space<vmem>>, vector<1x1x24x128xf32>
    %964 = vector.shape_cast %963 : vector<1x1x24x128xf32> to vector<24x128xf32>
    %965 = vector.broadcast %18 : vector<1x128xf32> to vector<24x128xf32>
    %966 = arith.mulf %964, %965 : vector<24x128xf32>
    %967 = arith.addf %959, %966 : vector<24x128xf32>
    %c23_i32_358 = arith.constant 23 : i32
    %968 = tpu.dynamic_rotate %964 by %c23_i32_358 dim 0 : vector<24x128xf32>, i32 -> vector<24x128xf32>
    %969 = vector.broadcast %19 : vector<1x128xf32> to vector<24x128xf32>
    %970 = arith.mulf %968, %969 : vector<24x128xf32>
    %971 = arith.addf %967, %970 : vector<24x128xf32>
    %c22_i32_359 = arith.constant 22 : i32
    %972 = tpu.dynamic_rotate %964 by %c22_i32_359 dim 0 : vector<24x128xf32>, i32 -> vector<24x128xf32>
    %973 = vector.broadcast %20 : vector<1x128xf32> to vector<24x128xf32>
    %974 = arith.mulf %972, %973 : vector<24x128xf32>
    %975 = arith.addf %971, %974 : vector<24x128xf32>
    %c21_i32_360 = arith.constant 21 : i32
    %976 = tpu.dynamic_rotate %964 by %c21_i32_360 dim 0 : vector<24x128xf32>, i32 -> vector<24x128xf32>
    %977 = vector.broadcast %21 : vector<1x128xf32> to vector<24x128xf32>
    %978 = arith.mulf %976, %977 : vector<24x128xf32>
    %979 = arith.addf %975, %978 : vector<24x128xf32>
    %c20_i32_361 = arith.constant 20 : i32
    %980 = tpu.dynamic_rotate %964 by %c20_i32_361 dim 0 : vector<24x128xf32>, i32 -> vector<24x128xf32>
    %981 = vector.broadcast %22 : vector<1x128xf32> to vector<24x128xf32>
    %982 = arith.mulf %980, %981 : vector<24x128xf32>
    %983 = arith.addf %979, %982 : vector<24x128xf32>
    %c7_i32_362 = arith.constant 7 : i32
    %984 = arith.addi %1, %c7_i32_362 : i32
    %c4_i32_363 = arith.constant 4 : i32
    %985 = arith.addi %984, %c4_i32_363 : i32
    %c0_364 = arith.constant 0 : index
    %986 = arith.index_cast %985 : i32 to index
    %c0_365 = arith.constant 0 : index
    %c0_366 = arith.constant 0 : index
    %987 = vector.load %arg3[%c0_364, %986, %c0_365, %c0_366] : memref<1x20x24x128xf32, #tpu.memory_space<vmem>>, vector<1x1x24x128xf32>
    %988 = vector.shape_cast %987 : vector<1x1x24x128xf32> to vector<24x128xf32>
    %989 = vector.broadcast %23 : vector<1x128xf32> to vector<24x128xf32>
    %990 = arith.mulf %988, %989 : vector<24x128xf32>
    %991 = arith.addf %983, %990 : vector<24x128xf32>
    %c23_i32_367 = arith.constant 23 : i32
    %992 = tpu.dynamic_rotate %988 by %c23_i32_367 dim 0 : vector<24x128xf32>, i32 -> vector<24x128xf32>
    %993 = vector.broadcast %24 : vector<1x128xf32> to vector<24x128xf32>
    %994 = arith.mulf %992, %993 : vector<24x128xf32>
    %995 = arith.addf %991, %994 : vector<24x128xf32>
    %c22_i32_368 = arith.constant 22 : i32
    %996 = tpu.dynamic_rotate %988 by %c22_i32_368 dim 0 : vector<24x128xf32>, i32 -> vector<24x128xf32>
    %997 = vector.broadcast %25 : vector<1x128xf32> to vector<24x128xf32>
    %998 = arith.mulf %996, %997 : vector<24x128xf32>
    %999 = arith.addf %995, %998 : vector<24x128xf32>
    %c21_i32_369 = arith.constant 21 : i32
    %1000 = tpu.dynamic_rotate %988 by %c21_i32_369 dim 0 : vector<24x128xf32>, i32 -> vector<24x128xf32>
    %1001 = vector.broadcast %26 : vector<1x128xf32> to vector<24x128xf32>
    %1002 = arith.mulf %1000, %1001 : vector<24x128xf32>
    %1003 = arith.addf %999, %1002 : vector<24x128xf32>
    %c20_i32_370 = arith.constant 20 : i32
    %1004 = tpu.dynamic_rotate %988 by %c20_i32_370 dim 0 : vector<24x128xf32>, i32 -> vector<24x128xf32>
    %1005 = vector.broadcast %27 : vector<1x128xf32> to vector<24x128xf32>
    %1006 = arith.mulf %1004, %1005 : vector<24x128xf32>
    %1007 = arith.addf %1003, %1006 : vector<24x128xf32>
    %1008 = vector.extract_strided_slice %1007 {offsets = [0, 0], sizes = [16, 128], strides = [1, 1]} : vector<24x128xf32> to vector<16x128xf32>
    %c0_371 = arith.constant 0 : index
    %c7 = arith.constant 7 : index
    %c0_372 = arith.constant 0 : index
    %c0_373 = arith.constant 0 : index
    %1009 = vector.load %arg5[%c0_371, %c7, %c0_372, %c0_373] : memref<1x8x16x128xf32, #tpu.memory_space<vmem>>, vector<1x1x16x128xf32>
    %1010 = vector.shape_cast %1009 : vector<1x1x16x128xf32> to vector<16x128xf32>
    %1011 = vector.shape_cast %1008 : vector<16x128xf32> to vector<1x1x16x128xf32>
    tpu.vector_store %arg5[%c0_371, %c7, %c0_372, %c0_373], %1011 {strides = array<i32>} : memref<1x8x16x128xf32, #tpu.memory_space<vmem>>, vector<1x1x16x128xf32>,
    return
  }
  func.func @transform_0(%arg0: i32, %arg1: i32, %arg2: i32) -> (i32, i32, i32, i32) {
    %c0_i32 = arith.constant 0 : i32
    %c0_i32_0 = arith.constant 0 : i32
    %c0_i32_1 = arith.constant 0 : i32
    return %arg0, %c0_i32, %c0_i32_0, %arg1 : i32, i32, i32, i32
  }
  func.func @transform_1(%arg0: i32, %arg1: i32, %arg2: i32) -> (i32, i32) {
    %c0_i32 = arith.constant 0 : i32
    %c0_i32_0 = arith.constant 0 : i32
    return %c0_i32, %arg1 : i32, i32
  }
  func.func @transform_2(%arg0: i32, %arg1: i32, %arg2: i32) -> (i32, i32, i32, i32) {
    %c0_i32 = arith.constant 0 : i32
    %c0_i32_0 = arith.constant 0 : i32
    return %arg0, %arg2, %c0_i32, %arg1 : i32, i32, i32, i32
  }
}

</mosaic_0001>

<bundles_post_ra>
// kernel: tpu_custom_call.1
= control target key start
LH: loop header
LB: loop body
LE: loop exit
PB: predicated region body
PF: predicated region fallthrough
CT: control target
= control target key end

     0   :  { %s4966_s0 = inlined_call_operand.hbm [shape: f32[2,20,24,128], index: 0, kind: input, shape index: {}]   ;;  %s4967_s1 = inlined_call_operand.hbm [shape: f32[32,128], index: 1, kind: input, shape index: {}]   ;;  %s4968_s2 = inlined_call_operand.hbm [shape: f32[2,16,16,128], index: 2, kind: output, shape index: {}]  }
   0x1   :  { %5149 = sst [smem:[#allocation62_spill]] %s4967_s1 }
   0x2   :  { %7 = vsyncpa [#allocation3], 0 }
   0x3   :  { %9 = vsyncpa [#allocation3 + $0x1], 0 }
   0x4   :  { %10 = vsyncpa [#allocation6], 0 }
   0x5   :  { %11 = vsyncpa [#allocation4], 0 }
   0x6   :  { %13 = vsyncpa [#allocation4 + $0x1], 0  ;;  %s2753_s9 = smov 0   ;;  %s2755_s10 = smov 0  }
   0x7   :  { %s2757_s11 = smov 0   ;;  %s2759_s12 = smov 0  }
   0x8   :  { %s2761_s13 = smov 0   ;;  %s2763_s14 = smov 0  }
   0x9   :  { %s2765_s15 = smov 0   ;;  %s2767_s16 = smov 0  }
   0xa   :  { %s2769_s17 = smov 0   ;;  %s2771_s18 = smov 0  }
   0xb   :  { %s2773_s19 = smov 0  }
   0xc LB: > { %5150 = sst [smem:[#allocation11_spill]] %s2721_s17  ;;  %s2253_s20 = sadd.s32 4294967295, %s2729_s19   ;;  %s2729_s19 = sphi %s2773_s19, %s19_s19   ;;  %s2725_s18 = sphi %s2771_s18, %s5415_s18   ;;  %s2721_s17 = sphi %s2769_s17, %s5406_s17   ;;  %s2717_s16 = sphi %s2767_s16, %s5414_s16   ;;  %s2713_s15 = sphi %s2765_s15, %s5405_s15   ;;  %s2709_s14 = sphi %s2763_s14, %s5413_s14   ;;  %s2705_s13 = sphi %s2761_s13, %s5412_s13   ;;  %s2701_s12 = sphi %s2759_s12, %s5411_s12   ;;  %s2697_s11 = sphi %s2757_s11, %s5410_s11   ;;  %s2693_s10 = sphi %s2755_s10, %s5409_s10   ;;  %s2689_s9 = sphi %s2753_s9, %s5408_s9  }
   0xd   : > { %s2254_s21 = sadd.s32 4294967294, %s2729_s19   ;;  %p60_p0 = scmp.ne.s32.totalorder %s2705_s13, %s2701_s12 }
   0xe   : > { %p2809_p1 = scmp.eq.s32.totalorder %s2253_s20, 0  ;;  %s103_s23 = sadd.s32 1, %s2697_s11 }
   0xf   : > { %p113_p2 = scmp.ne.s32.totalorder %s2697_s11, %s2693_s10  ;;  %p114_p4 = scmp.eq.s32.totalorder %s2253_s20, 3 }
  0x10   : > { %s5151_s22 = scalar_select %p2809_p1, 1, 0 }
  0x11   : > { %p2818_p3 = por %p2809_p1, %p60_p0  ;;  %p119_p5 = scmp.ne.s32.totalorder %s2693_s10, %s2689_s9 }
  0x12   : > { %p120_p6 = scmp.eq.s32.totalorder %s2254_s21, 3  ;;  %p2824_p7 = por %p114_p4, %p113_p2 }
  0x13   : > { %s5152_s24 = scalar_select %p2818_p3, 1, 0 }
  0x14   : > { %s5153_s25 = scalar_select %p2824_p7, 1, 0 }
  0x15   : > { %p2255_p8 = scmp.ge.s32.totalorder %s2729_s19, 1  ;;  %p2829_p9 = por %p120_p6, %p119_p5 }
  0x16   : > { %p127_p10 = scmp.lt.s32.totalorder %s2729_s19, 5  ;;  %s2731_s28 = smov [#allocation5]  }
  0x17   : > { %s5154_s26 = scalar_select %p2829_p9, 1, 0 }
  0x18   : > { %p2834_p11 = pnand %p2255_p8, %p127_p10  ;;  %s141_s29 = sshll.u32 %s2731_s28, 4  ;;  %s142_s29 = int_to_ptr.vmem [resolvable:$true] %s141_s29 }
  0x19   : > { %5155 = sst [smem:[#allocation12_spill]] %s5154_s26  ;;  %s5158_s1 = sld [smem:[#allocation62_spill]] }
  0x1a   : > { %s5156_s27 = scalar_select %p2834_p11, 1, 0 }
  0x1b   : > { %p2436_p12 = pneg %p2834_p11 }
  0x1d   : > { %p2842_p13 = pnand %p2436_p12, %p2809_p1 }
  0x1f   : > { %s2545_s5 = scalar_lea.hbm %s5158_s1, 512  ;;  %p2547_p2 = pneg %p2842_p13 }
  0x20   : > { %p2546_p0 = scmp.ne.s32.totalorder %s5158_s1, %s2545_s5  ;;  %p2552_p6 = scmp.lt.u32.totalorder %s2545_s5, %s5158_s1 }
  0x22   : > { %p2548_p4 = pnand %p2547_p2, %p2546_p0 }
  0x24   : > { %p2549_p5 = pneg %p2548_p4 }
  0x26   : > { %p2554_p8 = pnand %p2552_p6, %p2549_p5 }
  0x28   : > { %2557 = shalt.err (!%p2554_p8)
}
  0x29   : > { %s2558_s20 = scalar_lea.vmem %s142_s29, 512  ;;  %p2566_p7 = scmp.lt.s32.totalorder %s142_s29, %s142_s29 }
  0x2a   : > { %p2559_p10 = scmp.ne.s32.totalorder %s142_s29, %s2558_s20  ;;  %p2567_p1 = scmp.lt.s32.totalorder %s2558_s20, %s2558_s20 }
  0x2c   : > { %p2561_p12 = pnand %p2559_p10, %p2547_p2  ;;  %p2568_p3 = por %p2567_p1, %p2566_p7 }
  0x2e   : > { %p2562_p9 = pneg %p2561_p12 }
  0x30   : > { %p2569_p11 = pnand %p2568_p3, %p2562_p9 }
  0x32   : > { %2572 = shalt.err (!%p2569_p11)
}
  0x33   : > { %s4974_s21 = smov 128   ;;  %s4975_s28 = smov 8  }
  0x34   : > { %2439 = dma.hbm_to_vmem [thread:$0]  (!%p2842_p13), %s5158_s1, 512, %s142_s29, [#allocation6], %s4974_s21, %s4974_s21, %s4975_s28  }
  0x35   : > { %s31_s5 = sadd.s32 1, %s2721_s17  ;;  %s38_s6 = sadd.s32 1, %s2725_s18 }
  0x36   : > { %p32_p1 = scmp.ge.s32.totalorder %s31_s5, 2  ;;  %s47_s7 = sadd.s32 1, %s2709_s14 }
  0x37   : > { %p54_p3 = scmp.ne.s32.totalorder %s2709_s14, %s2705_s13  ;;  %p55_p7 = scmp.eq.s32.totalorder %s2729_s19, 0 }
  0x38   : > { %s5417_s5 = smov (%p32_p1, %s31_s5), 0  ;;  %s5419_s6 = smov (!%p32_p1, %s38_s6), %s2725_s18 }
  0x39   : > { %5159 = sst [smem:[#allocation13_spill]] %s5417_s5  ;;  %s97_s30 = ssub.s32 %s2721_s17, %s5417_s5 }
  0x3a   : > { %p40_p9 = scmp.ge.s32.totalorder %s5419_s6, 2  ;;  %p2449_p11 = scmp.lt.s32.totalorder %s2729_s19, 4 }
  0x3b   : > { %p2877_p13 = por %p55_p7, %p54_p3  ;;  %s155_s8 = sand.u32 1, %s2709_s14  }
  0x3c   : > { %s5421_s6 = smov (%p40_p9, %s5419_s6), 0  ;;  %s2425_s12 = smul.u32 480, %s155_s8 }
  0x3d   : > { %5161 = sst [smem:[#allocation14_spill]] %s5421_s6  ;;  %s42_s20 = ssub.s32 %s2725_s18, %s5421_s6 }
  0x3e   : > { %s2426_s3 = smul.u32 7680, %s2725_s18  ;;  %p45_p0 = scmp.eq.s32.totalorder %s42_s20, 0 }
  0x3f   : > { %s98_s4 = sor.u32 %s97_s30, %s42_s20  ;;  %s159_s26 = scalar_lea.vmem [#allocation2], %s2425_s12 }
  0x40   : > { %p101_p2 = scmp.eq.s32.totalorder %s98_s4, 0  ;;  %s2898_s17 = scalar_lea.hbm %s4966_s0, %s2426_s3 }
  0x41   : > { %s2888_s21 = scalar_select %p45_p0, %s2709_s14, %s47_s7  }
  0x42   : > { %s2893_s28 = scalar_select %p101_p2, %s2697_s11, %s103_s23  }
  0x43   : > { %s167_s6 = sshll.u32 %s159_s26, 4  ;;  %p2906_p4 = pnand %p2449_p11, %p2877_p13  ;;  %s2900_s6 = int_to_ptr.vmem [resolvable:$true] %s167_s6 }
  0x44   : > { %s2910_s23 = scalar_lea.sflag [#allocation3], %s155_s8  ;;  %s2573_s1 = scalar_lea.hbm %s2898_s17, 7680 }
  0x45   : > { %p2574_p5 = scmp.ne.s32.totalorder %s2898_s17, %s2573_s1  ;;  %p2575_p6 = pneg %p2906_p4 }
  0x46   : > { %s2578_s30 = scalar_lea.hbm %s4966_s0, 15360  ;;  %p2579_p12 = scmp.lt.u32.totalorder %s2898_s17, %s4966_s0 }
  0x47   : > { %p2576_p8 = pnand %p2575_p6, %p2574_p5  ;;  %p2580_p1 = scmp.lt.u32.totalorder %s2578_s30, %s2573_s1 }
  0x48   : > { %p2582_p7 = scmp.lt.u32.totalorder %s2573_s1, %s2898_s17 }
  0x49   : > { %p2577_p10 = pneg %p2576_p8  ;;  %p2581_p3 = por %p2580_p1, %p2579_p12 }
  0x4b   : > { %p2583_p9 = por %p2582_p7, %p2581_p3 }
  0x4d   : > { %p2584_p11 = pnand %p2583_p9, %p2577_p10 }
  0x4f   : > { %2587 = shalt.err (!%p2584_p11)
}
  0x50   : > { %s2588_s8 = scalar_lea.vmem %s2900_s6, 7680  ;;  %s2734_s20 = smov [#allocation2]  }
  0x51   : > { %p2589_p13 = scmp.ne.s32.totalorder %s2900_s6, %s2588_s8  ;;  %s2593_s3 = sshll.u32 %s2734_s20, 4  ;;  %s2594_s3 = int_to_ptr.vmem [resolvable:$false] %s2593_s3 }
  0x52   : > { %s2595_s4 = scalar_lea.vmem %s2594_s3, 15360  ;;  %p2596_p5 = scmp.lt.s32.totalorder %s2900_s6, %s2594_s3 }
  0x53   : > { %p2591_p0 = pnand %p2589_p13, %p2575_p6  ;;  %p2597_p8 = scmp.lt.s32.totalorder %s2595_s4, %s2588_s8 }
  0x55   : > { %p2592_p2 = pneg %p2591_p0  ;;  %p2598_p12 = por %p2597_p8, %p2596_p5 }
  0x57   : > { %p2599_p1 = pnand %p2598_p12, %p2592_p2 }
  0x59   : > { %2602 = shalt.err (!%p2599_p1)
}
  0x5a   : > { %s5163_s1 = smov 8   ;;  %s5164_s26 = smov 128  }
  0x5b   : > { %2443 = dma.hbm_to_vmem [thread:$0]  (!%p2906_p4), %s2898_s17, 7680, %s2900_s6, %s2910_s23, %s5164_s26, %s5164_s26, %s5163_s1  }
  0x5c   : > { %p5165_p6 = scmp.ne.s32.totalorder %s5156_s27, 0 }
  0x5e   : > { %179 = sbr.rel (%p5165_p6) target bundleno = 440 (0x1b8), region = 28 }
  0x65   : > { %s181_s5 = sand.u32 1, %s2705_s13   ;;  %p5166_p10 = scmp.ne.s32.totalorder %s5152_s24, 0 }
  0x66   : > { %s2427_s30 = smul.u32 480, %s181_s5  ;;  %s182_s29 = scalar_lea.sflag [#allocation3], %s181_s5 }
  0x68   : > { %s185_s12 = scalar_lea.vmem [#allocation2], %s2427_s30 }
  0x69   : > { %2676 = dma.done.wait (%p5166_p10), %s182_s29, 7680  }
  0x6a   : > { %2678 = vsyncadd (%p5166_p10), %s182_s29, 4294959616  ;;  %p5167_p3 = scmp.ne.s32.totalorder %s5151_s22, 0 }
  0x6c   : > { %2680 = dma.done.wait (%p5167_p3), [#allocation6], 512  }
  0x6d   : > { %2682 = vsyncadd (%p5167_p3), [#allocation6], 4294966784  ;;  %v221_v0 = vlaneseq  ;;  %s2263_s17 = smul.u32 192, %s2713_s15  ;;  %v2973_v6 = vld [vmem:[#allocation5] sm:$0xff]  ;;  %s207_s22 = sand.u32 1, %s2693_s10  }
  0x6e   : > { %s2261_s24 = sshll.u32 %s207_s22, 7  ;;  %s2424_s7 = sshll.u32 %s2713_s15, 4 }
  0x6f   : > { %v2953_v1 = vshrl.u32 %v221_v0, 7  ;;  %s2961_s27 = scalar_lea.vmem %s185_s12, %s2263_s17 [#allocation2]  ;;  %s3412_s6 = scalar_lea.vmem [#allocation7], %s2261_s24 }
  0x70   : > { %v218_v11 = vld [vmem:[%s2961_s27] sm:$0xff]  ;;  %v219_v12 = vld [vmem:[%s2961_s27 + $0x8] sm:$0xff]  ;;  %v220_v17 = vld [vmem:[%s2961_s27 + $0x10] sm:$0xff]  ;;  %s2420_s23 = sshll.u32 %s2717_s16, 5  ;;  %s2102_s8 = sshll.u32 %s3412_s6, 4  ;;  %s4899_s8 = int_to_ptr.vmem [resolvable:$true] %s2102_s8 }
  0x71   : > { %v2956_v2 = vsub.s32 0, %v2953_v1  ;;  %v2959_v3 = vsub.s32 1, %v2953_v1  ;;  %v2964_v4 = vsub.s32 2, %v2953_v1  ;;  %v2967_v5 = vsub.s32 3, %v2953_v1  ;;  %v3024_v42 = vld [vmem:[%s2961_s27 + $0x18] sm:$0xff]  ;;  %v3036_v50 = vld [vmem:[%s2961_s27 + $0x20] sm:$0xff]  ;;  %s2099_s15 = sadd.s32 %s2424_s7, %s2420_s23 }
  0x72   : > { %vm232_vm0 = vcmp.lt.s32.totalorder %v2953_v1, 7  ;;  %vm246_vm1 = vcmp.lt.s32.totalorder %v2953_v1, 6  ;;  %vm260_vm2 = vcmp.lt.s32.totalorder %v2953_v1, 5  ;;  %vm274_vm3 = vcmp.lt.s32.totalorder %v2953_v1, 4  ;;  %v2268_v51 = vld [vmem:[%s2961_s27 + $0x28] sm:$0xff]  ;;  %s2421_s16 = sshll.u32 %s2099_s15, 7 }
  0x73   : > { %v2976_v7 = vsub.s32 4, %v2953_v1  ;;  %v2979_v8 = vsub.s32 5, %v2953_v1  ;;  %v2982_v9 = vsub.s32 6, %v2953_v1  ;;  %v2985_v10 = vsub.s32 7, %v2953_v1  ;;  %s4897_s4 = scalar_lea.hbm %s4968_s2, %s2421_s16  ;;  %s4905_s1 = scalar_lea.sflag [#allocation4], %s207_s22 }
  0x74   : > { %v2991_v13 = vrot.slane %v2973_v6, %v2956_v2  ;;  %v2995_v14 = vrot.slane %v2973_v6, %v2959_v3  ;;  %v2999_v15 = vrot.slane %v2973_v6, %v2964_v4  ;;  %v3003_v16 = vrot.slane %v2973_v6, %v2967_v5  ;;  %s2603_s26 = scalar_lea.vmem %s4899_s8, 2048  ;;  %p5402_p7 = scmp.ne.s32.totalorder %s5153_s25, 0 }
  0x75   : > { %v227_v18 = vrot.slane %v218_v11, 1  ;;  %v228_v19 = vrot.slane %v219_v12, 1  ;;  %v243_v20 = vrot.slane %v218_v11, 2  ;;  %v244_v21 = vrot.slane %v219_v12, 2  ;;  %p2604_p4 = scmp.ne.s32.totalorder %s4899_s8, %s2603_s26  ;;  %s2735_s5 = smov [#allocation7]  }
  0x76   : > { %5168 = vst [vmem:[#allocation15_spill] sm:$0xff] %v2991_v13  ;;  %v225_v22 = vmul.f32 %v2991_v13, %v218_v11  ;;  %v226_v23 = vmul.f32 %v2991_v13, %v219_v12  ;;  %v229_v24 = vrot.slane %v220_v17, 1  ;;  %v245_v25 = vrot.slane %v220_v17, 2  ;;  %s2607_s30 = sshll.u32 %s2735_s5, 4  ;;  %s2608_s30 = int_to_ptr.vmem [resolvable:$false] %s2607_s30 }
  0x77   : > { %v234_v26 = vsel %vm232_vm0, %v227_v18, %v228_v19  ;;  %v248_v27 = vsel %vm246_vm1, %v243_v20, %v244_v21  ;;  %v257_v28 = vrot.slane %v218_v11, 3  ;;  %v258_v29 = vrot.slane %v219_v12, 3  ;;  %p2605_p9 = pnand %p2604_p4, %p5402_p7  ;;  %s2609_s29 = scalar_lea.vmem %s2608_s30, 4096 }
  0x78   : > { %v233_v30 = vsel %vm232_vm0, %v228_v19, %v229_v24  ;;  %v239_v31 = vmul.f32 %v2995_v14, %v234_v26  ;;  %v247_v32 = vsel %vm246_vm1, %v244_v21, %v245_v25  ;;  %v253_v33 = vmul.f32 %v2999_v15, %v248_v27  ;;  %p2610_p13 = scmp.lt.s32.totalorder %s4899_s8, %s2608_s30  ;;  %p2611_p0 = scmp.lt.s32.totalorder %s2609_s29, %s2603_s26 }
  0x79   : > { %v240_v34 = vmul.f32 %v2995_v14, %v233_v30  ;;  %v254_v35 = vmul.f32 %v2999_v15, %v247_v32  ;;  %v259_v36 = vrot.slane %v220_v17, 3  ;;  %v262_v37 = vsel %vm260_vm2, %v257_v28, %v258_v29  ;;  %p2606_p11 = pneg %p2605_p9 }
  0x7a   : > { %v241_v38 = vadd.f32 %v239_v31, %v225_v22  ;;  %v267_v39 = vmul.f32 %v3003_v16, %v262_v37  ;;  %v271_v40 = vrot.slane %v218_v11, 4  ;;  %v272_v41 = vrot.slane %v219_v12, 4  ;;  %p2612_p2 = por %p2611_p0, %p2610_p13 }
  0x7b   : > { %v242_v43 = vadd.f32 %v240_v34, %v226_v23  ;;  %v261_v44 = vsel %vm260_vm2, %v258_v29, %v259_v36  ;;  %v273_v45 = vrot.slane %v220_v17, 4  ;;  %v3030_v46 = vrot.slane %v2973_v6, %v2976_v7  ;;  %v3071_v23 = vld [vmem:[#allocation5 + $0x8] sm:$0xff] }
  0x7c   : > { %v255_v47 = vadd.f32 %v253_v33, %v241_v38  ;;  %v268_v48 = vmul.f32 %v3003_v16, %v261_v44  ;;  %v276_v49 = vsel %vm274_vm3, %v271_v40, %v272_v41  ;;  %v3041_v52 = vrot.slane %v2973_v6, %v2979_v8  ;;  %p2613_p5 = pnand %p2612_p2, %p2606_p11 }
  0x7d   : > { %v256_v53 = vadd.f32 %v254_v35, %v242_v43  ;;  %v275_v54 = vsel %vm274_vm3, %v272_v41, %v273_v45  ;;  %v281_v55 = vmul.f32 %v3030_v46, %v276_v49  ;;  %v299_v56 = vrot.slane %v3024_v42, 1  ;;  %v3109_v45 = vld [vmem:[%s2961_s27 + $0x38] sm:$0xff] }
  0x7e   : > { %v269_v57 = vadd.f32 %v267_v39, %v255_v47  ;;  %v282_v58 = vmul.f32 %v3030_v46, %v275_v54  ;;  %v295_v59 = vmul.f32 %v3024_v42, %v3041_v52  ;;  %v296_v60 = vmul.f32 %v3036_v50, %v3041_v52  ;;  %v3098_v39 = vld [vmem:[%s2961_s27 + $0x30] sm:$0xff]  ;;  %v2273_v47 = vld [vmem:[%s2961_s27 + $0x40] sm:$0xff] }
  0x7f   : > { %v270_v61 = vadd.f32 %v268_v48, %v256_v53  ;;  %v300_v62 = vrot.slane %v3036_v50, 1  ;;  %v301_v63 = vrot.slane %v2268_v51, 1  ;;  %v3055_v0 = vrot.slane %v2973_v6, %v2982_v9 }
  0x80   : > { %v283_v11 = vadd.f32 %v281_v55, %v269_v57  ;;  %v312_v12 = vrot.slane %v3024_v42, 2  ;;  %v313_v17 = vrot.slane %v3036_v50, 2  ;;  %v314_v18 = vrot.slane %v2268_v51, 2 }
  0x81   : > { %5169 = vst [vmem:[#allocation16_spill] sm:$0xff] %v3055_v0  ;;  %v284_v19 = vadd.f32 %v282_v58, %v270_v61  ;;  %v3061_v20 = vsel %vm232_vm0, %v300_v62, %v301_v63  ;;  %v3065_v21 = vsel %vm232_vm0, %v299_v56, %v300_v62  ;;  %v3069_v22 = vrot.slane %v2973_v6, %v2985_v10 }
  0x82   : > { %v297_v24 = vadd.f32 %v295_v59, %v283_v11  ;;  %v308_v25 = vmul.f32 %v3055_v0, %v3065_v21  ;;  %v309_v26 = vmul.f32 %v3055_v0, %v3061_v20  ;;  %v3079_v27 = vsel %vm246_vm1, %v313_v17, %v314_v18 }
  0x83   : > { %5170 = vst [vmem:[#allocation17_spill] sm:$0xff] %v3069_v22  ;;  %v298_v28 = vadd.f32 %v296_v60, %v284_v19  ;;  %v3083_v29 = vsel %vm246_vm1, %v312_v12, %v313_v17  ;;  %v322_v6 = vmul.f32 %v3069_v22, %v3079_v27  ;;  %v325_v30 = vrot.slane %v3024_v42, 3 }
  0x84   : > { %v310_v31 = vadd.f32 %v308_v25, %v297_v24  ;;  %v321_v32 = vmul.f32 %v3069_v22, %v3083_v29  ;;  %v326_v33 = vrot.slane %v3036_v50, 3  ;;  %v327_v34 = vrot.slane %v2268_v51, 3 }
  0x85   : > { %v311_v35 = vadd.f32 %v309_v26, %v298_v28  ;;  %v3093_v36 = vrot.slane %v3071_v23, %v2956_v2  ;;  %v338_v37 = vrot.slane %v3024_v42, 4  ;;  %v339_v38 = vrot.slane %v3036_v50, 4 }
  0x86   : > { %v323_v40 = vadd.f32 %v321_v32, %v310_v31  ;;  %v3102_v41 = vsel %vm260_vm2, %v326_v33, %v327_v34  ;;  %v3106_v43 = vsel %vm260_vm2, %v325_v30, %v326_v33  ;;  %v340_v44 = vrot.slane %v2268_v51, 4 }
  0x87   : > { %5171 = vst [vmem:[#allocation18_spill] sm:$0xff] %v3093_v36  ;;  %v324_v48 = vadd.f32 %v322_v6, %v311_v35  ;;  %v334_v49 = vmul.f32 %v3093_v36, %v3106_v43  ;;  %v335_v53 = vmul.f32 %v3093_v36, %v3102_v41  ;;  %v3118_v54 = vsel %vm274_vm3, %v338_v37, %v339_v38 }
  0x88   : > { %v3122_v55 = vsel %vm274_vm3, %v339_v38, %v340_v44  ;;  %v3126_v51 = vrot.slane %v3071_v23, %v2959_v3  ;;  %v3130_v56 = vrot.slane %v3071_v23, %v2964_v4  ;;  %v365_v57 = vrot.slane %v3098_v39, 1 }
  0x89   : > { %v336_v58 = vadd.f32 %v334_v49, %v323_v40  ;;  %v337_v59 = vadd.f32 %v335_v53, %v324_v48  ;;  %v366_v60 = vrot.slane %v3109_v45, 1  ;;  %v367_v61 = vrot.slane %v2273_v47, 1 }
  0x8a   : > { %5172 = vst [vmem:[#allocation19_spill] sm:$0xff] %v3126_v51  ;;  %5173 = vst [vmem:[#allocation20_spill] sm:$0xff] %v3130_v56  ;;  %v347_v62 = vmul.f32 %v3126_v51, %v3118_v54  ;;  %v348_v63 = vmul.f32 %v3126_v51, %v3122_v55  ;;  %v361_v11 = vmul.f32 %v3098_v39, %v3130_v56  ;;  %v378_v24 = vrot.slane %v3098_v39, 2 }
  0x8b   : > { %v362_v12 = vmul.f32 %v3109_v45, %v3130_v56  ;;  %v3144_v17 = vsel %vm232_vm0, %v366_v60, %v367_v61  ;;  %v3148_v18 = vsel %vm232_vm0, %v365_v57, %v366_v60  ;;  %v3152_v19 = vrot.slane %v3071_v23, %v2967_v5 }
  0x8c   : > { %v349_v25 = vadd.f32 %v347_v62, %v336_v58  ;;  %v350_v26 = vadd.f32 %v348_v63, %v337_v59  ;;  %v379_v28 = vrot.slane %v3109_v45, 2  ;;  %v380_v6 = vrot.slane %v2273_v47, 2 }
  0x8d   : > { %5174 = vst [vmem:[#allocation21_spill] sm:$0xff] %v3152_v19  ;;  %v374_v30 = vmul.f32 %v3152_v19, %v3148_v18  ;;  %v375_v31 = vmul.f32 %v3152_v19, %v3144_v17  ;;  %v3162_v32 = vrot.slane %v3071_v23, %v2976_v7  ;;  %v391_v33 = vrot.slane %v3098_v39, 3 }
  0x8e   : > { %v363_v34 = vadd.f32 %v361_v11, %v349_v25  ;;  %v364_v35 = vadd.f32 %v362_v12, %v350_v26  ;;  %v3167_v37 = vsel %vm246_vm1, %v379_v28, %v380_v6  ;;  %v3171_v38 = vsel %vm246_vm1, %v378_v24, %v379_v28  ;;  %v3193_v11 = vld [vmem:[%s2961_s27 + $0x48] sm:$0xff]  ;;  %v3196_v12 = vld [vmem:[%s2961_s27 + $0x50] sm:$0xff] }
  0x8f   : > { %5175 = vst [vmem:[#allocation22_spill] sm:$0xff] %v3162_v32  ;;  %v387_v40 = vmul.f32 %v3162_v32, %v3171_v38  ;;  %v388_v44 = vmul.f32 %v3162_v32, %v3167_v37  ;;  %v392_v48 = vrot.slane %v3109_v45, 3  ;;  %v393_v49 = vrot.slane %v2273_v47, 3  ;;  %v3202_v6 = vld [vmem:[#allocation5 + $0x10] sm:$0xff] }
  0x90   : > { %v376_v53 = vadd.f32 %v374_v30, %v363_v34  ;;  %v377_v57 = vadd.f32 %v375_v31, %v364_v35  ;;  %v3180_v58 = vrot.slane %v3071_v23, %v2979_v8  ;;  %v404_v59 = vrot.slane %v3098_v39, 4 }
  0x91   : > { %v3185_v60 = vsel %vm260_vm2, %v392_v48, %v393_v49  ;;  %v3189_v61 = vsel %vm260_vm2, %v391_v33, %v392_v48  ;;  %v405_v62 = vrot.slane %v3109_v45, 4  ;;  %v406_v63 = vrot.slane %v2273_v47, 4  ;;  %v2278_v33 = vld [vmem:[%s2961_s27 + $0x58] sm:$0xff] }
  0x92   : > { %5176 = vst [vmem:[#allocation23_spill] sm:$0xff] %v3180_v58  ;;  %v389_v24 = vadd.f32 %v387_v40, %v376_v53  ;;  %v390_v25 = vadd.f32 %v388_v44, %v377_v57  ;;  %v400_v26 = vmul.f32 %v3180_v58, %v3189_v61  ;;  %v401_v28 = vmul.f32 %v3180_v58, %v3185_v60 }
  0x93   : > { %v3206_v30 = vsel %vm274_vm3, %v405_v62, %v406_v63  ;;  %v3210_v47 = vsel %vm274_vm3, %v404_v59, %v405_v62  ;;  %v3214_v31 = vrot.slane %v3071_v23, %v2982_v9  ;;  %v3219_v34 = vrot.slane %v3071_v23, %v2985_v10 }
  0x94   : > { %v402_v35 = vadd.f32 %v400_v26, %v389_v24  ;;  %v403_v40 = vadd.f32 %v401_v28, %v390_v25  ;;  %v431_v44 = vrot.slane %v3193_v11, 1  ;;  %v432_v48 = vrot.slane %v3196_v12, 1 }
  0x95   : > { %5177 = vst [vmem:[#allocation24_spill] sm:$0xff] %v3214_v31  ;;  %5178 = vst [vmem:[#allocation25_spill] sm:$0xff] %v3219_v34  ;;  %v413_v49 = vmul.f32 %v3214_v31, %v3210_v47  ;;  %v414_v53 = vmul.f32 %v3214_v31, %v3206_v30  ;;  %v427_v57 = vmul.f32 %v3193_v11, %v3219_v34  ;;  %v433_v23 = vrot.slane %v2278_v33, 1 }
  0x96   : > { %v428_v59 = vmul.f32 %v3196_v12, %v3219_v34  ;;  %v3233_v62 = vsel %vm232_vm0, %v431_v44, %v432_v48  ;;  %v3237_v63 = vrot.slane %v3202_v6, %v2956_v2  ;;  %v444_v24 = vrot.slane %v3193_v11, 2 }
  0x97   : > { %v415_v25 = vadd.f32 %v413_v49, %v402_v35  ;;  %v416_v26 = vadd.f32 %v414_v53, %v403_v40  ;;  %v445_v28 = vrot.slane %v3196_v12, 2  ;;  %v446_v31 = vrot.slane %v2278_v33, 2 }
  0x98   : > { %5179 = vst [vmem:[#allocation26_spill] sm:$0xff] %v3237_v63  ;;  %v3243_v58 = vsel %vm232_vm0, %v432_v48, %v433_v23  ;;  %v440_v34 = vmul.f32 %v3237_v63, %v3233_v62  ;;  %v3249_v44 = vrot.slane %v3202_v6, %v2959_v3  ;;  %v457_v32 = vrot.slane %v3193_v11, 3 }
  0x99   : > { %5180 = vst [vmem:[#allocation27_spill] sm:$0xff] %v3243_v58  ;;  %v429_v19 = vadd.f32 %v427_v57, %v415_v25  ;;  %v430_v35 = vadd.f32 %v428_v59, %v416_v26  ;;  %v441_v40 = vmul.f32 %v3237_v63, %v3243_v58  ;;  %v3256_v48 = vsel %vm246_vm1, %v445_v28, %v446_v31 }
  0x9a   : > { %5181 = vst [vmem:[#allocation28_spill] sm:$0xff] %v3249_v44  ;;  %5182 = vst [vmem:[#allocation29_spill] sm:$0xff] %v3256_v48  ;;  %v3260_v49 = vsel %vm246_vm1, %v444_v24, %v445_v28  ;;  %v454_v3 = vmul.f32 %v3249_v44, %v3256_v48  ;;  %v458_v53 = vrot.slane %v3196_v12, 3  ;;  %v459_v57 = vrot.slane %v2278_v33, 3  ;;  %v2283_v48 = vld [vmem:[%s2961_s27 + $0x70] sm:$0xff] }
  0x9b   : > { %5183 = vst [vmem:[#allocation30_spill] sm:$0xff] %v3260_v49  ;;  %v442_v23 = vadd.f32 %v440_v34, %v429_v19  ;;  %v443_v59 = vadd.f32 %v441_v40, %v430_v35  ;;  %v453_v25 = vmul.f32 %v3249_v44, %v3260_v49  ;;  %v3269_v31 = vrot.slane %v3202_v6, %v2964_v4  ;;  %v3282_v34 = vld [vmem:[%s2961_s27 + $0x60] sm:$0xff]  ;;  %v3285_v35 = vld [vmem:[%s2961_s27 + $0x68] sm:$0xff] }
  0x9c   : > { %v3273_v24 = vsel %vm260_vm2, %v458_v53, %v459_v57  ;;  %v3277_v26 = vsel %vm260_vm2, %v457_v32, %v458_v53  ;;  %v470_v28 = vrot.slane %v3193_v11, 4  ;;  %v471_v19 = vrot.slane %v3196_v12, 4  ;;  %5187 = vst [vmem:[#allocation34_spill] sm:$0xff] %v3282_v34 }
  0x9d   : > { %5184 = vst [vmem:[#allocation31_spill] sm:$0xff] %v3269_v31  ;;  %5185 = vst [vmem:[#allocation32_spill] sm:$0xff] %v3273_v24  ;;  %v455_v40 = vadd.f32 %v453_v25, %v442_v23  ;;  %v456_v44 = vadd.f32 %v454_v3, %v443_v59  ;;  %v466_v4 = vmul.f32 %v3269_v31, %v3277_v26  ;;  %v472_v63 = vrot.slane %v2278_v33, 4 }
  0x9e   : > { %5186 = vst [vmem:[#allocation33_spill] sm:$0xff] %v3277_v26  ;;  %v467_v57 = vmul.f32 %v3269_v31, %v3273_v24  ;;  %v3293_v32 = vsel %vm274_vm3, %v470_v28, %v471_v19  ;;  %v3297_v53 = vrot.slane %v3202_v6, %v2967_v5  ;;  %v3302_v23 = vrot.slane %v3202_v6, %v2976_v7 }
  0x9f   : > { %5188 = vst [vmem:[#allocation35_spill] sm:$0xff] %v3293_v32  ;;  %v468_v3 = vadd.f32 %v466_v4, %v455_v40  ;;  %v497_v25 = vrot.slane %v3282_v34, 1  ;;  %v498_v31 = vrot.slane %v3285_v35, 1  ;;  %v3308_v33 = vsel %vm274_vm3, %v471_v19, %v472_v63 }
  0xa0   : > { %5189 = vst [vmem:[#allocation36_spill] sm:$0xff] %v3297_v53  ;;  %5190 = vst [vmem:[#allocation37_spill] sm:$0xff] %v3302_v23  ;;  %v469_v59 = vadd.f32 %v467_v57, %v456_v44  ;;  %v479_v28 = vmul.f32 %v3297_v53, %v3293_v32  ;;  %v493_v5 = vmul.f32 %v3282_v34, %v3302_v23  ;;  %v499_v40 = vrot.slane %v2283_v48, 1 }
  0xa1   : > { %5191 = vst [vmem:[#allocation38_spill] sm:$0xff] %v3308_v33  ;;  %v494_v7 = vmul.f32 %v3285_v35, %v3302_v23  ;;  %v480_v44 = vmul.f32 %v3297_v53, %v3308_v33  ;;  %v3320_v4 = vsel %vm232_vm0, %v497_v25, %v498_v31  ;;  %v3324_v63 = vrot.slane %v3202_v6, %v2979_v8 }
  0xa2   : > { %5192 = vst [vmem:[#allocation39_spill] sm:$0xff] %v3320_v4  ;;  %v481_v19 = vadd.f32 %v479_v28, %v468_v3  ;;  %v510_v57 = vrot.slane %v3282_v34, 2  ;;  %v511_v32 = vrot.slane %v3285_v35, 2  ;;  %v512_v24 = vrot.slane %v2283_v48, 2 }
  0xa3   : > { %5193 = vst [vmem:[#allocation40_spill] sm:$0xff] %v3324_v63  ;;  %v482_v23 = vadd.f32 %v480_v44, %v469_v59  ;;  %v3330_v53 = vsel %vm232_vm0, %v498_v31, %v499_v40  ;;  %v506_v25 = vmul.f32 %v3324_v63, %v3320_v4  ;;  %v3336_v33 = vrot.slane %v3202_v6, %v2982_v9  ;;  %v215_v31 = vld [vmem:[#allocation5 + $0x18] sm:$0xff] }
  0xa4   : > { %5194 = vst [vmem:[#allocation41_spill] sm:$0xff] %v3330_v53  ;;  %v495_v8 = vadd.f32 %v493_v5, %v481_v19  ;;  %v507_v3 = vmul.f32 %v3324_v63, %v3330_v53  ;;  %v3342_v28 = vsel %vm246_vm1, %v511_v32, %v512_v24  ;;  %v3346_v59 = vsel %vm246_vm1, %v510_v57, %v511_v32 }
  0xa5   : > { %5195 = vst [vmem:[#allocation42_spill] sm:$0xff] %v3336_v33  ;;  %5196 = vst [vmem:[#allocation43_spill] sm:$0xff] %v3346_v59  ;;  %v496_v44 = vadd.f32 %v494_v7, %v482_v23  ;;  %v519_v40 = vmul.f32 %v3336_v33, %v3346_v59  ;;  %v520_v9 = vmul.f32 %v3336_v33, %v3342_v28  ;;  %v523_v5 = vrot.slane %v3282_v34, 3 }
  0xa6   : > { %v508_v19 = vadd.f32 %v506_v25, %v495_v8  ;;  %v524_v24 = vrot.slane %v3285_v35, 3  ;;  %v525_v63 = vrot.slane %v2283_v48, 3  ;;  %v3357_v32 = vrot.slane %v3202_v6, %v2985_v10 }
  0xa7   : > { %v509_v57 = vadd.f32 %v507_v3, %v496_v44  ;;  %v536_v23 = vrot.slane %v3282_v34, 4  ;;  %v537_v7 = vrot.slane %v3285_v35, 4  ;;  %v538_v59 = vrot.slane %v2283_v48, 4 }
  0xa8   : > { %v521_v53 = vadd.f32 %v519_v40, %v508_v19  ;;  %v3363_v33 = vsel %vm260_vm2, %v524_v24, %v525_v63  ;;  %v3367_v25 = vsel %vm260_vm2, %v523_v5, %v524_v24  ;;  %v3370_v8 = vrot.slane %v215_v31, %v2956_v2 }
  0xa9   : > { %5197 = vst [vmem:[#allocation44_spill] sm:$0xff] %v3367_v25  ;;  %v522_v10 = vadd.f32 %v520_v9, %v509_v57  ;;  %v532_v6 = vmul.f32 %v3357_v32, %v3367_v25  ;;  %v533_v48 = vmul.f32 %v3357_v32, %v3363_v33  ;;  %v3380_v63 = vsel %vm274_vm3, %v537_v7, %v538_v59 }
  0xaa   : > { %5198 = vst [vmem:[#allocation45_spill] sm:$0xff] %v3370_v8  ;;  %5199 = vst [vmem:[#allocation46_spill] sm:$0xff] %v3380_v63  ;;  %v3384_v3 = vsel %vm274_vm3, %v536_v23, %v537_v7  ;;  %v546_v2 = vmul.f32 %v3370_v8, %v3380_v63  ;;  %v554_v31 = vmul.f32 %v3024_v42, %v2991_v13 }
  0xab   : > { %5200 = vst [vmem:[#allocation47_spill] sm:$0xff] %v3384_v3  ;;  %v555_v44 = vmul.f32 %v3036_v50, %v2991_v13  ;;  %v534_v40 = vadd.f32 %v532_v6, %v521_v53  ;;  %v535_v9 = vadd.f32 %v533_v48, %v522_v10  ;;  %v545_v5 = vmul.f32 %v3370_v8, %v3384_v3 }
  0xac   : > { %v561_v59 = vmul.f32 %v3065_v21, %v2995_v14  ;;  %v562_v19 = vmul.f32 %v3061_v20, %v2995_v14  ;;  %v570_v24 = vmul.f32 %v3083_v29, %v2999_v15  ;;  %v571_v42 = vmul.f32 %v3079_v27, %v2999_v15 }
  0xad   : > { %v579_v50 = vmul.f32 %v3106_v43, %v3003_v16  ;;  %v547_v53 = vadd.f32 %v545_v5, %v534_v40  ;;  %v548_v57 = vadd.f32 %v546_v2, %v535_v9  ;;  %v580_v7 = vmul.f32 %v3102_v41, %v3003_v16 }
  0xae   : > { %v563_v23 = vadd.f32 %v561_v59, %v554_v31  ;;  %v564_v10 = vadd.f32 %v562_v19, %v555_v44  ;;  %v588_v21 = vmul.f32 %v3118_v54, %v3030_v46  ;;  %v589_v20 = vmul.f32 %v3122_v55, %v3030_v46 }
  0xaf   : > { %v595_v29 = vmul.f32 %v3098_v39, %v3041_v52  ;;  %549 = vst [vmem:[%s3412_s6] sm:$0xff] %v547_v53  ;;  %550 = vst [vmem:[%s3412_s6 + $0x8] sm:$0xff] %v548_v57  ;;  %v596_v41 = vmul.f32 %v3109_v45, %v3041_v52  ;;  %v604_v43 = vmul.f32 %v3148_v18, %v3055_v0  ;;  %v5202_v57 = vld [vmem:[#allocation22_spill] sm:$0xff] }
  0xb0   : > { %v572_v27 = vadd.f32 %v570_v24, %v563_v23  ;;  %v605_v54 = vmul.f32 %v3144_v17, %v3055_v0  ;;  %v573_v55 = vadd.f32 %v571_v42, %v564_v10  ;;  %v613_v6 = vmul.f32 %v3171_v38, %v3069_v22  ;;  %v5201_v24 = vld [vmem:[#allocation21_spill] sm:$0xff] }
  0xb1   : > { %v614_v48 = vmul.f32 %v3167_v37, %v3069_v22  ;;  %v622_v2 = vmul.f32 %v3189_v61, %v3093_v36  ;;  %v623_v44 = vmul.f32 %v3185_v60, %v3093_v36  ;;  %v631_v40 = vmul.f32 %v3210_v47, %v3126_v51  ;;  %v5208_v22 = vld [vmem:[#allocation38_spill] sm:$0xff] }
  0xb2   : > { %v581_v31 = vadd.f32 %v579_v50, %v572_v27  ;;  %v632_v9 = vmul.f32 %v3206_v30, %v3126_v51  ;;  %v582_v5 = vadd.f32 %v580_v7, %v573_v55  ;;  %v638_v59 = vmul.f32 %v3193_v11, %v3130_v56  ;;  %v5203_v7 = vld [vmem:[#allocation29_spill] sm:$0xff]  ;;  %v5204_v55 = vld [vmem:[#allocation23_spill] sm:$0xff] }
  0xb3   : > { %v639_v19 = vmul.f32 %v3196_v12, %v3130_v56  ;;  %v647_v42 = vmul.f32 %v3233_v62, %v5201_v24  ;;  %v3442_v53 = vmul.f32 %v3243_v58, %v5201_v24  ;;  %v3446_v23 = vmul.f32 %v3260_v49, %v5202_v57  ;;  %v5206_v24 = vld [vmem:[#allocation24_spill] sm:$0xff]  ;;  %v5207_v51 = vld [vmem:[#allocation35_spill] sm:$0xff] }
  0xb4   : > { %v590_v50 = vadd.f32 %v588_v21, %v581_v31  ;;  %v3450_v10 = vmul.f32 %v5203_v7, %v5202_v57  ;;  %v591_v27 = vadd.f32 %v589_v20, %v582_v5  ;;  %v3454_v56 = vmul.f32 %v3277_v26, %v5204_v55  ;;  %v5205_v21 = vld [vmem:[#allocation32_spill] sm:$0xff]  ;;  %v5209_v57 = vld [vmem:[#allocation25_spill] sm:$0xff]  ;;  %v3489_v7 = vld [vmem:[%s2961_s27 + $0x78] sm:$0xff] }
  0xb5   : > { %v3458_v31 = vmul.f32 %v5205_v21, %v5204_v55  ;;  %v3462_v36 = vmul.f32 %v5207_v51, %v5206_v24  ;;  %v3466_v58 = vmul.f32 %v5208_v22, %v5206_v24  ;;  %v3470_v20 = vmul.f32 %v3282_v34, %v5209_v57  ;;  %v5211_v21 = vld [vmem:[#allocation26_spill] sm:$0xff]  ;;  %v5212_v51 = vld [vmem:[#allocation41_spill] sm:$0xff]  ;;  %v5214_v24 = vld [vmem:[#allocation43_spill] sm:$0xff] }
  0xb6   : > { %v597_v49 = vadd.f32 %v595_v29, %v590_v50  ;;  %v3474_v5 = vmul.f32 %v3285_v35, %v5209_v57  ;;  %v598_v55 = vadd.f32 %v596_v41, %v591_v27  ;;  %v3478_v26 = vmul.f32 %v3320_v4, %v5211_v21  ;;  %v5213_v50 = vld [vmem:[#allocation28_spill] sm:$0xff]  ;;  %v3492_v34 = vld [vmem:[%s2961_s27 + $0x80] sm:$0xff] }
  0xb7   : > { %5210 = vst [vmem:[#allocation48_spill] sm:$0xff] %v3470_v20  ;;  %v3482_v29 = vmul.f32 %v5212_v51, %v5211_v21  ;;  %v3486_v22 = vmul.f32 %v5214_v24, %v5213_v50  ;;  %v3496_v41 = vmul.f32 %v3342_v28, %v5213_v50  ;;  %v5216_v27 = vld [vmem:[#allocation31_spill] sm:$0xff]  ;;  %v2300_v51 = vld [vmem:[%s2961_s27 + $0x88] sm:$0xff] }
  0xb8   : > { %v606_v20 = vadd.f32 %v604_v43, %v597_v49  ;;  %v3500_v57 = vmul.f32 %v3367_v25, %v5216_v27  ;;  %v3504_v21 = vmul.f32 %v3363_v33, %v5216_v27  ;;  %v607_v24 = vadd.f32 %v605_v54, %v598_v55  ;;  %v5221_v43 = vld [vmem:[#allocation37_spill] sm:$0xff] }
  0xb9   : > { %5215 = vst [vmem:[#allocation49_spill] sm:$0xff] %v3486_v22  ;;  %v5218_v22 = vld [vmem:[#allocation36_spill] sm:$0xff]  ;;  %v3517_v50 = vmul.f32 %v3489_v7, %v5221_v43  ;;  %v731_v27 = vrot.slane %v3489_v7, 1  ;;  %v732_v54 = vrot.slane %v3492_v34, 1 }
  0xba   : > { %5217 = vst [vmem:[#allocation50_spill] sm:$0xff] %v3500_v57  ;;  %v3509_v4 = vmul.f32 %v3384_v3, %v5218_v22  ;;  %v3513_v49 = vmul.f32 %v3380_v63, %v5218_v22  ;;  %v615_v25 = vadd.f32 %v613_v6, %v606_v20  ;;  %v3521_v57 = vmul.f32 %v3492_v34, %v5221_v43 }
  0xbb   : > { %5222 = vst [vmem:[#allocation53_spill] sm:$0xff] %v3517_v50  ;;  %v616_v55 = vadd.f32 %v614_v48, %v607_v24  ;;  %v733_v3 = vrot.slane %v2300_v51, 1  ;;  %v741_v22 = vrot.slane %v3492_v34, 2  ;;  %v3529_v63 = vsel %vm232_vm0, %v731_v27, %v732_v54  ;;  %v5224_v50 = vld [vmem:[#allocation40_spill] sm:$0xff]  ;;  %v5228_v27 = vld [vmem:[#allocation42_spill] sm:$0xff] }
  0xbc   : > { %5219 = vst [vmem:[#allocation51_spill] sm:$0xff] %v3509_v4  ;;  %5220 = vst [vmem:[#allocation52_spill] sm:$0xff] %v3513_v49  ;;  %v740_v4 = vrot.slane %v3489_v7, 2  ;;  %v624_v49 = vadd.f32 %v622_v2, %v615_v25  ;;  %v742_v6 = vrot.slane %v2300_v51, 2  ;;  %v749_v20 = vrot.slane %v3489_v7, 3 }
  0xbd   : > { %5223 = vst [vmem:[#allocation54_spill] sm:$0xff] %v3521_v57  ;;  %v625_v43 = vadd.f32 %v623_v44, %v616_v55  ;;  %v3534_v57 = vsel %vm232_vm0, %v732_v54, %v733_v3  ;;  %v3538_v48 = vmul.f32 %v3529_v63, %v5224_v50 }
  0xbe   : > { %v3542_v24 = vsel %vm246_vm1, %v740_v4, %v741_v22  ;;  %v633_v25 = vadd.f32 %v631_v40, %v624_v49  ;;  %v3546_v2 = vmul.f32 %v3534_v57, %v5224_v50  ;;  %v3550_v44 = vsel %vm246_vm1, %v741_v22, %v742_v6 }
  0xbf   : > { %5225 = vst [vmem:[#allocation55_spill] sm:$0xff] %v3538_v48  ;;  %5227 = vst [vmem:[#allocation57_spill] sm:$0xff] %v3550_v44  ;;  %v3554_v3 = vmul.f32 %v3542_v24, %v5228_v27  ;;  %v634_v54 = vadd.f32 %v632_v9, %v625_v43  ;;  %v3558_v55 = vmul.f32 %v3550_v44, %v5228_v27  ;;  %v750_v4 = vrot.slane %v3492_v34, 3 }
  0xc0   : > { %5226 = vst [vmem:[#allocation56_spill] sm:$0xff] %v3546_v2  ;;  %v751_v40 = vrot.slane %v2300_v51, 3  ;;  %v640_v49 = vadd.f32 %v638_v59, %v633_v25  ;;  %v758_v50 = vrot.slane %v3489_v7, 4  ;;  %v759_v2 = vrot.slane %v3492_v34, 4 }
  0xc1   : > { %v760_v48 = vrot.slane %v2300_v51, 4  ;;  %v641_v22 = vadd.f32 %v639_v19, %v634_v54  ;;  %v3569_v9 = vsel %vm260_vm2, %v749_v20, %v750_v4  ;;  %v773_v43 = vmul.f32 %v3098_v39, %v2991_v13 }
  0xc2   : > { %v3565_v6 = vsel %vm260_vm2, %v750_v4, %v751_v40  ;;  %5230 = vst [vmem:[#allocation59_spill] sm:$0xff] %v3569_v9  ;;  %v649_v27 = vadd.f32 %v647_v42, %v640_v49  ;;  %v3575_v59 = vmul.f32 %v3569_v9, %v3357_v32  ;;  %v3588_v20 = vsel %vm274_vm3, %v758_v50, %v759_v2 }
  0xc3   : > { %5229 = vst [vmem:[#allocation58_spill] sm:$0xff] %v3565_v6  ;;  %v3579_v51 = vmul.f32 %v3565_v6, %v3357_v32  ;;  %v3583_v19 = vsel %vm274_vm3, %v759_v2, %v760_v48  ;;  %v650_v25 = vadd.f32 %v3442_v53, %v641_v22  ;;  %5232 = vst [vmem:[#allocation61_spill] sm:$0xff] %v3588_v20 }
  0xc4   : > { %5231 = vst [vmem:[#allocation60_spill] sm:$0xff] %v3583_v19  ;;  %v3592_v39 = vmul.f32 %v3583_v19, %v3370_v8  ;;  %v774_v42 = vmul.f32 %v3109_v45, %v2991_v13  ;;  %v658_v54 = vadd.f32 %v3446_v23, %v649_v27  ;;  %v3599_v4 = vmul.f32 %v3588_v20, %v3370_v8 }
  0xc5   : > { %v780_v53 = vmul.f32 %v3148_v18, %v2995_v14  ;;  %v781_v50 = vmul.f32 %v3144_v17, %v2995_v14  ;;  %v659_v48 = vadd.f32 %v3450_v10, %v650_v25  ;;  %v789_v2 = vmul.f32 %v3171_v38, %v2999_v15 }
  0xc6   : > { %v790_v45 = vmul.f32 %v3167_v37, %v2999_v15  ;;  %v798_v23 = vmul.f32 %v3189_v61, %v3003_v16  ;;  %v667_v27 = vadd.f32 %v3454_v56, %v658_v54  ;;  %v799_v18 = vmul.f32 %v3185_v60, %v3003_v16 }
  0xc7   : > { %v782_v40 = vadd.f32 %v780_v53, %v773_v43  ;;  %v783_v49 = vadd.f32 %v781_v50, %v774_v42  ;;  %v668_v17 = vadd.f32 %v3458_v31, %v659_v48  ;;  %v807_v10 = vmul.f32 %v3210_v47, %v3030_v46  ;;  %v5233_v47 = vld [vmem:[#allocation27_spill] sm:$0xff]  ;;  %v5234_v42 = vld [vmem:[#allocation17_spill] sm:$0xff]  ;;  %v5236_v53 = vld [vmem:[#allocation48_spill] sm:$0xff] }
  0xc8   : > { %v808_v38 = vmul.f32 %v3206_v30, %v3030_v46  ;;  %v814_v37 = vmul.f32 %v3193_v11, %v3041_v52  ;;  %v676_v61 = vadd.f32 %v3462_v36, %v667_v27  ;;  %v815_v43 = vmul.f32 %v3196_v12, %v3041_v52  ;;  %v5235_v30 = vld [vmem:[#allocation30_spill] sm:$0xff]  ;;  %v5237_v48 = vld [vmem:[#allocation29_spill] sm:$0xff] }
  0xc9   : > { %v791_v22 = vadd.f32 %v789_v2, %v782_v40  ;;  %v792_v56 = vadd.f32 %v790_v45, %v783_v49  ;;  %v677_v60 = vadd.f32 %v3466_v58, %v668_v17  ;;  %v823_v31 = vmul.f32 %v3233_v62, %v3055_v0  ;;  %v5238_v45 = vld [vmem:[#allocation18_spill] sm:$0xff]  ;;  %v5239_v58 = vld [vmem:[#allocation33_spill] sm:$0xff]  ;;  %v5240_v62 = vld [vmem:[#allocation32_spill] sm:$0xff] }
  0xca   : > { %v824_v25 = vmul.f32 %v5233_v47, %v3055_v0  ;;  %v832_v54 = vmul.f32 %v5235_v30, %v5234_v42  ;;  %v683_v11 = vadd.f32 %v5236_v53, %v676_v61  ;;  %v833_v2 = vmul.f32 %v5237_v48, %v5234_v42  ;;  %v5241_v49 = vld [vmem:[#allocation19_spill] sm:$0xff]  ;;  %v5246_v48 = vld [vmem:[#allocation21_spill] sm:$0xff] }
  0xcb   : > { %v800_v50 = vadd.f32 %v798_v23, %v791_v22  ;;  %v801_v36 = vadd.f32 %v799_v18, %v792_v56  ;;  %v684_v12 = vadd.f32 %v3474_v5, %v677_v60  ;;  %v841_v27 = vmul.f32 %v5239_v58, %v5238_v45  ;;  %v5242_v17 = vld [vmem:[#allocation35_spill] sm:$0xff]  ;;  %v5243_v23 = vld [vmem:[#allocation38_spill] sm:$0xff]  ;;  %v5244_v56 = vld [vmem:[#allocation20_spill] sm:$0xff] }
  0xcc   : > { %v842_v40 = vmul.f32 %v5240_v62, %v5238_v45  ;;  %v850_v47 = vmul.f32 %v5242_v17, %v5241_v49  ;;  %v692_v30 = vadd.f32 %v3478_v26, %v683_v11  ;;  %v851_v18 = vmul.f32 %v5243_v23, %v5241_v49  ;;  %v5245_v5 = vld [vmem:[#allocation34_spill] sm:$0xff]  ;;  %v5247_v58 = vld [vmem:[#allocation39_spill] sm:$0xff]  ;;  %v5248_v45 = vld [vmem:[#allocation49_spill] sm:$0xff] }
  0xcd   : > { %v809_v0 = vadd.f32 %v807_v10, %v800_v50  ;;  %v810_v61 = vadd.f32 %v808_v38, %v801_v36  ;;  %v693_v22 = vadd.f32 %v3482_v29, %v684_v12  ;;  %v857_v60 = vmul.f32 %v5245_v5, %v5244_v56  ;;  %v5249_v10 = vld [vmem:[#allocation41_spill] sm:$0xff]  ;;  %v5250_v50 = vld [vmem:[#allocation22_spill] sm:$0xff]  ;;  %v5251_v29 = vld [vmem:[#allocation43_spill] sm:$0xff] }
  0xce   : > { %v858_v53 = vmul.f32 %v3285_v35, %v5244_v56  ;;  %v866_v62 = vmul.f32 %v5247_v58, %v5246_v48  ;;  %v701_v17 = vadd.f32 %v5248_v45, %v692_v30  ;;  %v867_v38 = vmul.f32 %v5249_v10, %v5246_v48  ;;  %v5252_v23 = vld [vmem:[#allocation23_spill] sm:$0xff]  ;;  %v5253_v35 = vld [vmem:[#allocation44_spill] sm:$0xff]  ;;  %v5254_v49 = vld [vmem:[#allocation50_spill] sm:$0xff] }
  0xcf   : > { %v816_v42 = vadd.f32 %v814_v37, %v809_v0  ;;  %v817_v26 = vadd.f32 %v815_v43, %v810_v61  ;;  %v702_v11 = vadd.f32 %v3496_v41, %v693_v22  ;;  %v875_v36 = vmul.f32 %v5251_v29, %v5250_v50  ;;  %v5255_v43 = vld [vmem:[#allocation24_spill] sm:$0xff]  ;;  %v5256_v41 = vld [vmem:[#allocation47_spill] sm:$0xff]  ;;  %v5257_v61 = vld [vmem:[#allocation46_spill] sm:$0xff] }
  0xd0   : > { %v876_v12 = vmul.f32 %v3342_v28, %v5250_v50  ;;  %v884_v5 = vmul.f32 %v5253_v35, %v5252_v23  ;;  %v710_v58 = vadd.f32 %v5254_v49, %v701_v17  ;;  %v885_v0 = vmul.f32 %v3363_v33, %v5252_v23  ;;  %v5258_v22 = vld [vmem:[#allocation25_spill] sm:$0xff]  ;;  %v5260_v49 = vld [vmem:[#allocation52_spill] sm:$0xff] }
  0xd1   : > { %v825_v56 = vadd.f32 %v823_v31, %v816_v42  ;;  %v826_v45 = vadd.f32 %v824_v25, %v817_v26  ;;  %v711_v37 = vadd.f32 %v3504_v21, %v702_v11  ;;  %v3668_v30 = vmul.f32 %v5256_v41, %v5255_v43  ;;  %v5259_v31 = vld [vmem:[#allocation51_spill] sm:$0xff]  ;;  %v5261_v26 = vld [vmem:[#allocation26_spill] sm:$0xff]  ;;  %v5262_v35 = vld [vmem:[#allocation28_spill] sm:$0xff] }
  0xd2   : > { %v3672_v28 = vmul.f32 %v5257_v61, %v5255_v43  ;;  %v3676_v10 = vmul.f32 %v3489_v7, %v5258_v22  ;;  %v719_v25 = vadd.f32 %v5259_v31, %v710_v58  ;;  %v3681_v21 = vmul.f32 %v3492_v34, %v5258_v22  ;;  %v3702_v41 = vld [vmem:[%s2961_s27 + $0x90] sm:$0xff]  ;;  %v5264_v61 = vld [vmem:[#allocation54_spill] sm:$0xff]  ;;  %v5266_v43 = vld [vmem:[#allocation36_spill] sm:$0xff] }
  0xd3   : > { %v834_v42 = vadd.f32 %v832_v54, %v825_v56  ;;  %v835_v33 = vadd.f32 %v833_v2, %v826_v45  ;;  %v720_v17 = vadd.f32 %v5260_v49, %v711_v37  ;;  %v3686_v11 = vmul.f32 %v3529_v63, %v5261_v26  ;;  %v5263_v2 = vld [vmem:[#allocation53_spill] sm:$0xff]  ;;  %v5265_v49 = vld [vmem:[#allocation31_spill] sm:$0xff] }
  0xd4   : > { %v3690_v29 = vmul.f32 %v3534_v57, %v5261_v26  ;;  %v3694_v54 = vmul.f32 %v3542_v24, %v5262_v35  ;;  %v729_v56 = vadd.f32 %v5263_v2, %v719_v25  ;;  %v3699_v37 = vmul.f32 %v3550_v44, %v5262_v35  ;;  %v5267_v25 = vld [vmem:[#allocation55_spill] sm:$0xff]  ;;  %v5268_v35 = vld [vmem:[#allocation56_spill] sm:$0xff]  ;;  %v5269_v23 = vld [vmem:[#allocation37_spill] sm:$0xff] }
  0xd5   : > { %v843_v58 = vadd.f32 %v841_v27, %v834_v42  ;;  %v844_v45 = vadd.f32 %v842_v40, %v835_v33  ;;  %v730_v31 = vadd.f32 %v5264_v61, %v720_v17  ;;  %v3707_v26 = vmul.f32 %v3569_v9, %v5265_v49  ;;  %v3718_v40 = vld [vmem:[%s2961_s27 + $0x98] sm:$0xff]  ;;  %v2319_v61 = vld [vmem:[%s2961_s27 + $0xa0] sm:$0xff] }
  0xd6   : > { %v3711_v22 = vmul.f32 %v3565_v6, %v5265_v49  ;;  %v3715_v27 = vmul.f32 %v3588_v20, %v5266_v43  ;;  %v738_v42 = vadd.f32 %v5267_v25, %v729_v56  ;;  %v3723_v17 = vmul.f32 %v3583_v19, %v5266_v43 }
  0xd7   : > { %v852_v33 = vadd.f32 %v850_v47, %v843_v58  ;;  %v853_v2 = vadd.f32 %v851_v18, %v844_v45  ;;  %v739_v9 = vadd.f32 %v5268_v35, %v730_v31  ;;  %v3729_v49 = vmul.f32 %v3702_v41, %v5269_v23 }
  0xd8   : > { %v3733_v20 = vmul.f32 %v3718_v40, %v5269_v23  ;;  %v950_v6 = vrot.slane %v3702_v41, 1  ;;  %v747_v47 = vadd.f32 %v3554_v3, %v738_v42  ;;  %v951_v58 = vrot.slane %v3718_v40, 1 }
  0xd9   : > { %v859_v18 = vadd.f32 %v857_v60, %v852_v33  ;;  %v860_v56 = vadd.f32 %v858_v53, %v853_v2  ;;  %v748_v45 = vadd.f32 %v3558_v55, %v739_v9  ;;  %v952_v25 = vrot.slane %v2319_v61, 1  ;;  %v5272_v55 = vld [vmem:[#allocation40_spill] sm:$0xff] }
  0xda   : > { %v959_v35 = vrot.slane %v3702_v41, 2  ;;  %v960_v31 = vrot.slane %v3718_v40, 2  ;;  %v756_v43 = vadd.f32 %v3575_v59, %v747_v47  ;;  %v3744_v44 = vsel %vm232_vm0, %v950_v6, %v951_v58 }
  0xdb   : > { %v868_v23 = vadd.f32 %v866_v62, %v859_v18  ;;  %v869_v19 = vadd.f32 %v867_v38, %v860_v56  ;;  %5270 = vst [vmem:[#allocation27_spill] sm:$0xff] %v3744_v44  ;;  %v757_v3 = vadd.f32 %v3579_v51, %v748_v45  ;;  %v3749_v60 = vsel %vm232_vm0, %v951_v58, %v952_v25  ;;  %v2322_v56 = vld [vmem:[%s2961_s27 + $0x48] sm:$0xff]  ;;  %v3787_v45 = vld [vmem:[%s2961_s27 + $0x50] sm:$0xff] }
  0xdc   : > { %5271 = vst [vmem:[#allocation30_spill] sm:$0xff] %v3749_v60  ;;  %v3753_v9 = vmul.f32 %v3744_v44, %v5272_v55  ;;  %v961_v53 = vrot.slane %v2319_v61, 2  ;;  %v765_v59 = vadd.f32 %v3599_v4, %v756_v43  ;;  %v3758_v6 = vmul.f32 %v3749_v60, %v5272_v55 }
  0xdd   : > { %v877_v62 = vadd.f32 %v875_v36, %v868_v23  ;;  %v878_v38 = vadd.f32 %v876_v12, %v869_v19  ;;  %v766_v51 = vadd.f32 %v3592_v39, %v757_v3  ;;  %v3767_v33 = vsel %vm246_vm1, %v959_v35, %v960_v31  ;;  %v5275_v12 = vld [vmem:[#allocation42_spill] sm:$0xff] }
  0xde   : > { %v3763_v42 = vsel %vm246_vm1, %v960_v31, %v961_v53  ;;  %5274 = vst [vmem:[#allocation29_spill] sm:$0xff] %v3767_v33  ;;  %v968_v4 = vrot.slane %v3702_v41, 3  ;;  %2301 = vst [vmem:[%s3412_s6 + $0x10] sm:$0xff] %v765_v59  ;;  %v3773_v23 = vmul.f32 %v3767_v33, %v5275_v12  ;;  %v969_v43 = vrot.slane %v3718_v40, 3 }
  0xdf   : > { %5273 = vst [vmem:[#allocation48_spill] sm:$0xff] %v3763_v42  ;;  %v886_v19 = vadd.f32 %v884_v5, %v877_v62  ;;  %v887_v36 = vadd.f32 %v885_v0, %v878_v38  ;;  %v3777_v39 = vmul.f32 %v3763_v42, %v5275_v12  ;;  %2302 = vst [vmem:[%s3412_s6 + $0x18] sm:$0xff] %v766_v51  ;;  %v970_v2 = vrot.slane %v2319_v61, 3 }
  0xe0   : > { %v977_v47 = vrot.slane %v3702_v41, 4  ;;  %v978_v18 = vrot.slane %v3718_v40, 4  ;;  %v979_v58 = vrot.slane %v2319_v61, 4  ;;  %v992_v25 = vmul.f32 %v2322_v56, %v2991_v13 }
  0xe1   : > { %v895_v5 = vadd.f32 %v3668_v30, %v886_v19  ;;  %v896_v0 = vadd.f32 %v3672_v28, %v887_v36  ;;  %v3792_v35 = vsel %vm260_vm2, %v969_v43, %v970_v2  ;;  %v3796_v31 = vsel %vm260_vm2, %v968_v4, %v969_v43  ;;  %v2324_v30 = vld [vmem:[%s2961_s27 + $0x58] sm:$0xff] }
  0xe2   : > { %5276 = vst [vmem:[#allocation33_spill] sm:$0xff] %v3792_v35  ;;  %5277 = vst [vmem:[#allocation32_spill] sm:$0xff] %v3796_v31  ;;  %v3800_v3 = vsel %vm274_vm3, %v977_v47, %v978_v18  ;;  %v993_v28 = vmul.f32 %v3787_v45, %v2991_v13  ;;  %v3809_v59 = vmul.f32 %v3796_v31, %v3357_v32  ;;  %v994_v4 = vrot.slane %v2322_v56, 1 }
  0xe3   : > { %5278 = vst [vmem:[#allocation35_spill] sm:$0xff] %v3800_v3  ;;  %v902_v61 = vadd.f32 %v3676_v10, %v895_v5  ;;  %v903_v53 = vadd.f32 %v3681_v21, %v896_v0  ;;  %v3813_v62 = vmul.f32 %v3792_v35, %v3357_v32  ;;  %v3817_v38 = vsel %vm274_vm3, %v978_v18, %v979_v58 }
  0xe4   : > { %5279 = vst [vmem:[#allocation38_spill] sm:$0xff] %v3817_v38  ;;  %v3821_v51 = vmul.f32 %v3800_v3, %v3370_v8  ;;  %v995_v10 = vrot.slane %v3787_v45, 1  ;;  %v3828_v36 = vmul.f32 %v3817_v38, %v3370_v8  ;;  %v996_v43 = vrot.slane %v2324_v30, 1 }
  0xe5   : > { %v911_v21 = vadd.f32 %v3686_v11, %v902_v61  ;;  %v912_v19 = vadd.f32 %v3690_v29, %v903_v53  ;;  %v1003_v47 = vrot.slane %v2322_v56, 2  ;;  %v1004_v18 = vrot.slane %v3787_v45, 2 }
  0xe6   : > { %v998_v2 = vsel %vm232_vm0, %v994_v4, %v995_v10  ;;  %v1005_v5 = vrot.slane %v2324_v30, 2  ;;  %v997_v11 = vsel %vm232_vm0, %v995_v10, %v996_v43  ;;  %v1012_v8 = vrot.slane %v2322_v56, 3 }
  0xe7   : > { %v920_v0 = vadd.f32 %v3694_v54, %v911_v21  ;;  %v921_v58 = vadd.f32 %v3699_v37, %v912_v19  ;;  %v999_v29 = vmul.f32 %v998_v2, %v2995_v14  ;;  %v1000_v61 = vmul.f32 %v997_v11, %v2995_v14 }
  0xe8   : > { %v1006_v53 = vsel %vm246_vm1, %v1004_v18, %v1005_v5  ;;  %v1007_v4 = vsel %vm246_vm1, %v1003_v47, %v1004_v18  ;;  %v1013_v43 = vrot.slane %v3787_v45, 3  ;;  %v1014_v2 = vrot.slane %v2324_v30, 3 }
  0xe9   : > { %v929_v13 = vadd.f32 %v3707_v26, %v920_v0  ;;  %v930_v54 = vadd.f32 %v3711_v22, %v921_v58  ;;  %v1001_v21 = vadd.f32 %v999_v29, %v992_v25  ;;  %v1008_v37 = vmul.f32 %v1007_v4, %v2999_v15 }
  0xea   : > { %v1002_v19 = vadd.f32 %v1000_v61, %v993_v28  ;;  %v1009_v10 = vmul.f32 %v1006_v53, %v2999_v15  ;;  %v1021_v26 = vrot.slane %v2322_v56, 4  ;;  %v1015_v22 = vsel %vm260_vm2, %v1013_v43, %v1014_v2  ;;  %v3863_v56 = vld [vmem:[%s2961_s27 + $0x68] sm:$0xff]  ;;  %v2327_v53 = vld [vmem:[%s2961_s27 + $0x70] sm:$0xff] }
  0xeb   : > { %v938_v5 = vadd.f32 %v3715_v27, %v929_v13  ;;  %v939_v47 = vadd.f32 %v3723_v17, %v930_v54  ;;  %v1010_v18 = vadd.f32 %v1008_v37, %v1001_v21  ;;  %v1016_v25 = vsel %vm260_vm2, %v1012_v8, %v1013_v43  ;;  %v3860_v17 = vld [vmem:[%s2961_s27 + $0x60] sm:$0xff] }
  0xec   : > { %v1011_v0 = vadd.f32 %v1009_v10, %v1002_v19  ;;  %v1022_v28 = vrot.slane %v3787_v45, 4  ;;  %v1017_v13 = vmul.f32 %v1016_v25, %v3003_v16  ;;  %v1018_v27 = vmul.f32 %v1015_v22, %v3003_v16  ;;  %v5280_v25 = vld [vmem:[#allocation16_spill] sm:$0xff] }
  0xed   : > { %v948_v58 = vadd.f32 %v3729_v49, %v938_v5  ;;  %v949_v11 = vadd.f32 %v3733_v20, %v939_v47  ;;  %v1023_v29 = vrot.slane %v2324_v30, 4  ;;  %v1033_v8 = vmul.f32 %v3860_v17, %v3041_v52 }
  0xee   : > { %v1025_v61 = vsel %vm274_vm3, %v1021_v26, %v1022_v28  ;;  %v1034_v49 = vmul.f32 %v3863_v56, %v3041_v52  ;;  %v1019_v4 = vadd.f32 %v1017_v13, %v1010_v18  ;;  %v1020_v54 = vadd.f32 %v1018_v27, %v1011_v0 }
  0xef   : > { %v957_v20 = vadd.f32 %v3753_v9, %v948_v58  ;;  %v958_v45 = vadd.f32 %v3758_v6, %v949_v11  ;;  %v1024_v21 = vsel %vm274_vm3, %v1022_v28, %v1023_v29  ;;  %v1026_v30 = vmul.f32 %v1025_v61, %v3030_v46 }
  0xf0   : > { %v1037_v37 = vrot.slane %v3860_v17, 1  ;;  %v1038_v19 = vrot.slane %v3863_v56, 1  ;;  %v1027_v2 = vmul.f32 %v1024_v21, %v3030_v46  ;;  %v1039_v9 = vrot.slane %v2327_v53, 1 }
  0xf1   : > { %v966_v10 = vadd.f32 %v3773_v23, %v957_v20  ;;  %v967_v43 = vadd.f32 %v3777_v39, %v958_v45  ;;  %v1028_v5 = vadd.f32 %v1026_v30, %v1019_v4  ;;  %v1046_v47 = vrot.slane %v3860_v17, 2 }
  0xf2   : > { %v3884_v6 = vsel %vm232_vm0, %v1037_v37, %v1038_v19  ;;  %v1047_v18 = vrot.slane %v3863_v56, 2  ;;  %v1029_v23 = vadd.f32 %v1027_v2, %v1020_v54  ;;  %v3892_v39 = vsel %vm232_vm0, %v1038_v19, %v1039_v9  ;;  %v5282_v2 = vld [vmem:[#allocation20_spill] sm:$0xff] }
  0xf3   : > { %v975_v26 = vadd.f32 %v3809_v59, %v966_v10  ;;  %v976_v0 = vadd.f32 %v3813_v62, %v967_v43  ;;  %v1035_v22 = vadd.f32 %v1033_v8, %v1028_v5  ;;  %v1042_v28 = vmul.f32 %v3884_v6, %v5280_v25  ;;  %v5281_v8 = vld [vmem:[#allocation17_spill] sm:$0xff]  ;;  %v5283_v5 = vld [vmem:[#allocation18_spill] sm:$0xff] }
  0xf4   : > { %v1043_v58 = vmul.f32 %v3892_v39, %v5280_v25  ;;  %v1048_v11 = vrot.slane %v2327_v53, 2  ;;  %v1036_v27 = vadd.f32 %v1034_v49, %v1029_v23  ;;  %v3902_v62 = vsel %vm246_vm1, %v1046_v47, %v1047_v18 }
  0xf5   : > { %v984_v13 = vadd.f32 %v3821_v51, %v975_v26  ;;  %v985_v59 = vadd.f32 %v3828_v36, %v976_v0  ;;  %v1044_v29 = vadd.f32 %v1042_v28, %v1035_v22  ;;  %v1051_v20 = vmul.f32 %v3902_v62, %v5281_v8  ;;  %v5284_v0 = vld [vmem:[#allocation19_spill] sm:$0xff] }
  0xf6   : > { %v3906_v61 = vsel %vm246_vm1, %v1047_v18, %v1048_v11  ;;  %v1055_v45 = vrot.slane %v3860_v17, 3  ;;  %v1045_v51 = vadd.f32 %v1043_v58, %v1036_v27  ;;  %v1056_v49 = vrot.slane %v3863_v56, 3  ;;  %v5285_v27 = vld [vmem:[#allocation57_spill] sm:$0xff] }
  0xf7   : > { %2320 = vst [vmem:[%s3412_s6 + $0x20] sm:$0xff] %v984_v13  ;;  %2321 = vst [vmem:[%s3412_s6 + $0x28] sm:$0xff] %v985_v59  ;;  %v1052_v36 = vmul.f32 %v3906_v61, %v5281_v8  ;;  %v1057_v4 = vrot.slane %v2327_v53, 3  ;;  %v1053_v54 = vadd.f32 %v1051_v20, %v1044_v29  ;;  %v1064_v21 = vrot.slane %v3860_v17, 4  ;;  %v5286_v20 = vld [vmem:[#allocation23_spill] sm:$0xff] }
  0xf8   : > { %v1065_v30 = vrot.slane %v3863_v56, 4  ;;  %v1066_v37 = vrot.slane %v2327_v53, 4  ;;  %v3924_v43 = vsel %vm260_vm2, %v1055_v45, %v1056_v49  ;;  %v1076_v9 = vmul.f32 %v3489_v7, %v5282_v2  ;;  %v5287_v45 = vld [vmem:[#allocation59_spill] sm:$0xff] }
  0xf9   : > { %v1054_v19 = vadd.f32 %v1052_v36, %v1045_v51  ;;  %v3920_v10 = vsel %vm260_vm2, %v1056_v49, %v1057_v4  ;;  %v1060_v47 = vmul.f32 %v3924_v43, %v5283_v5  ;;  %v1077_v22 = vmul.f32 %v3492_v34, %v5282_v2  ;;  %v5288_v34 = vld [vmem:[#allocation58_spill] sm:$0xff]  ;;  %v5290_v49 = vld [vmem:[#allocation61_spill] sm:$0xff] }
  0xfa   : > { %v1061_v18 = vmul.f32 %v3920_v10, %v5283_v5  ;;  %v3934_v53 = vsel %vm274_vm3, %v1065_v30, %v1066_v37  ;;  %v3938_v26 = vsel %vm274_vm3, %v1064_v21, %v1065_v30  ;;  %v1085_v28 = vmul.f32 %v3529_v63, %v5246_v48  ;;  %v5289_v63 = vld [vmem:[#allocation24_spill] sm:$0xff] }
  0xfb   : > { %v1069_v23 = vmul.f32 %v3938_v26, %v5284_v0  ;;  %v1070_v7 = vmul.f32 %v3934_v53, %v5284_v0  ;;  %v1062_v58 = vadd.f32 %v1060_v47, %v1053_v54  ;;  %v1086_v13 = vmul.f32 %v3534_v57, %v5246_v48  ;;  %v5291_v57 = vld [vmem:[#allocation60_spill] sm:$0xff]  ;;  %v5293_v47 = vld [vmem:[#allocation26_spill] sm:$0xff] }
  0xfc   : > { %v1063_v11 = vadd.f32 %v1061_v18, %v1054_v19  ;;  %v1094_v59 = vmul.f32 %v3542_v24, %v5250_v50  ;;  %v1095_v29 = vmul.f32 %v5285_v27, %v5250_v50  ;;  %v1103_v51 = vmul.f32 %v5287_v45, %v5286_v20  ;;  %v5292_v24 = vld [vmem:[#allocation25_spill] sm:$0xff]  ;;  %v5294_v45 = vld [vmem:[#allocation28_spill] sm:$0xff] }
  0xfd   : > { %v1104_v36 = vmul.f32 %v5288_v34, %v5286_v20  ;;  %v1112_v4 = vmul.f32 %v5290_v49, %v5289_v63  ;;  %v1071_v54 = vadd.f32 %v1069_v23, %v1062_v58  ;;  %v1113_v30 = vmul.f32 %v5291_v57, %v5289_v63  ;;  %v3973_v23 = vld [vmem:[%s2961_s27 + $0xa8] sm:$0xff]  ;;  %v5295_v49 = vld [vmem:[#allocation31_spill] sm:$0xff]  ;;  %v2338_v63 = vld [vmem:[%s2961_s27 + $0xb8] sm:$0xff] }
  0xfe   : > { %v1072_v21 = vadd.f32 %v1070_v7, %v1063_v11  ;;  %v1119_v37 = vmul.f32 %v3702_v41, %v5292_v24  ;;  %v1120_v19 = vmul.f32 %v3718_v40, %v5292_v24  ;;  %v1128_v18 = vmul.f32 %v3744_v44, %v5293_v47  ;;  %v3982_v24 = vld [vmem:[%s2961_s27 + $0xb0] sm:$0xff]  ;;  %v5296_v20 = vld [vmem:[#allocation36_spill] sm:$0xff] }
  0xff   : > { %v1129_v27 = vmul.f32 %v3749_v60, %v5293_v47  ;;  %v1137_v34 = vmul.f32 %v3767_v33, %v5294_v45  ;;  %v1078_v7 = vadd.f32 %v1076_v9, %v1071_v54  ;;  %v1138_v11 = vmul.f32 %v3763_v42, %v5294_v45 }
 0x100   : > { %v1079_v58 = vadd.f32 %v1077_v22, %v1072_v21  ;;  %v3979_v57 = vmul.f32 %v3796_v31, %v5295_v49  ;;  %v3987_v47 = vmul.f32 %v3792_v35, %v5295_v49  ;;  %v3991_v33 = vmul.f32 %v3800_v3, %v5296_v20  ;;  %v5297_v22 = vld [vmem:[#allocation37_spill] sm:$0xff] }
 0x101   : > { %v3995_v9 = vmul.f32 %v3817_v38, %v5296_v20  ;;  %v3999_v54 = vmul.f32 %v3973_v23, %v5297_v22  ;;  %v1087_v21 = vadd.f32 %v1085_v28, %v1078_v7  ;;  %v4003_v31 = vmul.f32 %v3982_v24, %v5297_v22 }
 0x102   : > { %v1088_v45 = vadd.f32 %v1086_v13, %v1079_v58  ;;  %v1169_v49 = vrot.slane %v3973_v23, 1  ;;  %v1170_v35 = vrot.slane %v3982_v24, 1  ;;  %v1171_v3 = vrot.slane %v2338_v63, 1 }
 0x103   : > { %v1178_v42 = vrot.slane %v3973_v23, 2  ;;  %v1179_v20 = vrot.slane %v3982_v24, 2  ;;  %v1096_v38 = vadd.f32 %v1094_v59, %v1087_v21  ;;  %v1180_v60 = vrot.slane %v2338_v63, 2 }
 0x104   : > { %v1097_v50 = vadd.f32 %v1095_v29, %v1088_v45  ;;  %v1187_v44 = vrot.slane %v3973_v23, 3  ;;  %v4012_v28 = vsel %vm232_vm0, %v1170_v35, %v1171_v3  ;;  %v4016_v13 = vsel %vm232_vm0, %v1169_v49, %v1170_v35 }
 0x105   : > { %v4020_v7 = vsel %vm246_vm1, %v1178_v42, %v1179_v20  ;;  %v1188_v58 = vrot.slane %v3982_v24, 3  ;;  %v1105_v22 = vadd.f32 %v1103_v51, %v1096_v38  ;;  %v4025_v29 = vmul.f32 %v4016_v13, %v5272_v55 }
 0x106   : > { %5298 = vst [vmem:[#allocation34_spill] sm:$0xff] %v4020_v7  ;;  %v1106_v59 = vadd.f32 %v1104_v36, %v1097_v50  ;;  %v4029_v3 = vmul.f32 %v4012_v28, %v5272_v55  ;;  %v4033_v35 = vsel %vm246_vm1, %v1179_v20, %v1180_v60  ;;  %v4037_v42 = vmul.f32 %v4020_v7, %v5275_v12 }
 0x107   : > { %5299 = vst [vmem:[#allocation21_spill] sm:$0xff] %v4033_v35  ;;  %v1189_v45 = vrot.slane %v2338_v63, 3  ;;  %v4041_v50 = vsel %vm260_vm2, %v1187_v44, %v1188_v58  ;;  %v1114_v38 = vadd.f32 %v1112_v4, %v1105_v22  ;;  %v4045_v36 = vmul.f32 %v4033_v35, %v5275_v12  ;;  %v5302_v22 = vld [vmem:[#allocation15_spill] sm:$0xff] }
 0x108   : > { %5300 = vst [vmem:[#allocation39_spill] sm:$0xff] %v4041_v50  ;;  %v1115_v51 = vadd.f32 %v1113_v30, %v1106_v59  ;;  %v4049_v49 = vmul.f32 %v4041_v50, %v3357_v32  ;;  %v1196_v20 = vrot.slane %v3973_v23, 4  ;;  %v1197_v21 = vrot.slane %v3982_v24, 4 }
 0x109   : > { %v4053_v60 = vsel %vm260_vm2, %v1188_v58, %v1189_v45  ;;  %v1198_v44 = vrot.slane %v2338_v63, 4  ;;  %v1121_v55 = vadd.f32 %v1119_v37, %v1114_v38  ;;  %v1211_v59 = vmul.f32 %v3860_v17, %v5302_v22  ;;  %v5305_v38 = vld [vmem:[#allocation45_spill] sm:$0xff] }
 0x10a   : > { %5301 = vst [vmem:[#allocation49_spill] sm:$0xff] %v4053_v60  ;;  %v1122_v4 = vadd.f32 %v1120_v19, %v1115_v51  ;;  %v4059_v30 = vmul.f32 %v4053_v60, %v3357_v32  ;;  %v4069_v58 = vsel %vm274_vm3, %v1196_v20, %v1197_v21  ;;  %v1212_v63 = vmul.f32 %v3863_v56, %v5302_v22 }
 0x10b   : > { %v4065_v12 = vsel %vm274_vm3, %v1197_v21, %v1198_v44  ;;  %5304 = vst [vmem:[#allocation43_spill] sm:$0xff] %v4069_v58  ;;  %v1218_v37 = vmul.f32 %v3884_v6, %v2995_v14  ;;  %v1130_v19 = vadd.f32 %v1128_v18, %v1121_v55  ;;  %v4077_v17 = vmul.f32 %v4069_v58, %v5305_v38 }
 0x10c   : > { %5303 = vst [vmem:[#allocation41_spill] sm:$0xff] %v4065_v12  ;;  %v1131_v45 = vadd.f32 %v1129_v27, %v1122_v4  ;;  %v4081_v51 = vmul.f32 %v4065_v12, %v5305_v38  ;;  %v1219_v20 = vmul.f32 %v3892_v39, %v2995_v14  ;;  %v1227_v56 = vmul.f32 %v3902_v62, %v2999_v15  ;;  %v4094_v4 = vld [vmem:[%s2961_s27 + $0x78] sm:$0xff]  ;;  %v4097_v38 = vld [vmem:[%s2961_s27 + $0x80] sm:$0xff] }
 0x10d   : > { %v1220_v21 = vadd.f32 %v1218_v37, %v1211_v59  ;;  %v1228_v55 = vmul.f32 %v3906_v61, %v2999_v15  ;;  %v1139_v6 = vadd.f32 %v1137_v34, %v1130_v19  ;;  %v1236_v27 = vmul.f32 %v3924_v43, %v3003_v16  ;;  %v2346_v34 = vld [vmem:[%s2961_s27 + $0x88] sm:$0xff] }
 0x10e   : > { %v1140_v18 = vadd.f32 %v1138_v11, %v1131_v45  ;;  %v1237_v44 = vmul.f32 %v3920_v10, %v3003_v16  ;;  %v1221_v39 = vadd.f32 %v1219_v20, %v1212_v63  ;;  %v1245_v62 = vmul.f32 %v3938_v26, %v3030_v46 }
 0x10f   : > { %v1229_v59 = vadd.f32 %v1227_v56, %v1220_v21  ;;  %v1246_v61 = vmul.f32 %v3934_v53, %v3030_v46  ;;  %v1148_v11 = vadd.f32 %v3979_v57, %v1139_v6  ;;  %v1252_v10 = vmul.f32 %v4094_v4, %v3041_v52 }
 0x110   : > { %v1149_v43 = vadd.f32 %v3987_v47, %v1140_v18  ;;  %v1253_v37 = vmul.f32 %v4097_v38, %v3041_v52  ;;  %v1230_v19 = vadd.f32 %v1228_v55, %v1221_v39  ;;  %v1256_v45 = vrot.slane %v4094_v4, 1 }
 0x111   : > { %v1238_v63 = vadd.f32 %v1236_v27, %v1229_v59  ;;  %v1257_v26 = vrot.slane %v4097_v38, 1  ;;  %v1157_v20 = vadd.f32 %v3991_v33, %v1148_v11  ;;  %v1258_v21 = vrot.slane %v2346_v34, 1 }
 0x112   : > { %v1158_v53 = vadd.f32 %v3995_v9, %v1149_v43  ;;  %v1265_v57 = vrot.slane %v4094_v4, 2  ;;  %v1239_v47 = vadd.f32 %v1237_v44, %v1230_v19  ;;  %v1266_v55 = vrot.slane %v4097_v38, 2 }
 0x113   : > { %v1247_v56 = vadd.f32 %v1245_v62, %v1238_v63  ;;  %v4117_v6 = vsel %vm232_vm0, %v1256_v45, %v1257_v26  ;;  %v1167_v18 = vadd.f32 %v3999_v54, %v1157_v20  ;;  %v4124_v33 = vsel %vm232_vm0, %v1257_v26, %v1258_v21 }
 0x114   : > { %v1168_v27 = vadd.f32 %v4003_v31, %v1158_v53  ;;  %v1261_v9 = vmul.f32 %v4117_v6, %v5280_v25  ;;  %v1248_v39 = vadd.f32 %v1246_v61, %v1239_v47  ;;  %v1262_v59 = vmul.f32 %v4124_v33, %v5280_v25 }
 0x115   : > { %v1254_v44 = vadd.f32 %v1252_v10, %v1247_v56  ;;  %v1267_v62 = vrot.slane %v2346_v34, 2  ;;  %v1176_v11 = vadd.f32 %v4025_v29, %v1167_v18  ;;  %v4134_v31 = vsel %vm246_vm1, %v1265_v57, %v1266_v55 }
 0x116   : > { %v1177_v43 = vadd.f32 %v4029_v3, %v1168_v27  ;;  %v1274_v54 = vrot.slane %v4094_v4, 3  ;;  %v1255_v19 = vadd.f32 %v1253_v37, %v1248_v39  ;;  %v1270_v10 = vmul.f32 %v4134_v31, %v5281_v8 }
 0x117   : > { %v1263_v63 = vadd.f32 %v1261_v9, %v1254_v44  ;;  %v4139_v61 = vsel %vm246_vm1, %v1266_v55, %v1267_v62  ;;  %v1185_v45 = vadd.f32 %v4037_v42, %v1176_v11  ;;  %v1275_v26 = vrot.slane %v4097_v38, 3 }
 0x118   : > { %v1186_v29 = vadd.f32 %v4045_v36, %v1177_v43  ;;  %v1271_v3 = vmul.f32 %v4139_v61, %v5281_v8  ;;  %v1264_v20 = vadd.f32 %v1262_v59, %v1255_v19  ;;  %v1276_v37 = vrot.slane %v2346_v34, 3  ;;  %v5306_v43 = vld [vmem:[#allocation27_spill] sm:$0xff] }
 0x119   : > { %v1272_v53 = vadd.f32 %v1270_v10, %v1263_v63  ;;  %v1283_v21 = vrot.slane %v4094_v4, 4  ;;  %v1194_v57 = vadd.f32 %v4049_v49, %v1185_v45  ;;  %v4153_v42 = vsel %vm260_vm2, %v1274_v54, %v1275_v26  ;;  %v5307_v63 = vld [vmem:[#allocation30_spill] sm:$0xff] }
 0x11a   : > { %v1195_v47 = vadd.f32 %v4059_v30, %v1186_v29  ;;  %v1284_v36 = vrot.slane %v4097_v38, 4  ;;  %v1273_v56 = vadd.f32 %v1271_v3, %v1264_v20  ;;  %v4158_v55 = vsel %vm260_vm2, %v1275_v26, %v1276_v37  ;;  %v5308_v45 = vld [vmem:[#allocation22_spill] sm:$0xff]  ;;  %v5309_v29 = vld [vmem:[#allocation29_spill] sm:$0xff]  ;;  %v5310_v3 = vld [vmem:[#allocation48_spill] sm:$0xff] }
 0x11b   : > { %v1279_v18 = vmul.f32 %v4153_v42, %v5283_v5  ;;  %v1285_v27 = vrot.slane %v2346_v34, 4  ;;  %v1203_v49 = vadd.f32 %v4077_v17, %v1194_v57  ;;  %v1280_v9 = vmul.f32 %v4158_v55, %v5283_v5  ;;  %v5312_v37 = vld [vmem:[#allocation32_spill] sm:$0xff] }
 0x11c   : > { %v1204_v30 = vadd.f32 %v4081_v51, %v1195_v47  ;;  %v4168_v39 = vsel %vm274_vm3, %v1283_v21, %v1284_v36  ;;  %v1295_v17 = vmul.f32 %v3702_v41, %v5282_v2  ;;  %v1296_v11 = vmul.f32 %v3718_v40, %v5282_v2  ;;  %v5313_v40 = vld [vmem:[#allocation33_spill] sm:$0xff]  ;;  %v5314_v47 = vld [vmem:[#allocation24_spill] sm:$0xff] }
 0x11d   : > { %v1281_v44 = vadd.f32 %v1279_v18, %v1272_v53  ;;  %v4172_v59 = vsel %vm274_vm3, %v1284_v36, %v1285_v27  ;;  %v1288_v62 = vmul.f32 %v4168_v39, %v5284_v0  ;;  %2339 = vst [vmem:[%s3412_s6 + $0x30] sm:$0xff] %v1203_v49  ;;  %v1282_v51 = vadd.f32 %v1280_v9, %v1273_v56  ;;  %v5311_v53 = vld [vmem:[#allocation23_spill] sm:$0xff]  ;;  %v5316_v27 = vld [vmem:[#allocation38_spill] sm:$0xff] }
 0x11e   : > { %2340 = vst [vmem:[%s3412_s6 + $0x38] sm:$0xff] %v1204_v30  ;;  %v1289_v34 = vmul.f32 %v4172_v59, %v5284_v0  ;;  %v1304_v54 = vmul.f32 %v5306_v43, %v5246_v48  ;;  %v1305_v10 = vmul.f32 %v5307_v63, %v5246_v48  ;;  %v1313_v41 = vmul.f32 %v5309_v29, %v5308_v45  ;;  %v5315_v36 = vld [vmem:[#allocation35_spill] sm:$0xff]  ;;  %v5317_v30 = vld [vmem:[#allocation25_spill] sm:$0xff]  ;;  %v5319_v63 = vld [vmem:[#allocation28_spill] sm:$0xff] }
 0x11f   : > { %v1290_v19 = vadd.f32 %v1288_v62, %v1281_v44  ;;  %v1314_v26 = vmul.f32 %v5310_v3, %v5308_v45  ;;  %v1322_v21 = vmul.f32 %v5312_v37, %v5311_v53  ;;  %v1323_v57 = vmul.f32 %v5313_v40, %v5311_v53  ;;  %v5320_v40 = vld [vmem:[#allocation31_spill] sm:$0xff]  ;;  %v5322_v53 = vld [vmem:[#allocation37_spill] sm:$0xff] }
 0x120   : > { %v1291_v20 = vadd.f32 %v1289_v34, %v1282_v51  ;;  %v1331_v56 = vmul.f32 %v5315_v36, %v5314_v47  ;;  %v1332_v49 = vmul.f32 %v5316_v27, %v5314_v47  ;;  %v1338_v9 = vmul.f32 %v3973_v23, %v5317_v30  ;;  %v5318_v51 = vld [vmem:[#allocation26_spill] sm:$0xff]  ;;  %v2357_v36 = vld [vmem:[%s2961_s27 + $0xd0] sm:$0xff] }
 0x121   : > { %v1297_v18 = vadd.f32 %v1295_v17, %v1290_v19  ;;  %v1339_v44 = vmul.f32 %v3982_v24, %v5317_v30  ;;  %v1347_v34 = vmul.f32 %v4016_v13, %v5318_v51  ;;  %v1348_v43 = vmul.f32 %v4012_v28, %v5318_v51  ;;  %v4211_v17 = vld [vmem:[%s2961_s27 + $0xc0] sm:$0xff]  ;;  %v4214_v19 = vld [vmem:[%s2961_s27 + $0xc8] sm:$0xff] }
 0x122   : > { %v1298_v62 = vadd.f32 %v1296_v11, %v1291_v20  ;;  %v1356_v29 = vmul.f32 %v4020_v7, %v5319_v63  ;;  %v1357_v37 = vmul.f32 %v4033_v35, %v5319_v63  ;;  %v1365_v11 = vmul.f32 %v4041_v50, %v5320_v40  ;;  %v5321_v51 = vld [vmem:[#allocation36_spill] sm:$0xff] }
 0x123   : > { %v1306_v3 = vadd.f32 %v1304_v54, %v1297_v18  ;;  %v1366_v20 = vmul.f32 %v4053_v60, %v5320_v40  ;;  %v1374_v30 = vmul.f32 %v4069_v58, %v5321_v51  ;;  %v4227_v47 = vmul.f32 %v4065_v12, %v5321_v51  ;;  %v5325_v7 = vld [vmem:[#allocation40_spill] sm:$0xff] }
 0x124   : > { %v1307_v27 = vadd.f32 %v1305_v10, %v1298_v62  ;;  %v4231_v54 = vmul.f32 %v4211_v17, %v5322_v53  ;;  %v4235_v63 = vmul.f32 %v4214_v19, %v5322_v53  ;;  %v1388_v40 = vrot.slane %v4211_v17, 1 }
 0x125   : > { %v1315_v18 = vadd.f32 %v1313_v41, %v1306_v3  ;;  %v1389_v10 = vrot.slane %v4214_v19, 1  ;;  %v1390_v60 = vrot.slane %v2357_v36, 1  ;;  %v1397_v58 = vrot.slane %v4211_v17, 2 }
 0x126   : > { %v1316_v62 = vadd.f32 %v1314_v26, %v1307_v27  ;;  %v1398_v51 = vrot.slane %v4214_v19, 2  ;;  %v1399_v41 = vrot.slane %v2357_v36, 2  ;;  %v1406_v3 = vrot.slane %v4211_v17, 3 }
 0x127   : > { %v1324_v12 = vadd.f32 %v1322_v21, %v1315_v18  ;;  %v4243_v50 = vsel %vm232_vm0, %v1388_v40, %v1389_v10  ;;  %v4248_v35 = vsel %vm232_vm0, %v1389_v10, %v1390_v60 }
 0x128   : > { %5323 = vst [vmem:[#allocation44_spill] sm:$0xff] %v4243_v50  ;;  %v1325_v53 = vadd.f32 %v1323_v57, %v1316_v62  ;;  %5324 = vst [vmem:[#allocation50_spill] sm:$0xff] %v4248_v35  ;;  %v1393_v26 = vmul.f32 %v4243_v50, %v5325_v7  ;;  %v4254_v27 = vsel %vm246_vm1, %v1397_v58, %v1398_v51  ;;  %v5328_v57 = vld [vmem:[#allocation42_spill] sm:$0xff]  ;;  %v1407_v58 = vrot.slane %v4214_v19, 3 }
 0x129   : > { %5326 = vst [vmem:[#allocation47_spill] sm:$0xff] %v4254_v27  ;;  %v1333_v21 = vadd.f32 %v1331_v56, %v1324_v12  ;;  %v1394_v40 = vmul.f32 %v4248_v35, %v5325_v7  ;;  %v4260_v18 = vsel %vm246_vm1, %v1398_v51, %v1399_v41  ;;  %v4264_v62 = vmul.f32 %v4254_v27, %v5328_v57 }
 0x12a   : > { %5327 = vst [vmem:[#allocation46_spill] sm:$0xff] %v4260_v18  ;;  %v1334_v60 = vadd.f32 %v1332_v49, %v1325_v53  ;;  %v4268_v10 = vmul.f32 %v4260_v18, %v5328_v57  ;;  %v1408_v50 = vrot.slane %v2357_v36, 3  ;;  %v1415_v56 = vrot.slane %v4211_v17, 4 }
 0x12b   : > { %v1340_v12 = vadd.f32 %v1338_v9, %v1333_v21  ;;  %v1416_v7 = vrot.slane %v4214_v19, 4  ;;  %v1417_v35 = vrot.slane %v2357_v36, 4  ;;  %v4279_v53 = vsel %vm260_vm2, %v1406_v3, %v1407_v58  ;;  %v5333_v3 = vld [vmem:[#allocation45_spill] sm:$0xff] }
 0x12c   : > { %v1341_v51 = vadd.f32 %v1339_v44, %v1334_v60  ;;  %v4275_v41 = vsel %vm260_vm2, %v1407_v58, %v1408_v50  ;;  %5330 = vst [vmem:[#allocation52_spill] sm:$0xff] %v4279_v53  ;;  %v1430_v49 = vmul.f32 %v4094_v4, %v5302_v22  ;;  %v1411_v9 = vmul.f32 %v4279_v53, %v3357_v32 }
 0x12d   : > { %5329 = vst [vmem:[#allocation51_spill] sm:$0xff] %v4275_v41  ;;  %v1349_v57 = vadd.f32 %v1347_v34, %v1340_v12  ;;  %v1412_v21 = vmul.f32 %v4275_v41, %v3357_v32  ;;  %v4289_v44 = vsel %vm274_vm3, %v1416_v7, %v1417_v35  ;;  %v4293_v36 = vsel %vm274_vm3, %v1415_v56, %v1416_v7 }
 0x12e   : > { %5331 = vst [vmem:[#allocation53_spill] sm:$0xff] %v4289_v44  ;;  %v1350_v50 = vadd.f32 %v1348_v43, %v1341_v51  ;;  %5332 = vst [vmem:[#allocation54_spill] sm:$0xff] %v4293_v36  ;;  %v4297_v4 = vmul.f32 %v4289_v44, %v5333_v3  ;;  %v1431_v34 = vmul.f32 %v4097_v38, %v5302_v22  ;;  %v4319_v22 = vld [vmem:[%s2961_s27 + $0x98] sm:$0xff] }
 0x12f   : > { %v1358_v60 = vadd.f32 %v1356_v29, %v1349_v57  ;;  %v1420_v35 = vmul.f32 %v4293_v36, %v5333_v3  ;;  %v1437_v43 = vmul.f32 %v4117_v6, %v2995_v14  ;;  %v1438_v7 = vmul.f32 %v4124_v33, %v2995_v14  ;;  %v4316_v6 = vld [vmem:[%s2961_s27 + $0x90] sm:$0xff]  ;;  %v2365_v33 = vld [vmem:[%s2961_s27 + $0xa0] sm:$0xff] }
 0x130   : > { %v1359_v58 = vadd.f32 %v1357_v37, %v1350_v50  ;;  %v1446_v12 = vmul.f32 %v4134_v31, %v2999_v15  ;;  %v1447_v56 = vmul.f32 %v4139_v61, %v2999_v15  ;;  %v1455_v38 = vmul.f32 %v4153_v42, %v3003_v16 }
 0x131   : > { %v1367_v29 = vadd.f32 %v1365_v11, %v1358_v60  ;;  %v1439_v57 = vadd.f32 %v1437_v43, %v1430_v49  ;;  %v1440_v51 = vadd.f32 %v1438_v7, %v1431_v34  ;;  %v1456_v3 = vmul.f32 %v4158_v55, %v3003_v16 }
 0x132   : > { %v1368_v37 = vadd.f32 %v1366_v20, %v1359_v58  ;;  %v1464_v31 = vmul.f32 %v4168_v39, %v3030_v46  ;;  %v1465_v61 = vmul.f32 %v4172_v59, %v3030_v46  ;;  %v1471_v42 = vmul.f32 %v4316_v6, %v3041_v52 }
 0x133   : > { %v1376_v11 = vadd.f32 %v1374_v30, %v1367_v29  ;;  %v1448_v49 = vadd.f32 %v1446_v12, %v1439_v57  ;;  %v1449_v50 = vadd.f32 %v1447_v56, %v1440_v51  ;;  %v1472_v55 = vmul.f32 %v4319_v22, %v3041_v52 }
 0x134   : > { %v1377_v34 = vadd.f32 %v4227_v47, %v1368_v37  ;;  %v1475_v60 = vrot.slane %v4316_v6, 1  ;;  %v1476_v20 = vrot.slane %v4319_v22, 1  ;;  %v1477_v43 = vrot.slane %v2365_v33, 1 }
 0x135   : > { %v1386_v39 = vadd.f32 %v4231_v54, %v1376_v11  ;;  %v1457_v7 = vadd.f32 %v1455_v38, %v1448_v49  ;;  %v1458_v59 = vadd.f32 %v1456_v3, %v1449_v50  ;;  %v1484_v58 = vrot.slane %v4316_v6, 2 }
 0x136   : > { %v1387_v30 = vadd.f32 %v4235_v63, %v1377_v34  ;;  %v4338_v12 = vsel %vm232_vm0, %v1476_v20, %v1477_v43  ;;  %v4342_v47 = vsel %vm232_vm0, %v1475_v60, %v1476_v20  ;;  %v1485_v56 = vrot.slane %v4319_v22, 2 }
 0x137   : > { %v1395_v29 = vadd.f32 %v1393_v26, %v1386_v39  ;;  %v1466_v57 = vadd.f32 %v1464_v31, %v1457_v7  ;;  %v1467_v51 = vadd.f32 %v1465_v61, %v1458_v59  ;;  %v1480_v54 = vmul.f32 %v4342_v47, %v5280_v25 }
 0x138   : > { %v1396_v3 = vadd.f32 %v1394_v40, %v1387_v30  ;;  %v1481_v63 = vmul.f32 %v4338_v12, %v5280_v25  ;;  %v1486_v38 = vrot.slane %v2365_v33, 2  ;;  %v4351_v37 = vsel %vm246_vm1, %v1484_v58, %v1485_v56 }
 0x139   : > { %v1404_v11 = vadd.f32 %v4264_v62, %v1395_v29  ;;  %v1473_v49 = vadd.f32 %v1471_v42, %v1466_v57  ;;  %v1474_v50 = vadd.f32 %v1472_v55, %v1467_v51  ;;  %v1489_v26 = vmul.f32 %v4351_v37, %v5281_v8 }
 0x13a   : > { %v1405_v31 = vadd.f32 %v4268_v10, %v1396_v3  ;;  %v4359_v40 = vsel %vm246_vm1, %v1485_v56, %v1486_v38  ;;  %v1493_v61 = vrot.slane %v4316_v6, 3  ;;  %v1494_v34 = vrot.slane %v4319_v22, 3 }
 0x13b   : > { %v1413_v60 = vadd.f32 %v1411_v9, %v1404_v11  ;;  %v1482_v20 = vadd.f32 %v1480_v54, %v1473_v49  ;;  %v1483_v43 = vadd.f32 %v1481_v63, %v1474_v50  ;;  %v1490_v62 = vmul.f32 %v4359_v40, %v5281_v8  ;;  %v5334_v11 = vld [vmem:[#allocation34_spill] sm:$0xff]  ;;  %v5335_v50 = vld [vmem:[#allocation21_spill] sm:$0xff] }
 0x13c   : > { %v1414_v42 = vadd.f32 %v1412_v21, %v1405_v31  ;;  %v1495_v55 = vrot.slane %v2365_v33, 3  ;;  %v4367_v10 = vsel %vm260_vm2, %v1493_v61, %v1494_v34  ;;  %v1502_v39 = vrot.slane %v4316_v6, 4  ;;  %v5336_v31 = vld [vmem:[#allocation23_spill] sm:$0xff] }
 0x13d   : > { %v1422_v7 = vadd.f32 %v1420_v35, %v1413_v60  ;;  %v1491_v59 = vadd.f32 %v1489_v26, %v1482_v20  ;;  %v1492_v58 = vadd.f32 %v1490_v62, %v1483_v43  ;;  %v1498_v9 = vmul.f32 %v4367_v10, %v5283_v5  ;;  %v5337_v61 = vld [vmem:[#allocation39_spill] sm:$0xff]  ;;  %v5339_v60 = vld [vmem:[#allocation24_spill] sm:$0xff] }
 0x13e   : > { %v1423_v30 = vadd.f32 %v4297_v4, %v1414_v42  ;;  %v4375_v56 = vsel %vm260_vm2, %v1494_v34, %v1495_v55  ;;  %v1503_v21 = vrot.slane %v4319_v22, 4  ;;  %v1504_v29 = vrot.slane %v2365_v33, 4  ;;  %v5338_v34 = vld [vmem:[#allocation49_spill] sm:$0xff]  ;;  %v5340_v20 = vld [vmem:[#allocation43_spill] sm:$0xff] }
 0x13f   : > { %2358 = vst [vmem:[%s3412_s6 + $0x40] sm:$0xff] %v1422_v7  ;;  %v1499_v57 = vmul.f32 %v4375_v56, %v5283_v5  ;;  %v1500_v51 = vadd.f32 %v1498_v9, %v1491_v59  ;;  %v1514_v35 = vmul.f32 %v3973_v23, %v5282_v2  ;;  %v1515_v54 = vmul.f32 %v3982_v24, %v5282_v2  ;;  %v5341_v55 = vld [vmem:[#allocation41_spill] sm:$0xff]  ;;  %v5343_v9 = vld [vmem:[#allocation26_spill] sm:$0xff] }
 0x140   : > { %2359 = vst [vmem:[%s3412_s6 + $0x48] sm:$0xff] %v1423_v30  ;;  %v4388_v4 = vsel %vm274_vm3, %v1503_v21, %v1504_v29  ;;  %v4392_v3 = vsel %vm274_vm3, %v1502_v39, %v1503_v21  ;;  %v1523_v33 = vmul.f32 %v4016_v13, %v5246_v48  ;;  %v1524_v63 = vmul.f32 %v4012_v28, %v5246_v48  ;;  %v5342_v7 = vld [vmem:[#allocation25_spill] sm:$0xff]  ;;  %v5344_v30 = vld [vmem:[#allocation44_spill] sm:$0xff]  ;;  %v5345_v29 = vld [vmem:[#allocation50_spill] sm:$0xff] }
 0x141   : > { %v1501_v38 = vadd.f32 %v1499_v57, %v1492_v58  ;;  %v1507_v24 = vmul.f32 %v4392_v3, %v5284_v0  ;;  %v1508_v23 = vmul.f32 %v4388_v4, %v5284_v0  ;;  %v1532_v49 = vmul.f32 %v5334_v11, %v5308_v45  ;;  %v5346_v11 = vld [vmem:[#allocation28_spill] sm:$0xff] }
 0x142   : > { %v1533_v26 = vmul.f32 %v5335_v50, %v5308_v45  ;;  %v1541_v13 = vmul.f32 %v5337_v61, %v5336_v31  ;;  %v1542_v28 = vmul.f32 %v5338_v34, %v5336_v31  ;;  %v1550_v43 = vmul.f32 %v5340_v20, %v5339_v60  ;;  %v5347_v61 = vld [vmem:[#allocation31_spill] sm:$0xff] }
 0x143   : > { %v1509_v62 = vadd.f32 %v1507_v24, %v1500_v51  ;;  %v1510_v42 = vadd.f32 %v1508_v23, %v1501_v38  ;;  %v1551_v39 = vmul.f32 %v5341_v55, %v5339_v60  ;;  %v1557_v59 = vmul.f32 %v4211_v17, %v5342_v7  ;;  %v4425_v51 = vld [vmem:[%s2961_s27 + $0xd8] sm:$0xff]  ;;  %v4434_v20 = vld [vmem:[%s2961_s27 + $0xe0] sm:$0xff]  ;;  %v2376_v55 = vld [vmem:[%s2961_s27 + $0xe8] sm:$0xff] }
 0x144   : > { %v1558_v58 = vmul.f32 %v4214_v19, %v5342_v7  ;;  %v1566_v21 = vmul.f32 %v5344_v30, %v5343_v9  ;;  %v1567_v57 = vmul.f32 %v5345_v29, %v5343_v9  ;;  %v1575_v50 = vmul.f32 %v4254_v27, %v5346_v11  ;;  %v5348_v7 = vld [vmem:[#allocation36_spill] sm:$0xff] }
 0x145   : > { %v1516_v38 = vadd.f32 %v1514_v35, %v1509_v62  ;;  %v1517_v24 = vadd.f32 %v1515_v54, %v1510_v42  ;;  %v1576_v23 = vmul.f32 %v4260_v18, %v5346_v11  ;;  %v4431_v34 = vmul.f32 %v4279_v53, %v5347_v61  ;;  %v5349_v54 = vld [vmem:[#allocation37_spill] sm:$0xff] }
 0x146   : > { %v4439_v9 = vmul.f32 %v4275_v41, %v5347_v61  ;;  %v4443_v60 = vmul.f32 %v4293_v36, %v5348_v7  ;;  %v4447_v35 = vmul.f32 %v4289_v44, %v5348_v7  ;;  %v4451_v62 = vmul.f32 %v4425_v51, %v5349_v54 }
 0x147   : > { %v1525_v42 = vadd.f32 %v1523_v33, %v1516_v38  ;;  %v1526_v11 = vadd.f32 %v1524_v63, %v1517_v24  ;;  %v4455_v53 = vmul.f32 %v4434_v20, %v5349_v54  ;;  %v1607_v61 = vrot.slane %v4425_v51, 1 }
 0x148   : > { %v1608_v41 = vrot.slane %v4434_v20, 1  ;;  %v1609_v36 = vrot.slane %v2376_v55, 1  ;;  %v1616_v31 = vrot.slane %v4425_v51, 2  ;;  %v1617_v7 = vrot.slane %v4434_v20, 2 }
 0x149   : > { %v1534_v44 = vadd.f32 %v1532_v49, %v1525_v42  ;;  %v1535_v18 = vadd.f32 %v1533_v26, %v1526_v11  ;;  %v1618_v27 = vrot.slane %v2376_v55, 2  ;;  %v1625_v45 = vrot.slane %v4425_v51, 3  ;;  %v5352_v26 = vld [vmem:[#allocation40_spill] sm:$0xff] }
 0x14a   : > { %v4464_v33 = vsel %vm232_vm0, %v1608_v41, %v1609_v36  ;;  %v4468_v63 = vsel %vm232_vm0, %v1607_v61, %v1608_v41  ;;  %v4472_v38 = vsel %vm246_vm1, %v1616_v31, %v1617_v7  ;;  %v1626_v24 = vrot.slane %v4434_v20, 3  ;;  %v5354_v61 = vld [vmem:[#allocation42_spill] sm:$0xff] }
 0x14b   : > { %5350 = vst [vmem:[#allocation55_spill] sm:$0xff] %v4464_v33  ;;  %5351 = vst [vmem:[#allocation56_spill] sm:$0xff] %v4472_v38  ;;  %v1543_v54 = vadd.f32 %v1541_v13, %v1534_v44  ;;  %v1544_v49 = vadd.f32 %v1542_v28, %v1535_v18  ;;  %v4477_v11 = vmul.f32 %v4468_v63, %v5352_v26  ;;  %v1627_v42 = vrot.slane %v2376_v55, 3 }
 0x14c   : > { %v4481_v36 = vmul.f32 %v4464_v33, %v5352_v26  ;;  %v4485_v41 = vsel %vm246_vm1, %v1617_v7, %v1618_v27  ;;  %v4489_v31 = vmul.f32 %v4472_v38, %v5354_v61  ;;  %v4493_v18 = vsel %vm260_vm2, %v1625_v45, %v1626_v24 }
 0x14d   : > { %5353 = vst [vmem:[#allocation16_spill] sm:$0xff] %v4485_v41  ;;  %5355 = vst [vmem:[#allocation17_spill] sm:$0xff] %v4493_v18  ;;  %v1552_v44 = vadd.f32 %v1550_v43, %v1543_v54  ;;  %v1553_v13 = vadd.f32 %v1551_v39, %v1544_v49  ;;  %v4497_v28 = vmul.f32 %v4485_v41, %v5354_v61  ;;  %v1634_v7 = vrot.slane %v4425_v51, 4  ;;  %v5357_v54 = vld [vmem:[#allocation15_spill] sm:$0xff] }
 0x14e   : > { %v4501_v26 = vmul.f32 %v4493_v18, %v3357_v32  ;;  %v4505_v27 = vsel %vm260_vm2, %v1626_v24, %v1627_v42  ;;  %v1635_v38 = vrot.slane %v4434_v20, 4  ;;  %v1636_v45 = vrot.slane %v2376_v55, 4 }
 0x14f   : > { %5356 = vst [vmem:[#allocation20_spill] sm:$0xff] %v4505_v27  ;;  %v1559_v33 = vadd.f32 %v1557_v59, %v1552_v44  ;;  %v1560_v43 = vadd.f32 %v1558_v58, %v1553_v13  ;;  %v4511_v39 = vmul.f32 %v4505_v27, %v3357_v32  ;;  %v1649_v49 = vmul.f32 %v4316_v6, %v5357_v54  ;;  %v5360_v44 = vld [vmem:[#allocation45_spill] sm:$0xff] }
 0x150   : > { %v4517_v61 = vsel %vm274_vm3, %v1635_v38, %v1636_v45  ;;  %v4521_v24 = vsel %vm274_vm3, %v1634_v7, %v1635_v38  ;;  %v1650_v59 = vmul.f32 %v4319_v22, %v5357_v54  ;;  %v1656_v58 = vmul.f32 %v4342_v47, %v2995_v14 }
 0x151   : > { %5358 = vst [vmem:[#allocation18_spill] sm:$0xff] %v4517_v61  ;;  %5359 = vst [vmem:[#allocation19_spill] sm:$0xff] %v4521_v24  ;;  %v1568_v55 = vadd.f32 %v1566_v21, %v1559_v33  ;;  %v1569_v42 = vadd.f32 %v1567_v57, %v1560_v43  ;;  %v4529_v6 = vmul.f32 %v4521_v24, %v5360_v44  ;;  %v4546_v43 = vld [vmem:[%s2961_s27 + $0xa8] sm:$0xff] }
 0x152   : > { %v4533_v13 = vmul.f32 %v4517_v61, %v5360_v44  ;;  %v1657_v38 = vmul.f32 %v4338_v12, %v2995_v14  ;;  %v1658_v7 = vadd.f32 %v1656_v58, %v1649_v49  ;;  %v1665_v22 = vmul.f32 %v4351_v37, %v2999_v15  ;;  %v4549_v44 = vld [vmem:[%s2961_s27 + $0xb0] sm:$0xff] }
 0x153   : > { %v1666_v47 = vmul.f32 %v4359_v40, %v2999_v15  ;;  %v1577_v21 = vadd.f32 %v1575_v50, %v1568_v55  ;;  %v1578_v57 = vadd.f32 %v1576_v23, %v1569_v42  ;;  %v1674_v33 = vmul.f32 %v4367_v10, %v3003_v16  ;;  %v2384_v50 = vld [vmem:[%s2961_s27 + $0xb8] sm:$0xff] }
 0x154   : > { %v1675_v45 = vmul.f32 %v4375_v56, %v3003_v16  ;;  %v1659_v12 = vadd.f32 %v1657_v38, %v1650_v59  ;;  %v1667_v49 = vadd.f32 %v1665_v22, %v1658_v7  ;;  %v1683_v37 = vmul.f32 %v4392_v3, %v3030_v46 }
 0x155   : > { %v1684_v40 = vmul.f32 %v4388_v4, %v3030_v46  ;;  %v1586_v23 = vadd.f32 %v4431_v34, %v1577_v21  ;;  %v1587_v10 = vadd.f32 %v4439_v9, %v1578_v57  ;;  %v1690_v56 = vmul.f32 %v4546_v43, %v3041_v52 }
 0x156   : > { %v1691_v58 = vmul.f32 %v4549_v44, %v3041_v52  ;;  %v1668_v55 = vadd.f32 %v1666_v47, %v1659_v12  ;;  %v1676_v59 = vadd.f32 %v1674_v33, %v1667_v49  ;;  %v1694_v42 = vrot.slane %v4546_v43, 1 }
 0x157   : > { %v1695_v3 = vrot.slane %v4549_v44, 1  ;;  %v1595_v38 = vadd.f32 %v4443_v60, %v1586_v23  ;;  %v1596_v4 = vadd.f32 %v4447_v35, %v1587_v10  ;;  %v1696_v7 = vrot.slane %v2384_v50, 1 }
 0x158   : > { %v1703_v34 = vrot.slane %v4546_v43, 2  ;;  %v1677_v9 = vadd.f32 %v1675_v45, %v1668_v55  ;;  %v1685_v22 = vadd.f32 %v1683_v37, %v1676_v59  ;;  %v1704_v47 = vrot.slane %v4549_v44, 2 }
 0x159   : > { %v4569_v21 = vsel %vm232_vm0, %v1694_v42, %v1695_v3  ;;  %v1605_v57 = vadd.f32 %v4451_v62, %v1595_v38  ;;  %v1606_v33 = vadd.f32 %v4455_v53, %v1596_v4  ;;  %v4576_v60 = vsel %vm232_vm0, %v1695_v3, %v1696_v7 }
 0x15a   : > { %v1699_v35 = vmul.f32 %v4569_v21, %v5280_v25  ;;  %v1686_v12 = vadd.f32 %v1684_v40, %v1677_v9  ;;  %v1692_v45 = vadd.f32 %v1690_v56, %v1685_v22  ;;  %v1700_v49 = vmul.f32 %v4576_v60, %v5280_v25 }
 0x15b   : > { %v1705_v37 = vrot.slane %v2384_v50, 2  ;;  %v1614_v23 = vadd.f32 %v4477_v11, %v1605_v57  ;;  %v1615_v10 = vadd.f32 %v4481_v36, %v1606_v33  ;;  %v4586_v53 = vsel %vm246_vm1, %v1703_v34, %v1704_v47 }
 0x15c   : > { %v1712_v62 = vrot.slane %v4546_v43, 3  ;;  %v1693_v55 = vadd.f32 %v1691_v58, %v1686_v12  ;;  %v1701_v59 = vadd.f32 %v1699_v35, %v1692_v45  ;;  %v1708_v56 = vmul.f32 %v4586_v53, %v5281_v8 }
 0x15d   : > { %v4591_v40 = vsel %vm246_vm1, %v1704_v47, %v1705_v37  ;;  %v1623_v42 = vadd.f32 %v4489_v31, %v1614_v23  ;;  %v1624_v11 = vadd.f32 %v4497_v28, %v1615_v10  ;;  %v1713_v3 = vrot.slane %v4549_v44, 3 }
 0x15e   : > { %v1709_v36 = vmul.f32 %v4591_v40, %v5281_v8  ;;  %v1702_v38 = vadd.f32 %v1700_v49, %v1693_v55  ;;  %v1710_v4 = vadd.f32 %v1708_v56, %v1701_v59  ;;  %v1714_v58 = vrot.slane %v2384_v50, 3  ;;  %v5361_v59 = vld [vmem:[#allocation22_spill] sm:$0xff]  ;;  %v5362_v56 = vld [vmem:[#allocation47_spill] sm:$0xff] }
 0x15f   : > { %v1721_v7 = vrot.slane %v4546_v43, 4  ;;  %v1632_v34 = vadd.f32 %v4501_v26, %v1623_v42  ;;  %v1633_v9 = vadd.f32 %v4511_v39, %v1624_v11  ;;  %v4605_v31 = vsel %vm260_vm2, %v1712_v62, %v1713_v3  ;;  %v5363_v42 = vld [vmem:[#allocation46_spill] sm:$0xff] }
 0x160   : > { %v1722_v28 = vrot.slane %v4549_v44, 4  ;;  %v1711_v22 = vadd.f32 %v1709_v36, %v1702_v38  ;;  %v4610_v47 = vsel %vm260_vm2, %v1713_v3, %v1714_v58  ;;  %v1717_v57 = vmul.f32 %v4605_v31, %v5283_v5  ;;  %v5364_v3 = vld [vmem:[#allocation23_spill] sm:$0xff]  ;;  %v5365_v38 = vld [vmem:[#allocation52_spill] sm:$0xff] }
 0x161   : > { %v1723_v33 = vrot.slane %v2384_v50, 4  ;;  %v1641_v26 = vadd.f32 %v4529_v6, %v1632_v34  ;;  %v1642_v39 = vadd.f32 %v4533_v13, %v1633_v9  ;;  %v1718_v35 = vmul.f32 %v4610_v47, %v5283_v5 }
 0x162   : > { %v4620_v12 = vsel %vm274_vm3, %v1721_v7, %v1722_v28  ;;  %v1719_v45 = vadd.f32 %v1717_v57, %v1710_v4  ;;  %v1733_v6 = vmul.f32 %v4211_v17, %v5282_v2  ;;  %v1734_v23 = vmul.f32 %v4214_v19, %v5282_v2  ;;  %v5366_v19 = vld [vmem:[#allocation51_spill] sm:$0xff]  ;;  %v5368_v7 = vld [vmem:[#allocation54_spill] sm:$0xff] }
 0x163   : > { %v4624_v49 = vsel %vm274_vm3, %v1722_v28, %v1723_v33  ;;  %v1726_v37 = vmul.f32 %v4620_v12, %v5284_v0  ;;  %2377 = vst [vmem:[%s3412_s6 + $0x50] sm:$0xff] %v1641_v26  ;;  %2378 = vst [vmem:[%s3412_s6 + $0x58] sm:$0xff] %v1642_v39  ;;  %v1720_v13 = vadd.f32 %v1718_v35, %v1711_v22  ;;  %v5370_v22 = vld [vmem:[#allocation25_spill] sm:$0xff]  ;;  %v5371_v39 = vld [vmem:[#allocation26_spill] sm:$0xff] }
 0x164   : > { %v1727_v50 = vmul.f32 %v4624_v49, %v5284_v0  ;;  %v1742_v10 = vmul.f32 %v5344_v30, %v5246_v48  ;;  %v1743_v55 = vmul.f32 %v5345_v29, %v5246_v48  ;;  %v1751_v17 = vmul.f32 %v5362_v56, %v5361_v59  ;;  %v5367_v30 = vld [vmem:[#allocation24_spill] sm:$0xff]  ;;  %v5369_v29 = vld [vmem:[#allocation53_spill] sm:$0xff] }
 0x165   : > { %v1728_v62 = vadd.f32 %v1726_v37, %v1719_v45  ;;  %v1752_v11 = vmul.f32 %v5363_v42, %v5361_v59  ;;  %v1760_v4 = vmul.f32 %v5365_v38, %v5364_v3  ;;  %v1761_v58 = vmul.f32 %v5366_v19, %v5364_v3  ;;  %v5372_v45 = vld [vmem:[#allocation55_spill] sm:$0xff]  ;;  %v5377_v3 = vld [vmem:[#allocation37_spill] sm:$0xff] }
 0x166   : > { %v1729_v36 = vadd.f32 %v1727_v50, %v1720_v13  ;;  %v1769_v34 = vmul.f32 %v5368_v7, %v5367_v30  ;;  %v1770_v28 = vmul.f32 %v5369_v29, %v5367_v30  ;;  %v1776_v57 = vmul.f32 %v4425_v51, %v5370_v22  ;;  %v5373_v13 = vld [vmem:[#allocation28_spill] sm:$0xff]  ;;  %v5375_v19 = vld [vmem:[#allocation31_spill] sm:$0xff] }
 0x167   : > { %v1735_v9 = vadd.f32 %v1733_v6, %v1728_v62  ;;  %v1777_v33 = vmul.f32 %v4434_v20, %v5370_v22  ;;  %v1785_v35 = vmul.f32 %v4468_v63, %v5371_v39  ;;  %v1786_v37 = vmul.f32 %v5372_v45, %v5371_v39  ;;  %v5374_v50 = vld [vmem:[#allocation56_spill] sm:$0xff]  ;;  %v4663_v6 = vld [vmem:[%s2961_s27 + $0xf0] sm:$0xff]  ;;  %v4666_v62 = vld [vmem:[%s2961_s27 + $0xf8] sm:$0xff] }
 0x168   : > { %v1736_v26 = vadd.f32 %v1734_v23, %v1729_v36  ;;  %v1794_v56 = vmul.f32 %v5374_v50, %v5373_v13  ;;  %v1795_v38 = vmul.f32 %v4485_v41, %v5373_v13  ;;  %v1803_v23 = vmul.f32 %v4493_v18, %v5375_v19  ;;  %v2395_v7 = vld [vmem:[%s2961_s27 + $0x100] sm:$0xff]  ;;  %v5376_v39 = vld [vmem:[#allocation36_spill] sm:$0xff] }
 0x169   : > { %v1744_v42 = vadd.f32 %v1742_v10, %v1735_v9  ;;  %v1804_v36 = vmul.f32 %v4505_v27, %v5375_v19  ;;  %v1812_v22 = vmul.f32 %v4521_v24, %v5376_v39  ;;  %v4679_v30 = vmul.f32 %v4517_v61, %v5376_v39  ;;  %v5380_v50 = vld [vmem:[#allocation40_spill] sm:$0xff] }
 0x16a   : > { %v1745_v29 = vadd.f32 %v1743_v55, %v1736_v26  ;;  %v4683_v10 = vmul.f32 %v4663_v6, %v5377_v3  ;;  %v4687_v13 = vmul.f32 %v4666_v62, %v5377_v3  ;;  %v1826_v19 = vrot.slane %v4663_v6, 1 }
 0x16b   : > { %v1753_v9 = vadd.f32 %v1751_v17, %v1744_v42  ;;  %v1827_v55 = vrot.slane %v4666_v62, 1  ;;  %v1828_v27 = vrot.slane %v2395_v7, 1  ;;  %v1835_v24 = vrot.slane %v4663_v6, 2 }
 0x16c   : > { %v1754_v26 = vadd.f32 %v1752_v11, %v1745_v29  ;;  %v1836_v39 = vrot.slane %v4666_v62, 2  ;;  %v1837_v17 = vrot.slane %v2395_v7, 2  ;;  %v1844_v42 = vrot.slane %v4663_v6, 3 }
 0x16d   : > { %v1762_v61 = vadd.f32 %v1760_v4, %v1753_v9  ;;  %v4695_v18 = vsel %vm232_vm0, %v1826_v19, %v1827_v55  ;;  %v4700_v41 = vsel %vm232_vm0, %v1827_v55, %v1828_v27 }
 0x16e   : > { %5378 = vst [vmem:[#allocation57_spill] sm:$0xff] %v4695_v18  ;;  %v1763_v3 = vadd.f32 %v1761_v58, %v1754_v26  ;;  %5379 = vst [vmem:[#allocation59_spill] sm:$0xff] %v4700_v41  ;;  %v1831_v11 = vmul.f32 %v4695_v18, %v5380_v50  ;;  %v4706_v29 = vsel %vm246_vm1, %v1835_v24, %v1836_v39  ;;  %v5381_v58 = vld [vmem:[#allocation42_spill] sm:$0xff]  ;;  %v1845_v24 = vrot.slane %v4666_v62, 3 }
 0x16f   : > { %v1771_v4 = vadd.f32 %v1769_v34, %v1762_v61  ;;  %v1832_v19 = vmul.f32 %v4700_v41, %v5380_v50  ;;  %v4712_v9 = vsel %vm246_vm1, %v1836_v39, %v1837_v17  ;;  %v4716_v26 = vmul.f32 %v4706_v29, %v5381_v58 }
 0x170   : > { %v1772_v27 = vadd.f32 %v1770_v28, %v1763_v3  ;;  %v4720_v55 = vmul.f32 %v4712_v9, %v5381_v58  ;;  %v1846_v18 = vrot.slane %v2395_v7, 3  ;;  %v1853_v34 = vrot.slane %v4663_v6, 4 }
 0x171   : > { %v1778_v61 = vadd.f32 %v1776_v57, %v1771_v4  ;;  %v1854_v50 = vrot.slane %v4666_v62, 4  ;;  %v1855_v41 = vrot.slane %v2395_v7, 4  ;;  %v4731_v3 = vsel %vm260_vm2, %v1844_v42, %v1845_v24  ;;  %v5382_v4 = vld [vmem:[#allocation45_spill] sm:$0xff] }
 0x172   : > { %v1779_v39 = vadd.f32 %v1777_v33, %v1772_v27  ;;  %v4727_v17 = vsel %vm260_vm2, %v1845_v24, %v1846_v18  ;;  %v1868_v28 = vmul.f32 %v4546_v43, %v5357_v54  ;;  %v1849_v57 = vmul.f32 %v4731_v3, %v3357_v32 }
 0x173   : > { %v1787_v58 = vadd.f32 %v1785_v35, %v1778_v61  ;;  %v1850_v33 = vmul.f32 %v4727_v17, %v3357_v32  ;;  %v4741_v7 = vsel %vm274_vm3, %v1854_v50, %v1855_v41  ;;  %v4745_v42 = vsel %vm274_vm3, %v1853_v34, %v1854_v50  ;;  %v4760_v50 = vld [vmem:[%s2961_s27 + $0xc0] sm:$0xff] }
 0x174   : > { %v1788_v18 = vadd.f32 %v1786_v37, %v1779_v39  ;;  %v4749_v43 = vmul.f32 %v4741_v7, %v5382_v4  ;;  %v1869_v35 = vmul.f32 %v4549_v44, %v5357_v54  ;;  %v1858_v24 = vmul.f32 %v4745_v42, %v5382_v4  ;;  %v4769_v44 = vld [vmem:[%s2961_s27 + $0xc8] sm:$0xff] }
 0x175   : > { %v1796_v27 = vadd.f32 %v1794_v56, %v1787_v58  ;;  %v1875_v41 = vmul.f32 %v4569_v21, %v2995_v14  ;;  %v1876_v37 = vmul.f32 %v4576_v60, %v2995_v14  ;;  %v1884_v34 = vmul.f32 %v4586_v53, %v2999_v15  ;;  %v2403_v60 = vld [vmem:[%s2961_s27 + $0xd0] sm:$0xff] }
 0x176   : > { %v1797_v61 = vadd.f32 %v1795_v38, %v1788_v18  ;;  %v1885_v39 = vmul.f32 %v4591_v40, %v2999_v15  ;;  %v1893_v54 = vmul.f32 %v4605_v31, %v3003_v16  ;;  %v1894_v14 = vmul.f32 %v4610_v47, %v3003_v16 }
 0x177   : > { %v1805_v56 = vadd.f32 %v1803_v23, %v1796_v27  ;;  %v1877_v58 = vadd.f32 %v1875_v41, %v1868_v28  ;;  %v1878_v21 = vadd.f32 %v1876_v37, %v1869_v35  ;;  %v1902_v38 = vmul.f32 %v4620_v12, %v3030_v46 }
 0x178   : > { %v1806_v4 = vadd.f32 %v1804_v36, %v1797_v61  ;;  %v1903_v53 = vmul.f32 %v4624_v49, %v3030_v46  ;;  %v1909_v15 = vmul.f32 %v4760_v50, %v3041_v52  ;;  %v1910_v23 = vmul.f32 %v4769_v44, %v3041_v52 }
 0x179   : > { %v1814_v40 = vadd.f32 %v1812_v22, %v1805_v56  ;;  %v1886_v31 = vadd.f32 %v1884_v34, %v1877_v58  ;;  %v1887_v18 = vadd.f32 %v1885_v39, %v1878_v21  ;;  %v1913_v16 = vrot.slane %v4760_v50, 1 }
 0x17a   : > { %v1815_v28 = vadd.f32 %v4679_v30, %v1806_v4  ;;  %v1914_v47 = vrot.slane %v4769_v44, 1  ;;  %v1915_v36 = vrot.slane %v2403_v60, 1  ;;  %v1922_v49 = vrot.slane %v4760_v50, 2 }
 0x17b   : > { %v1824_v12 = vadd.f32 %v4683_v10, %v1814_v40  ;;  %v1895_v35 = vadd.f32 %v1893_v54, %v1886_v31  ;;  %v1896_v46 = vadd.f32 %v1894_v14, %v1887_v18  ;;  %v1923_v30 = vrot.slane %v4769_v44, 2 }
 0x17c   : > { %v1825_v22 = vadd.f32 %v4687_v13, %v1815_v28  ;;  %v1916_v27 = vsel %vm232_vm0, %v1914_v47, %v1915_v36  ;;  %v1917_v52 = vsel %vm232_vm0, %v1913_v16, %v1914_v47  ;;  %v1924_v39 = vrot.slane %v2403_v60, 2 }
 0x17d   : > { %v1833_v4 = vadd.f32 %v1831_v11, %v1824_v12  ;;  %v1904_v41 = vadd.f32 %v1902_v38, %v1895_v35  ;;  %v1905_v37 = vadd.f32 %v1903_v53, %v1896_v46  ;;  %v1918_v61 = vmul.f32 %v1917_v52, %v5280_v25 }
 0x17e   : > { %v1834_v10 = vadd.f32 %v1832_v19, %v1825_v22  ;;  %v1919_v34 = vmul.f32 %v1916_v27, %v5280_v25  ;;  %v1926_v13 = vsel %vm246_vm1, %v1922_v49, %v1923_v30  ;;  %v1925_v11 = vsel %vm246_vm1, %v1923_v30, %v1924_v39 }
 0x17f   : > { %v1842_v54 = vadd.f32 %v4716_v26, %v1833_v4  ;;  %v1911_v56 = vadd.f32 %v1909_v15, %v1904_v41  ;;  %v1912_v58 = vadd.f32 %v1910_v23, %v1905_v37  ;;  %v1927_v21 = vmul.f32 %v1926_v13, %v5281_v8  ;;  %v5384_v37 = vld [vmem:[#allocation16_spill] sm:$0xff] }
 0x180   : > { %v1843_v14 = vadd.f32 %v4720_v55, %v1834_v10  ;;  %v1931_v38 = vrot.slane %v4760_v50, 3  ;;  %v1932_v19 = vrot.slane %v4769_v44, 3  ;;  %v1928_v31 = vmul.f32 %v1925_v11, %v5281_v8  ;;  %v5388_v13 = vld [vmem:[#allocation24_spill] sm:$0xff]  ;;  %v5391_v11 = vld [vmem:[#allocation25_spill] sm:$0xff] }
 0x181   : > { %v1851_v25 = vadd.f32 %v1849_v57, %v1842_v54  ;;  %v1920_v53 = vadd.f32 %v1918_v61, %v1911_v56  ;;  %v1921_v40 = vadd.f32 %v1919_v34, %v1912_v58  ;;  %v1933_v15 = vrot.slane %v2403_v60, 3  ;;  %v5389_v54 = vld [vmem:[#allocation19_spill] sm:$0xff]  ;;  %v5390_v58 = vld [vmem:[#allocation18_spill] sm:$0xff] }
 0x182   : > { %v1852_v26 = vadd.f32 %v1850_v33, %v1843_v14  ;;  %v1935_v18 = vsel %vm260_vm2, %v1931_v38, %v1932_v19  ;;  %v1940_v55 = vrot.slane %v4760_v50, 4  ;;  %v1941_v8 = vrot.slane %v4769_v44, 4 }
 0x183   : > { %v1860_v23 = vadd.f32 %v1858_v24, %v1851_v25  ;;  %v1929_v28 = vadd.f32 %v1927_v21, %v1920_v53  ;;  %v1930_v16 = vadd.f32 %v1928_v31, %v1921_v40  ;;  %v1936_v47 = vmul.f32 %v1935_v18, %v5283_v5  ;;  %v5392_v40 = vld [vmem:[#allocation26_spill] sm:$0xff]  ;;  %v5393_v31 = vld [vmem:[#allocation57_spill] sm:$0xff] }
 0x184   : > { %v1861_v57 = vadd.f32 %v4749_v43, %v1852_v26  ;;  %v1934_v36 = vsel %vm260_vm2, %v1932_v19, %v1933_v15  ;;  %v1942_v12 = vrot.slane %v2403_v60, 4  ;;  %v1944_v50 = vsel %vm274_vm3, %v1940_v55, %v1941_v8  ;;  %v5394_v15 = vld [vmem:[#allocation59_spill] sm:$0xff]  ;;  %v2412_v55 = vld [vmem:[%s2961_s27 + $0x108] sm:$0xff] }
 0x185   : > { %2396 = vst [vmem:[%s3412_s6 + $0x60] sm:$0xff] %v1860_v23  ;;  %v1937_v33 = vmul.f32 %v1934_v36, %v5283_v5  ;;  %v1938_v35 = vadd.f32 %v1936_v47, %v1929_v28  ;;  %v1952_v43 = vmul.f32 %v4425_v51, %v5282_v2  ;;  %v1945_v49 = vmul.f32 %v1944_v50, %v5284_v0  ;;  %v5383_v51 = vld [vmem:[#allocation56_spill] sm:$0xff]  ;;  %v2413_v23 = vld [vmem:[%s2961_s27 + $0x110] sm:$0xff]  ;;  %v2414_v28 = vld [vmem:[%s2961_s27 + $0x118] sm:$0xff] }
 0x186   : > { %2397 = vst [vmem:[%s3412_s6 + $0x68] sm:$0xff] %v1861_v57  ;;  %v1943_v24 = vsel %vm274_vm3, %v1941_v8, %v1942_v12  ;;  %v1953_v60 = vmul.f32 %v4434_v20, %v5282_v2  ;;  %v1961_v27 = vmul.f32 %v4468_v63, %v5246_v48  ;;  %v1962_v52 = vmul.f32 %v5372_v45, %v5246_v48  ;;  %v5385_v2 = vld [vmem:[#allocation23_spill] sm:$0xff]  ;;  %v5386_v20 = vld [vmem:[#allocation17_spill] sm:$0xff]  ;;  %v5387_v63 = vld [vmem:[#allocation20_spill] sm:$0xff] }
 0x187   : > { %v1939_v46 = vadd.f32 %v1937_v33, %v1930_v16  ;;  %v1946_v44 = vmul.f32 %v1943_v24, %v5284_v0  ;;  %v1947_v5 = vadd.f32 %v1945_v49, %v1938_v35  ;;  %v1970_v41 = vmul.f32 %v5383_v51, %v5361_v59  ;;  %v5395_v16 = vld [vmem:[#allocation28_spill] sm:$0xff] }
 0x188   : > { %v1971_v61 = vmul.f32 %v5384_v37, %v5361_v59  ;;  %v1979_v34 = vmul.f32 %v5386_v20, %v5385_v2  ;;  %v1980_v39 = vmul.f32 %v5387_v63, %v5385_v2  ;;  %v1988_v56 = vmul.f32 %v5389_v54, %v5388_v13  ;;  %v5399_v63 = vld [vmem:[#allocation40_spill] sm:$0xff] }
 0x189   : > { %v1948_v22 = vadd.f32 %v1946_v44, %v1939_v46  ;;  %v1954_v30 = vadd.f32 %v1952_v43, %v1947_v5  ;;  %v1989_v21 = vmul.f32 %v5390_v58, %v5388_v13  ;;  %v1995_v38 = vmul.f32 %v4663_v6, %v5391_v11  ;;  %v5397_v44 = vld [vmem:[#allocation36_spill] sm:$0xff]  ;;  %v5400_v58 = vld [vmem:[#allocation42_spill] sm:$0xff] }
 0x18a   : > { %v1996_v19 = vmul.f32 %v4666_v62, %v5391_v11  ;;  %v2004_v26 = vmul.f32 %v5393_v31, %v5392_v40  ;;  %v2005_v18 = vmul.f32 %v5394_v15, %v5392_v40  ;;  %v2013_v47 = vmul.f32 %v4706_v29, %v5395_v16  ;;  %v5396_v62 = vld [vmem:[#allocation31_spill] sm:$0xff] }
 0x18b   : > { %v1955_v4 = vadd.f32 %v1953_v60, %v1948_v22  ;;  %v1963_v0 = vadd.f32 %v1961_v27, %v1954_v30  ;;  %v2014_v6 = vmul.f32 %v4712_v9, %v5395_v16  ;;  %v2022_v8 = vmul.f32 %v4731_v3, %v5396_v62  ;;  %v5398_v3 = vld [vmem:[#allocation37_spill] sm:$0xff] }
 0x18c   : > { %v2023_v12 = vmul.f32 %v4727_v17, %v5396_v62  ;;  %v2045_v33 = vrot.slane %v2412_v55, 1  ;;  %v2046_v35 = vrot.slane %v2413_v23, 1  ;;  %v2047_v24 = vrot.slane %v2414_v28, 1 }
 0x18d   : > { %v1964_v10 = vadd.f32 %v1962_v52, %v1955_v4  ;;  %v1972_v48 = vadd.f32 %v1970_v41, %v1963_v0  ;;  %v2054_v46 = vrot.slane %v2412_v55, 2  ;;  %v2055_v49 = vrot.slane %v2413_v23, 2 }
 0x18e   : > { %v2031_v29 = vmul.f32 %v4745_v42, %v5397_v44  ;;  %v2032_v60 = vmul.f32 %v4741_v7, %v5397_v44  ;;  %v2056_v9 = vrot.slane %v2414_v28, 2  ;;  %v2041_v27 = vmul.f32 %v2412_v55, %v5398_v3 }
 0x18f   : > { %v1973_v45 = vadd.f32 %v1971_v61, %v1964_v10  ;;  %v1981_v59 = vadd.f32 %v1979_v34, %v1972_v48  ;;  %v2063_v52 = vrot.slane %v2412_v55, 3  ;;  %v2048_v17 = vsel %vm232_vm0, %v2046_v35, %v2047_v24 }
 0x190   : > { %v2049_v30 = vsel %vm232_vm0, %v2045_v33, %v2046_v35  ;;  %v2064_v4 = vrot.slane %v2413_v23, 3  ;;  %v2065_v51 = vrot.slane %v2414_v28, 3  ;;  %v2042_v7 = vmul.f32 %v2413_v23, %v5398_v3 }
 0x191   : > { %v1982_v14 = vadd.f32 %v1980_v39, %v1973_v45  ;;  %v1990_v25 = vadd.f32 %v1988_v56, %v1981_v59  ;;  %v2058_v37 = vsel %vm246_vm1, %v2054_v46, %v2055_v49  ;;  %v2057_v61 = vsel %vm246_vm1, %v2055_v49, %v2056_v9 }
 0x192   : > { %v2072_v0 = vrot.slane %v2412_v55, 4  ;;  %v2073_v10 = vrot.slane %v2413_v23, 4  ;;  %v2074_v2 = vrot.slane %v2414_v28, 4  ;;  %v2050_v39 = vmul.f32 %v2049_v30, %v5399_v63 }
 0x193   : > { %v1991_v53 = vadd.f32 %v1989_v21, %v1982_v14  ;;  %v1997_v57 = vadd.f32 %v1995_v38, %v1990_v25  ;;  %v2051_v48 = vmul.f32 %v2048_v17, %v5399_v63  ;;  %v2066_v45 = vsel %vm260_vm2, %v2064_v4, %v2065_v51 }
 0x194   : > { %v2067_v13 = vsel %vm260_vm2, %v2063_v52, %v2064_v4  ;;  %v2059_v21 = vmul.f32 %v2058_v37, %v5400_v58  ;;  %v2060_v59 = vmul.f32 %v2057_v61, %v5400_v58  ;;  %v2075_v14 = vsel %vm274_vm3, %v2073_v10, %v2074_v2 }
 0x195   : > { %v1998_v36 = vadd.f32 %v1996_v19, %v1991_v53  ;;  %v2006_v50 = vadd.f32 %v2004_v26, %v1997_v57  ;;  %v2076_v11 = vsel %vm274_vm3, %v2072_v0, %v2073_v10  ;;  %v2068_v25 = vmul.f32 %v2067_v13, %v3357_v32  ;;  %v5401_v26 = vld [vmem:[#allocation45_spill] sm:$0xff] }
 0x196   : > { %v2069_v53 = vmul.f32 %v2066_v45, %v3357_v32  ;;  %v2077_v15 = vmul.f32 %v2076_v11, %v5401_v26 }
 0x197   : > { %v2007_v43 = vadd.f32 %v2005_v18, %v1998_v36  ;;  %v2015_v5 = vadd.f32 %v2013_v47, %v2006_v50  ;;  %v2078_v18 = vmul.f32 %v2075_v14, %v5401_v26 }
 0x199   : > { %v2016_v22 = vadd.f32 %v2014_v6, %v2007_v43  ;;  %v2024_v42 = vadd.f32 %v2022_v8, %v2015_v5 }
 0x19b   : > { %v2025_v41 = vadd.f32 %v2023_v12, %v2016_v22  ;;  %v2033_v20 = vadd.f32 %v2031_v29, %v2024_v42 }
 0x19d   : > { %v2034_v34 = vadd.f32 %v2032_v60, %v2025_v41  ;;  %v2043_v54 = vadd.f32 %v2041_v27, %v2033_v20 }
 0x19f   : > { %v2044_v56 = vadd.f32 %v2042_v7, %v2034_v34  ;;  %v2052_v38 = vadd.f32 %v2050_v39, %v2043_v54 }
 0x1a1   : > { %v2053_v19 = vadd.f32 %v2051_v48, %v2044_v56  ;;  %v2061_v40 = vadd.f32 %v2059_v21, %v2052_v38 }
 0x1a3   : > { %v2062_v31 = vadd.f32 %v2060_v59, %v2053_v19  ;;  %v2070_v1 = vadd.f32 %v2068_v25, %v2061_v40 }
 0x1a5   : > { %v2071_v55 = vadd.f32 %v2069_v53, %v2062_v31  ;;  %v2079_v32 = vadd.f32 %v2077_v15, %v2070_v1 }
 0x1a7   : > { %v2080_v23 = vadd.f32 %v2078_v18, %v2071_v55  ;;  %2415 = vst [vmem:[%s3412_s6 + $0x70] sm:$0xff] %v2079_v32 }
 0x1a9   : > { %2416 = vst [vmem:[%s3412_s6 + $0x78] sm:$0xff] %v2080_v23 }
 0x1aa   : > { %2616 = shalt.err (!%p2613_p5)
}
 0x1ab   : > { %s2617_s12 = scalar_lea.hbm %s4897_s4, 2048  ;;  %s2621_s22 = scalar_lea.hbm %s4968_s2, 8192 }
 0x1ac   : > { %p2618_p8 = scmp.ne.s32.totalorder %s4897_s4, %s2617_s12  ;;  %p2622_p6 = scmp.lt.u32.totalorder %s4897_s4, %s4968_s2 }
 0x1ad   : > { %p2623_p10 = scmp.lt.u32.totalorder %s2621_s22, %s2617_s12  ;;  %p2625_p4 = scmp.lt.u32.totalorder %s2617_s12, %s4897_s4 }
 0x1ae   : > { %p2619_p12 = pnand %p2618_p8, %p5402_p7 }
 0x1af   : > { %p2624_p3 = por %p2623_p10, %p2622_p6 }
 0x1b0   : > { %p2620_p1 = pneg %p2619_p12 }
 0x1b1   : > { %p2626_p9 = por %p2625_p4, %p2624_p3 }
 0x1b3   : > { %p2627_p11 = pnand %p2626_p9, %p2620_p1 }
 0x1b5   : > { %2630 = shalt.err (!%p2627_p11)
}
 0x1b6   : > { %s2736_s7 = smov 128   ;;  %s2737_s23 = smov 8  }
 0x1b7   : > { %2434 = dma.vmem_to_hbm [thread:$0]  (%p5402_p7), %s4899_s8, 2048, %s4897_s4, %s4905_s1, %s2736_s7, %s2736_s7, %s2737_s23  }
 0x1b8 PF: > { %s5403_s15 = sld [smem:[#allocation12_spill]]  ;;  %p2451_p13 = scmp.ge.s32.totalorder %s2729_s19, 2 }
 0x1b9   : > { %s2117_s16 = sand.u32 1, %s2689_s9  }
 0x1ba   : > { %s2118_s20 = scalar_lea.sflag [#allocation4], %s2117_s16 }
 0x1be   : > { %p5404_p0 = scmp.ne.s32.totalorder %s5403_s15, 0 }
 0x1c0   : > { %p2445_p2 = pnand %p2451_p13, %p5404_p0 }
 0x1c2   : > { %2684 = dma.done.wait (!%p2445_p2), %s2118_s20, 2048  }
 0x1c3   : > { %2686 = vsyncadd (!%p2445_p2), %s2118_s20, 4294965248  ;;  %s19_s19 = sadd.s32 1, %s2729_s19   ;;  %s5405_s15 = sld [smem:[#allocation11_spill]] }
 0x1c4   : > { %p16_p5 = scmp.ge.s32.totalorder %s19_s19, 6   ;;  %s5406_s17 = sld [smem:[#allocation13_spill]] }
 0x1c5   : > { %s5407_s25 = sld [smem:[#allocation14_spill]]  ;;  %s5408_s9 = smov %s2693_s10 }
 0x1c6   : > { %s5409_s10 = smov %s2697_s11  ;;  %s5410_s11 = smov %s2893_s28 }
 0x1c7   : > { %s5411_s12 = smov %s2705_s13  ;;  %s5412_s13 = smov %s2709_s14 }
 0x1c8   : > { %s5413_s14 = smov %s2888_s21  ;;  %s5414_s16 = smov %s2725_s18 }
 0x1c9   :  { %18 = sbr.rel (!%p16_p5) target bundleno = 12 (0xc), region = 97 }
 0x1cb   : > { %s5415_s18 = smov %s5407_s25 }
 0x1d0   :  { %2123 = vsyncpa [#allocation3], 1 }
 0x1d1   :  { %2125 = vsyncpa [#allocation3 + $0x1], 1 }
 0x1d2   :  { %2126 = vsyncpa [#allocation6], 1 }
 0x1d3   :  { %2127 = vsyncpa [#allocation4], 1 }
 0x1d4   :  { %2129 = vsyncpa [#allocation4 + $0x1], 1 }

</bundles_post_ra>
